<compile_context>
chip_gen: v5e
topology: v5e:2x2
jax: 0.10.0
libtpu: 0.0.40
codegen_flags: <defaults>
</compile_context>

<pallas_src>
import math
from functools import partial

import jax
import jax.numpy as jnp
from jax.experimental import pallas as pl
from jax.experimental.pallas import tpu as pltpu  # noqa: F401  (kept for TPU-targeted builds)


def _round_up(n, m):
    return ((n + m - 1) // m) * m


# ----------------------------------------------------------------------------
# Fused Pallas kernel: the whole autoencoder forward in one gridless pallas_call.
# ----------------------------------------------------------------------------
def _fused_autoencoder_kernel(x_ref, w_ref, out_ref, z_ref, *, layout, B, T):
    def load(off, rows, cols):
        # Static slice of the packed weight slab (section starts are 8-row aligned).
        return w_ref[off:off + rows, :cols]

    def lstm_layer(seq_tm, spec):
        """One LSTM layer, de-fused: one batched input matmul over all T, then a
        minimal per-step recurrence (only h @ Whh stays on the serial path)."""
        o_wih, din, o_whh, H, o_b = spec
        wih = load(o_wih, din, 4 * H)
        whh = load(o_whh, H, 4 * H)        # hoisted out of the time loop
        bias = load(o_b, 1, 4 * H)
        # One (T*B, din)x(din, 4H) MXU push replaces T pushes with M=B.
        pre = jnp.dot(seq_tm, wih, preferred_element_type=jnp.float32) + bias
        h = jnp.zeros((B, H), jnp.float32)  # nn.LSTM h0 = 0
        c = jnp.ones((B, H), jnp.float32)   # model_lstm.init_hidden: c0 = 0 + 1
        hs = []
        for t in range(T):                  # T small & static -> fully unrolled
            gates = pre[t * B:(t + 1) * B, :] + jnp.dot(
                h, whh, preferred_element_type=jnp.float32)
            # g-gate columns were pre-scaled by 2 at pack time, so a single sigmoid
            # pass yields all four gates (tanh(x) = 2*sigmoid(2x) - 1).
            s = jax.nn.sigmoid(gates)
            i = s[:, 0 * H:1 * H]
            f = s[:, 1 * H:2 * H]
            g = 2.0 * s[:, 2 * H:3 * H] - 1.0
            o = s[:, 3 * H:4 * H]
            c = f * c + i * g
            h = o * jnp.tanh(c)
            hs.append(h)
        # Values only (no VMEM slab stores); time-major (T*B, H).
        return jnp.concatenate(hs, axis=0)

    def linear(h2d, spec, act):
        # model_ann: tanh after every layer except the last (dropout = identity in eval).
        o_w, din, o_b, dout = spec
        w = load(o_w, din, dout)
        bias = load(o_b, 1, dout)
        y = jnp.dot(h2d, w, preferred_element_type=jnp.float32) + bias
        return jnp.tanh(y) if act else y

    # ---- relayout input: batch-major (B*T, Din) -> time-major (T*B, Din) ----
    xv = x_ref[...]
    x_tm = jnp.concatenate(
        [xv[b * T + t:b * T + t + 1, :] for t in range(T) for b in range(B)], axis=0)

    # ---- encoder LSTM (2 layers) ----
    h = x_tm
    for spec in layout["enc_lstm"]:
        h = lstm_layer(h, spec)
    # ---- encoder ANN -> bottleneck z ----
    z = h
    enc_specs = layout["enc_ann"]
    for li, spec in enumerate(enc_specs):
        z = linear(z, spec, act=(li < len(enc_specs) - 1))
    # ---- decoder ANN ----
    d = z
    dec_specs = layout["dec_ann"]
    for li, spec in enumerate(dec_specs):
        d = linear(d, spec, act=(li < len(dec_specs) - 1))
    # ---- decoder LSTM (2 layers) ----
    for spec in layout["dec_lstm"]:
        d = lstm_layer(d, spec)
    # ---- final fc ----
    y = linear(d, layout["fc"], act=False)   # (T*B, input_size)

    # ---- relayout time-major -> batch-major; one full store per output ----
    out_ref[...] = jnp.concatenate(
        [y[t * B + b:t * B + b + 1, :] for b in range(B) for t in range(T)],
        axis=0).astype(out_ref.dtype)
    z_ref[...] = jnp.concatenate(
        [z[t * B + b:t * B + b + 1, :] for b in range(B) for t in range(T)],
        axis=0).astype(z_ref.dtype)


# ----------------------------------------------------------------------------
# One-time weight packing: all weights/biases into a single (rows, 128) slab.
# ----------------------------------------------------------------------------
def pack_params(params):
    """Pack every weight/bias into one f32 slab (one DMA instead of ~23), with
    8-row-aligned sections; folds the x2 g-gate scale used by the kernel's
    single-sigmoid gate evaluation."""
    all_cols = [wih.shape[1] for (wih, _, _) in params["enc_lstm"] + params["dec_lstm"]]
    all_cols += [w.shape[1] for (w, _) in
                 params["enc_ann"] + params["dec_ann"] + [params["fc"]]]
    C = _round_up(max(all_cols), 128)

    sections = []
    cursor = 0

    def add(arr2d):
        nonlocal cursor
        r, c = arr2d.shape
        rp = _round_up(r, 8)
        padded = jnp.zeros((rp, C), jnp.float32).at[:r, :c].set(arr2d.astype(jnp.float32))
        sections.append(padded)
        off = cursor
        cursor += rp
        return off

    def scale_g(a, H):
        # tanh(x) = 2*sigmoid(2x) - 1: fold the 2x into the g-gate columns.
        return a.at[..., 2 * H:3 * H].multiply(2.0)

    layout = {}
    for name in ("enc_lstm", "dec_lstm"):
        specs = []
        for (wih_t, whh_t, b) in params[name]:
            H = whh_t.shape[0]
            din = wih_t.shape[0]
            specs.append((add(scale_g(wih_t, H)), din,
                          add(scale_g(whh_t, H)), H,
                          add(scale_g(b, H).reshape(1, -1))))
        layout[name] = tuple(specs)
    for name in ("enc_ann", "dec_ann"):
        specs = []
        for (w, b) in params[name]:
            din, dout = w.shape
            specs.append((add(w), din, add(b.reshape(1, -1)), dout))
        layout[name] = tuple(specs)
    w, b = params["fc"]
    layout["fc"] = (add(w), w.shape[0], add(b.reshape(1, -1)), w.shape[1])

    return jnp.concatenate(sections, axis=0), layout


# ----------------------------------------------------------------------------
# Hot-path wrapper: free reshapes + a single pallas_call (no scratch, no grid).
# ----------------------------------------------------------------------------
def lstm_autoencoder_forward(wbuf, x, *, layout):
    B, T, Din = x.shape
    nb = layout["enc_ann"][-1][3]            # bottleneck size
    x_bm = x.reshape(B * T, Din)             # contiguous reshape: no copy/launch
    kernel = partial(_fused_autoencoder_kernel, layout=layout, B=B, T=T)
    out_bm, z_bm = pl.pallas_call(
        kernel,
        out_shape=(jax.ShapeDtypeStruct((B * T, Din), jnp.float32),
                   jax.ShapeDtypeStruct((B * T, nb), jnp.float32)),
    )(x_bm, wbuf)
    return out_bm.reshape(B, T, Din), z_bm.reshape(B, T, nb)


# ----------------------------------------------------------------------------
# Deterministic parameter initialization (PyTorch-style uniform bounds)
# ----------------------------------------------------------------------------
def _init_linear(key, din, dout):
    k1, k2 = jax.random.split(key)
    bound = 1.0 / math.sqrt(din)
    w = jax.random.uniform(k1, (dout, din), jnp.float32, -bound, bound)
    b = jax.random.uniform(k2, (dout,), jnp.float32, -bound, bound)
    return jnp.transpose(w), b  # pre-transposed to (Din, Dout)


def _init_lstm_layer(key, din, hidden):
    ks = jax.random.split(key, 4)
    bound = 1.0 / math.sqrt(hidden)
    wih = jax.random.uniform(ks[0], (4 * hidden, din), jnp.float32, -bound, bound)
    whh = jax.random.uniform(ks[1], (4 * hidden, hidden), jnp.float32, -bound, bound)
    bih = jax.random.uniform(ks[2], (4 * hidden,), jnp.float32, -bound, bound)
    bhh = jax.random.uniform(ks[3], (4 * hidden,), jnp.float32, -bound, bound)
    return jnp.transpose(wih), jnp.transpose(whh), bih + bhh


def _init_lstm(key, din, hidden, n_layers):
    keys = jax.random.split(key, n_layers)
    layers, in_dim = [], din
    for l in range(n_layers):
        layers.append(_init_lstm_layer(keys[l], in_dim, hidden))
        in_dim = hidden
    return layers


def _init_ann(key, dims):
    keys = jax.random.split(key, len(dims) - 1)
    return [_init_linear(keys[i], dims[i], dims[i + 1]) for i in range(len(dims) - 1)]


def init_params(key, input_size, lstm_encoder_hidden, lstm_decoder_hidden,
                encoder_layer_size, decoder_layer_size, bottleneck):
    k = jax.random.split(key, 5)
    return {
        "enc_lstm": _init_lstm(k[0], input_size, lstm_encoder_hidden, 2),
        "enc_ann": _init_ann(k[1], [lstm_encoder_hidden] + list(encoder_layer_size) + [bottleneck]),
        "dec_ann": _init_ann(k[2], [bottleneck] + list(decoder_layer_size) + [lstm_decoder_hidden]),
        "dec_lstm": _init_lstm(k[3], lstm_decoder_hidden, lstm_decoder_hidden, 2),
        "fc": _init_linear(k[4], lstm_decoder_hidden, input_size),
    }


# ----------------------------------------------------------------------------
# Pure-JAX reference (same math, unpacked params) for a correctness cross-check.
# ----------------------------------------------------------------------------
def _reference_forward(params, x):
    B, T, _ = x.shape

    def run_stack(seq, layers):
        for (wih_t, whh_t, b) in layers:
            H = whh_t.shape[0]
            h = jnp.zeros((B, H), jnp.float32)
            c = jnp.ones((B, H), jnp.float32)   # init_hidden: cell = 0 + 1
            outs = []
            for t in range(T):
                gates = seq[:, t, :] @ wih_t + h @ whh_t + b
                i = jax.nn.sigmoid(gates[:, :H])
                f = jax.nn.sigmoid(gates[:, H:2 * H])
                g = jnp.tanh(gates[:, 2 * H:3 * H])
                o = jax.nn.sigmoid(gates[:, 3 * H:])
                c = f * c + i * g
                h = o * jnp.tanh(c)
                outs.append(h)
            seq = jnp.stack(outs, axis=1)
        return seq

    def mlp(h, layers):
        for li, (w, b) in enumerate(layers):
            h = h @ w + b
            if li < len(layers) - 1:
                h = jnp.tanh(h)
        return h

    out = run_stack(x, params["enc_lstm"])
    z = mlp(out.reshape(B * T, -1), params["enc_ann"])
    d = mlp(z, params["dec_ann"])
    out = run_stack(d.reshape(B, T, -1), params["dec_lstm"])
    y = out.reshape(B * T, -1) @ params["fc"][0] + params["fc"][1]
    return y.reshape(B, T, -1), z.reshape(B, T, -1)


# ----------------------------------------------------------------------------
if __name__ == "__main__":
    B, T = 2, 8
    input_size = 16
    lstm_encoder_hidden = 32
    lstm_decoder_hidden = 32
    encoder_layer_size = [24]
    decoder_layer_size = [24]
    bottleneck = 10

    key = jax.random.PRNGKey(0)
    k_param, k_x = jax.random.split(key)
    params = init_params(k_param, input_size, lstm_encoder_hidden, lstm_decoder_hidden,
                         encoder_layer_size, decoder_layer_size, bottleneck)
    x = jax.random.normal(k_x, (B, T, input_size), jnp.float32)

    # One-time packing outside the hot path (single weight DMA into the kernel).
    wbuf, layout = pack_params(params)
    fwd = jax.jit(partial(lstm_autoencoder_forward, layout=layout))

    out, z = fwd(wbuf, x)
    out = jax.block_until_ready(out)
    z = jax.block_until_ready(z)

    assert out.shape == (B, T, input_size)
    assert z.shape == (B, T, bottleneck)
    assert jnp.all(jnp.isfinite(out)) and jnp.all(jnp.isfinite(z))

    # Cross-check against the pure-JAX reference (loose tolerance absorbs the MXU's
    # default f32 matmul precision; gate-order / init bugs would be >> 0.1).
    out_r, z_r = jax.jit(_reference_forward)(params, x)
    assert jnp.allclose(out, out_r, atol=3e-2, rtol=3e-2), float(jnp.max(jnp.abs(out - out_r)))
    assert jnp.allclose(z, z_r, atol=3e-2, rtol=3e-2), float(jnp.max(jnp.abs(z - z_r)))

    print("KERNEL_OK")
</pallas_src>

<mosaic_0001>
module attributes {stable_mosaic.version = 11 : i64} {
  func.func @_fused_autoencoder_kernel(%arg0: memref<16x16xf32, #tpu.memory_space<vmem>>, %arg1: memref<440x128xf32, #tpu.memory_space<vmem>>, %arg2: memref<16x16xf32, #tpu.memory_space<vmem>>, %arg3: memref<16x10xf32, #tpu.memory_space<vmem>>) attributes {dimension_semantics = [], scalar_prefetch = 0 : i64, scratch_operands = 0 : i64, tpu.core_type = #tpu.core_type<tc>} {
    %c0 = arith.constant 0 : index
    %c0_0 = arith.constant 0 : index
    %0 = vector.load %arg0[%c0, %c0_0] : memref<16x16xf32, #tpu.memory_space<vmem>>, vector<16x16xf32>
    %1 = vector.extract_strided_slice %0 {offsets = [0, 0], sizes = [1, 16], strides = [1, 1]} : vector<16x16xf32> to vector<1x16xf32>
    %2 = vector.extract_strided_slice %0 {offsets = [8, 0], sizes = [1, 16], strides = [1, 1]} : vector<16x16xf32> to vector<1x16xf32>
    %3 = vector.extract_strided_slice %0 {offsets = [1, 0], sizes = [1, 16], strides = [1, 1]} : vector<16x16xf32> to vector<1x16xf32>
    %4 = vector.extract_strided_slice %0 {offsets = [9, 0], sizes = [1, 16], strides = [1, 1]} : vector<16x16xf32> to vector<1x16xf32>
    %5 = vector.extract_strided_slice %0 {offsets = [2, 0], sizes = [1, 16], strides = [1, 1]} : vector<16x16xf32> to vector<1x16xf32>
    %6 = vector.extract_strided_slice %0 {offsets = [10, 0], sizes = [1, 16], strides = [1, 1]} : vector<16x16xf32> to vector<1x16xf32>
    %7 = vector.extract_strided_slice %0 {offsets = [3, 0], sizes = [1, 16], strides = [1, 1]} : vector<16x16xf32> to vector<1x16xf32>
    %8 = vector.extract_strided_slice %0 {offsets = [11, 0], sizes = [1, 16], strides = [1, 1]} : vector<16x16xf32> to vector<1x16xf32>
    %9 = vector.extract_strided_slice %0 {offsets = [4, 0], sizes = [1, 16], strides = [1, 1]} : vector<16x16xf32> to vector<1x16xf32>
    %10 = vector.extract_strided_slice %0 {offsets = [12, 0], sizes = [1, 16], strides = [1, 1]} : vector<16x16xf32> to vector<1x16xf32>
    %11 = vector.extract_strided_slice %0 {offsets = [5, 0], sizes = [1, 16], strides = [1, 1]} : vector<16x16xf32> to vector<1x16xf32>
    %12 = vector.extract_strided_slice %0 {offsets = [13, 0], sizes = [1, 16], strides = [1, 1]} : vector<16x16xf32> to vector<1x16xf32>
    %13 = vector.extract_strided_slice %0 {offsets = [6, 0], sizes = [1, 16], strides = [1, 1]} : vector<16x16xf32> to vector<1x16xf32>
    %14 = vector.extract_strided_slice %0 {offsets = [14, 0], sizes = [1, 16], strides = [1, 1]} : vector<16x16xf32> to vector<1x16xf32>
    %15 = vector.extract_strided_slice %0 {offsets = [7, 0], sizes = [1, 16], strides = [1, 1]} : vector<16x16xf32> to vector<1x16xf32>
    %16 = vector.extract_strided_slice %0 {offsets = [15, 0], sizes = [1, 16], strides = [1, 1]} : vector<16x16xf32> to vector<1x16xf32>
    %17 = tpu.concatenate %1, %2, %3, %4, %5, %6, %7, %8, %9, %10, %11, %12, %13, %14, %15, %16 in 0 : vector<1x16xf32>, vector<1x16xf32>, vector<1x16xf32>, vector<1x16xf32>, vector<1x16xf32>, vector<1x16xf32>, vector<1x16xf32>, vector<1x16xf32>, vector<1x16xf32>, vector<1x16xf32>, vector<1x16xf32>, vector<1x16xf32>, vector<1x16xf32>, vector<1x16xf32>, vector<1x16xf32>, vector<1x16xf32> -> vector<16x16xf32>
    %c0_1 = arith.constant 0 : index
    %c0_2 = arith.constant 0 : index
    %18 = vector.load %arg1[%c0_1, %c0_2] : memref<440x128xf32, #tpu.memory_space<vmem>>, vector<16x128xf32>
    %c16 = arith.constant 16 : index
    %c0_3 = arith.constant 0 : index
    %19 = vector.load %arg1[%c16, %c0_3] : memref<440x128xf32, #tpu.memory_space<vmem>>, vector<32x128xf32>
    %c48 = arith.constant 48 : index
    %c0_4 = arith.constant 0 : index
    %20 = vector.load %arg1[%c48, %c0_4] : memref<440x128xf32, #tpu.memory_space<vmem>>, vector<1x128xf32>
    %cst = arith.constant dense<0.000000e+00> : vector<16x128xf32>
    %21 = tpu.matmul %17, %18, %cst {dimension_numbers = #tpu.dot_dimension_numbers<[1], [0], [0], [1], [0, 0, 1, 1], [], []>} : vector<16x16xf32>, vector<16x128xf32>, vector<16x128xf32> -> vector<16x128xf32>
    %22 = vector.broadcast %20 : vector<1x128xf32> to vector<16x128xf32>
    %23 = arith.addf %21, %22 : vector<16x128xf32>
    %cst_5 = arith.constant 0.000000e+00 : f32
    %24 = vector.broadcast %cst_5 : f32 to vector<2x32xf32>
    %cst_6 = arith.constant 1.000000e+00 : f32
    %25 = vector.broadcast %cst_6 : f32 to vector<2x32xf32>
    %26 = vector.extract_strided_slice %23 {offsets = [0, 0], sizes = [2, 128], strides = [1, 1]} : vector<16x128xf32> to vector<2x128xf32>
    %cst_7 = arith.constant dense<0.000000e+00> : vector<2x128xf32>
    %27 = tpu.matmul %24, %19, %cst_7 {dimension_numbers = #tpu.dot_dimension_numbers<[1], [0], [0], [1], [0, 0, 1, 1], [], []>} : vector<2x32xf32>, vector<32x128xf32>, vector<2x128xf32> -> vector<2x128xf32>
    %28 = arith.addf %26, %27 : vector<2x128xf32>
    %29 = arith.negf %28 : vector<2x128xf32>
    %30 = math.exp %29 : vector<2x128xf32>
    %cst_8 = arith.constant 1.000000e+00 : f32
    %31 = vector.broadcast %cst_8 : f32 to vector<2x128xf32>
    %32 = arith.addf %31, %30 : vector<2x128xf32>
    %33 = arith.divf %31, %32 : vector<2x128xf32>
    %34 = vector.extract_strided_slice %33 {offsets = [0, 0], sizes = [2, 32], strides = [1, 1]} : vector<2x128xf32> to vector<2x32xf32>
    %35 = vector.extract_strided_slice %33 {offsets = [0, 32], sizes = [2, 32], strides = [1, 1]} : vector<2x128xf32> to vector<2x32xf32>
    %36 = vector.extract_strided_slice %33 {offsets = [0, 64], sizes = [2, 32], strides = [1, 1]} : vector<2x128xf32> to vector<2x32xf32>
    %cst_9 = arith.constant 2.000000e+00 : f32
    %37 = vector.broadcast %cst_9 : f32 to vector<2x32xf32>
    %38 = arith.mulf %37, %36 : vector<2x32xf32>
    %cst_10 = arith.constant 1.000000e+00 : f32
    %39 = vector.broadcast %cst_10 : f32 to vector<2x32xf32>
    %40 = arith.subf %38, %39 : vector<2x32xf32>
    %41 = vector.extract_strided_slice %33 {offsets = [0, 96], sizes = [2, 32], strides = [1, 1]} : vector<2x128xf32> to vector<2x32xf32>
    %42 = arith.mulf %35, %25 : vector<2x32xf32>
    %43 = arith.mulf %34, %40 : vector<2x32xf32>
    %44 = arith.addf %42, %43 : vector<2x32xf32>
    %45 = math.tanh %44 : vector<2x32xf32>
    %46 = arith.mulf %41, %45 : vector<2x32xf32>
    %47 = vector.extract_strided_slice %23 {offsets = [2, 0], sizes = [2, 128], strides = [1, 1]} : vector<16x128xf32> to vector<2x128xf32>
    %cst_11 = arith.constant dense<0.000000e+00> : vector<2x128xf32>
    %48 = tpu.matmul %46, %19, %cst_11 {dimension_numbers = #tpu.dot_dimension_numbers<[1], [0], [0], [1], [0, 0, 1, 1], [], []>} : vector<2x32xf32>, vector<32x128xf32>, vector<2x128xf32> -> vector<2x128xf32>
    %49 = arith.addf %47, %48 : vector<2x128xf32>
    %50 = arith.negf %49 : vector<2x128xf32>
    %51 = math.exp %50 : vector<2x128xf32>
    %cst_12 = arith.constant 1.000000e+00 : f32
    %52 = vector.broadcast %cst_12 : f32 to vector<2x128xf32>
    %53 = arith.addf %52, %51 : vector<2x128xf32>
    %54 = arith.divf %52, %53 : vector<2x128xf32>
    %55 = vector.extract_strided_slice %54 {offsets = [0, 0], sizes = [2, 32], strides = [1, 1]} : vector<2x128xf32> to vector<2x32xf32>
    %56 = vector.extract_strided_slice %54 {offsets = [0, 32], sizes = [2, 32], strides = [1, 1]} : vector<2x128xf32> to vector<2x32xf32>
    %57 = vector.extract_strided_slice %54 {offsets = [0, 64], sizes = [2, 32], strides = [1, 1]} : vector<2x128xf32> to vector<2x32xf32>
    %cst_13 = arith.constant 2.000000e+00 : f32
    %58 = vector.broadcast %cst_13 : f32 to vector<2x32xf32>
    %59 = arith.mulf %58, %57 : vector<2x32xf32>
    %cst_14 = arith.constant 1.000000e+00 : f32
    %60 = vector.broadcast %cst_14 : f32 to vector<2x32xf32>
    %61 = arith.subf %59, %60 : vector<2x32xf32>
    %62 = vector.extract_strided_slice %54 {offsets = [0, 96], sizes = [2, 32], strides = [1, 1]} : vector<2x128xf32> to vector<2x32xf32>
    %63 = arith.mulf %56, %44 : vector<2x32xf32>
    %64 = arith.mulf %55, %61 : vector<2x32xf32>
    %65 = arith.addf %63, %64 : vector<2x32xf32>
    %66 = math.tanh %65 : vector<2x32xf32>
    %67 = arith.mulf %62, %66 : vector<2x32xf32>
    %68 = vector.extract_strided_slice %23 {offsets = [4, 0], sizes = [2, 128], strides = [1, 1]} : vector<16x128xf32> to vector<2x128xf32>
    %cst_15 = arith.constant dense<0.000000e+00> : vector<2x128xf32>
    %69 = tpu.matmul %67, %19, %cst_15 {dimension_numbers = #tpu.dot_dimension_numbers<[1], [0], [0], [1], [0, 0, 1, 1], [], []>} : vector<2x32xf32>, vector<32x128xf32>, vector<2x128xf32> -> vector<2x128xf32>
    %70 = arith.addf %68, %69 : vector<2x128xf32>
    %71 = arith.negf %70 : vector<2x128xf32>
    %72 = math.exp %71 : vector<2x128xf32>
    %cst_16 = arith.constant 1.000000e+00 : f32
    %73 = vector.broadcast %cst_16 : f32 to vector<2x128xf32>
    %74 = arith.addf %73, %72 : vector<2x128xf32>
    %75 = arith.divf %73, %74 : vector<2x128xf32>
    %76 = vector.extract_strided_slice %75 {offsets = [0, 0], sizes = [2, 32], strides = [1, 1]} : vector<2x128xf32> to vector<2x32xf32>
    %77 = vector.extract_strided_slice %75 {offsets = [0, 32], sizes = [2, 32], strides = [1, 1]} : vector<2x128xf32> to vector<2x32xf32>
    %78 = vector.extract_strided_slice %75 {offsets = [0, 64], sizes = [2, 32], strides = [1, 1]} : vector<2x128xf32> to vector<2x32xf32>
    %cst_17 = arith.constant 2.000000e+00 : f32
    %79 = vector.broadcast %cst_17 : f32 to vector<2x32xf32>
    %80 = arith.mulf %79, %78 : vector<2x32xf32>
    %cst_18 = arith.constant 1.000000e+00 : f32
    %81 = vector.broadcast %cst_18 : f32 to vector<2x32xf32>
    %82 = arith.subf %80, %81 : vector<2x32xf32>
    %83 = vector.extract_strided_slice %75 {offsets = [0, 96], sizes = [2, 32], strides = [1, 1]} : vector<2x128xf32> to vector<2x32xf32>
    %84 = arith.mulf %77, %65 : vector<2x32xf32>
    %85 = arith.mulf %76, %82 : vector<2x32xf32>
    %86 = arith.addf %84, %85 : vector<2x32xf32>
    %87 = math.tanh %86 : vector<2x32xf32>
    %88 = arith.mulf %83, %87 : vector<2x32xf32>
    %89 = vector.extract_strided_slice %23 {offsets = [6, 0], sizes = [2, 128], strides = [1, 1]} : vector<16x128xf32> to vector<2x128xf32>
    %cst_19 = arith.constant dense<0.000000e+00> : vector<2x128xf32>
    %90 = tpu.matmul %88, %19, %cst_19 {dimension_numbers = #tpu.dot_dimension_numbers<[1], [0], [0], [1], [0, 0, 1, 1], [], []>} : vector<2x32xf32>, vector<32x128xf32>, vector<2x128xf32> -> vector<2x128xf32>
    %91 = arith.addf %89, %90 : vector<2x128xf32>
    %92 = arith.negf %91 : vector<2x128xf32>
    %93 = math.exp %92 : vector<2x128xf32>
    %cst_20 = arith.constant 1.000000e+00 : f32
    %94 = vector.broadcast %cst_20 : f32 to vector<2x128xf32>
    %95 = arith.addf %94, %93 : vector<2x128xf32>
    %96 = arith.divf %94, %95 : vector<2x128xf32>
    %97 = vector.extract_strided_slice %96 {offsets = [0, 0], sizes = [2, 32], strides = [1, 1]} : vector<2x128xf32> to vector<2x32xf32>
    %98 = vector.extract_strided_slice %96 {offsets = [0, 32], sizes = [2, 32], strides = [1, 1]} : vector<2x128xf32> to vector<2x32xf32>
    %99 = vector.extract_strided_slice %96 {offsets = [0, 64], sizes = [2, 32], strides = [1, 1]} : vector<2x128xf32> to vector<2x32xf32>
    %cst_21 = arith.constant 2.000000e+00 : f32
    %100 = vector.broadcast %cst_21 : f32 to vector<2x32xf32>
    %101 = arith.mulf %100, %99 : vector<2x32xf32>
    %cst_22 = arith.constant 1.000000e+00 : f32
    %102 = vector.broadcast %cst_22 : f32 to vector<2x32xf32>
    %103 = arith.subf %101, %102 : vector<2x32xf32>
    %104 = vector.extract_strided_slice %96 {offsets = [0, 96], sizes = [2, 32], strides = [1, 1]} : vector<2x128xf32> to vector<2x32xf32>
    %105 = arith.mulf %98, %86 : vector<2x32xf32>
    %106 = arith.mulf %97, %103 : vector<2x32xf32>
    %107 = arith.addf %105, %106 : vector<2x32xf32>
    %108 = math.tanh %107 : vector<2x32xf32>
    %109 = arith.mulf %104, %108 : vector<2x32xf32>
    %110 = vector.extract_strided_slice %23 {offsets = [8, 0], sizes = [2, 128], strides = [1, 1]} : vector<16x128xf32> to vector<2x128xf32>
    %cst_23 = arith.constant dense<0.000000e+00> : vector<2x128xf32>
    %111 = tpu.matmul %109, %19, %cst_23 {dimension_numbers = #tpu.dot_dimension_numbers<[1], [0], [0], [1], [0, 0, 1, 1], [], []>} : vector<2x32xf32>, vector<32x128xf32>, vector<2x128xf32> -> vector<2x128xf32>
    %112 = arith.addf %110, %111 : vector<2x128xf32>
    %113 = arith.negf %112 : vector<2x128xf32>
    %114 = math.exp %113 : vector<2x128xf32>
    %cst_24 = arith.constant 1.000000e+00 : f32
    %115 = vector.broadcast %cst_24 : f32 to vector<2x128xf32>
    %116 = arith.addf %115, %114 : vector<2x128xf32>
    %117 = arith.divf %115, %116 : vector<2x128xf32>
    %118 = vector.extract_strided_slice %117 {offsets = [0, 0], sizes = [2, 32], strides = [1, 1]} : vector<2x128xf32> to vector<2x32xf32>
    %119 = vector.extract_strided_slice %117 {offsets = [0, 32], sizes = [2, 32], strides = [1, 1]} : vector<2x128xf32> to vector<2x32xf32>
    %120 = vector.extract_strided_slice %117 {offsets = [0, 64], sizes = [2, 32], strides = [1, 1]} : vector<2x128xf32> to vector<2x32xf32>
    %cst_25 = arith.constant 2.000000e+00 : f32
    %121 = vector.broadcast %cst_25 : f32 to vector<2x32xf32>
    %122 = arith.mulf %121, %120 : vector<2x32xf32>
    %cst_26 = arith.constant 1.000000e+00 : f32
    %123 = vector.broadcast %cst_26 : f32 to vector<2x32xf32>
    %124 = arith.subf %122, %123 : vector<2x32xf32>
    %125 = vector.extract_strided_slice %117 {offsets = [0, 96], sizes = [2, 32], strides = [1, 1]} : vector<2x128xf32> to vector<2x32xf32>
    %126 = arith.mulf %119, %107 : vector<2x32xf32>
    %127 = arith.mulf %118, %124 : vector<2x32xf32>
    %128 = arith.addf %126, %127 : vector<2x32xf32>
    %129 = math.tanh %128 : vector<2x32xf32>
    %130 = arith.mulf %125, %129 : vector<2x32xf32>
    %131 = vector.extract_strided_slice %23 {offsets = [10, 0], sizes = [2, 128], strides = [1, 1]} : vector<16x128xf32> to vector<2x128xf32>
    %cst_27 = arith.constant dense<0.000000e+00> : vector<2x128xf32>
    %132 = tpu.matmul %130, %19, %cst_27 {dimension_numbers = #tpu.dot_dimension_numbers<[1], [0], [0], [1], [0, 0, 1, 1], [], []>} : vector<2x32xf32>, vector<32x128xf32>, vector<2x128xf32> -> vector<2x128xf32>
    %133 = arith.addf %131, %132 : vector<2x128xf32>
    %134 = arith.negf %133 : vector<2x128xf32>
    %135 = math.exp %134 : vector<2x128xf32>
    %cst_28 = arith.constant 1.000000e+00 : f32
    %136 = vector.broadcast %cst_28 : f32 to vector<2x128xf32>
    %137 = arith.addf %136, %135 : vector<2x128xf32>
    %138 = arith.divf %136, %137 : vector<2x128xf32>
    %139 = vector.extract_strided_slice %138 {offsets = [0, 0], sizes = [2, 32], strides = [1, 1]} : vector<2x128xf32> to vector<2x32xf32>
    %140 = vector.extract_strided_slice %138 {offsets = [0, 32], sizes = [2, 32], strides = [1, 1]} : vector<2x128xf32> to vector<2x32xf32>
    %141 = vector.extract_strided_slice %138 {offsets = [0, 64], sizes = [2, 32], strides = [1, 1]} : vector<2x128xf32> to vector<2x32xf32>
    %cst_29 = arith.constant 2.000000e+00 : f32
    %142 = vector.broadcast %cst_29 : f32 to vector<2x32xf32>
    %143 = arith.mulf %142, %141 : vector<2x32xf32>
    %cst_30 = arith.constant 1.000000e+00 : f32
    %144 = vector.broadcast %cst_30 : f32 to vector<2x32xf32>
    %145 = arith.subf %143, %144 : vector<2x32xf32>
    %146 = vector.extract_strided_slice %138 {offsets = [0, 96], sizes = [2, 32], strides = [1, 1]} : vector<2x128xf32> to vector<2x32xf32>
    %147 = arith.mulf %140, %128 : vector<2x32xf32>
    %148 = arith.mulf %139, %145 : vector<2x32xf32>
    %149 = arith.addf %147, %148 : vector<2x32xf32>
    %150 = math.tanh %149 : vector<2x32xf32>
    %151 = arith.mulf %146, %150 : vector<2x32xf32>
    %152 = vector.extract_strided_slice %23 {offsets = [12, 0], sizes = [2, 128], strides = [1, 1]} : vector<16x128xf32> to vector<2x128xf32>
    %cst_31 = arith.constant dense<0.000000e+00> : vector<2x128xf32>
    %153 = tpu.matmul %151, %19, %cst_31 {dimension_numbers = #tpu.dot_dimension_numbers<[1], [0], [0], [1], [0, 0, 1, 1], [], []>} : vector<2x32xf32>, vector<32x128xf32>, vector<2x128xf32> -> vector<2x128xf32>
    %154 = arith.addf %152, %153 : vector<2x128xf32>
    %155 = arith.negf %154 : vector<2x128xf32>
    %156 = math.exp %155 : vector<2x128xf32>
    %cst_32 = arith.constant 1.000000e+00 : f32
    %157 = vector.broadcast %cst_32 : f32 to vector<2x128xf32>
    %158 = arith.addf %157, %156 : vector<2x128xf32>
    %159 = arith.divf %157, %158 : vector<2x128xf32>
    %160 = vector.extract_strided_slice %159 {offsets = [0, 0], sizes = [2, 32], strides = [1, 1]} : vector<2x128xf32> to vector<2x32xf32>
    %161 = vector.extract_strided_slice %159 {offsets = [0, 32], sizes = [2, 32], strides = [1, 1]} : vector<2x128xf32> to vector<2x32xf32>
    %162 = vector.extract_strided_slice %159 {offsets = [0, 64], sizes = [2, 32], strides = [1, 1]} : vector<2x128xf32> to vector<2x32xf32>
    %cst_33 = arith.constant 2.000000e+00 : f32
    %163 = vector.broadcast %cst_33 : f32 to vector<2x32xf32>
    %164 = arith.mulf %163, %162 : vector<2x32xf32>
    %cst_34 = arith.constant 1.000000e+00 : f32
    %165 = vector.broadcast %cst_34 : f32 to vector<2x32xf32>
    %166 = arith.subf %164, %165 : vector<2x32xf32>
    %167 = vector.extract_strided_slice %159 {offsets = [0, 96], sizes = [2, 32], strides = [1, 1]} : vector<2x128xf32> to vector<2x32xf32>
    %168 = arith.mulf %161, %149 : vector<2x32xf32>
    %169 = arith.mulf %160, %166 : vector<2x32xf32>
    %170 = arith.addf %168, %169 : vector<2x32xf32>
    %171 = math.tanh %170 : vector<2x32xf32>
    %172 = arith.mulf %167, %171 : vector<2x32xf32>
    %173 = vector.extract_strided_slice %23 {offsets = [14, 0], sizes = [2, 128], strides = [1, 1]} : vector<16x128xf32> to vector<2x128xf32>
    %cst_35 = arith.constant dense<0.000000e+00> : vector<2x128xf32>
    %174 = tpu.matmul %172, %19, %cst_35 {dimension_numbers = #tpu.dot_dimension_numbers<[1], [0], [0], [1], [0, 0, 1, 1], [], []>} : vector<2x32xf32>, vector<32x128xf32>, vector<2x128xf32> -> vector<2x128xf32>
    %175 = arith.addf %173, %174 : vector<2x128xf32>
    %176 = arith.negf %175 : vector<2x128xf32>
    %177 = math.exp %176 : vector<2x128xf32>
    %cst_36 = arith.constant 1.000000e+00 : f32
    %178 = vector.broadcast %cst_36 : f32 to vector<2x128xf32>
    %179 = arith.addf %178, %177 : vector<2x128xf32>
    %180 = arith.divf %178, %179 : vector<2x128xf32>
    %181 = vector.extract_strided_slice %180 {offsets = [0, 0], sizes = [2, 32], strides = [1, 1]} : vector<2x128xf32> to vector<2x32xf32>
    %182 = vector.extract_strided_slice %180 {offsets = [0, 32], sizes = [2, 32], strides = [1, 1]} : vector<2x128xf32> to vector<2x32xf32>
    %183 = vector.extract_strided_slice %180 {offsets = [0, 64], sizes = [2, 32], strides = [1, 1]} : vector<2x128xf32> to vector<2x32xf32>
    %cst_37 = arith.constant 2.000000e+00 : f32
    %184 = vector.broadcast %cst_37 : f32 to vector<2x32xf32>
    %185 = arith.mulf %184, %183 : vector<2x32xf32>
    %cst_38 = arith.constant 1.000000e+00 : f32
    %186 = vector.broadcast %cst_38 : f32 to vector<2x32xf32>
    %187 = arith.subf %185, %186 : vector<2x32xf32>
    %188 = vector.extract_strided_slice %180 {offsets = [0, 96], sizes = [2, 32], strides = [1, 1]} : vector<2x128xf32> to vector<2x32xf32>
    %189 = arith.mulf %182, %170 : vector<2x32xf32>
    %190 = arith.mulf %181, %187 : vector<2x32xf32>
    %191 = arith.addf %189, %190 : vector<2x32xf32>
    %192 = math.tanh %191 : vector<2x32xf32>
    %193 = arith.mulf %188, %192 : vector<2x32xf32>
    %194 = tpu.concatenate %46, %67, %88, %109, %130, %151, %172, %193 in 0 : vector<2x32xf32>, vector<2x32xf32>, vector<2x32xf32>, vector<2x32xf32>, vector<2x32xf32>, vector<2x32xf32>, vector<2x32xf32>, vector<2x32xf32> -> vector<16x32xf32>
    %c56 = arith.constant 56 : index
    %c0_39 = arith.constant 0 : index
    %195 = vector.load %arg1[%c56, %c0_39] : memref<440x128xf32, #tpu.memory_space<vmem>>, vector<32x128xf32>
    %c88 = arith.constant 88 : index
    %c0_40 = arith.constant 0 : index
    %196 = vector.load %arg1[%c88, %c0_40] : memref<440x128xf32, #tpu.memory_space<vmem>>, vector<32x128xf32>
    %c120 = arith.constant 120 : index
    %c0_41 = arith.constant 0 : index
    %197 = vector.load %arg1[%c120, %c0_41] : memref<440x128xf32, #tpu.memory_space<vmem>>, vector<1x128xf32>
    %cst_42 = arith.constant dense<0.000000e+00> : vector<16x128xf32>
    %198 = tpu.matmul %194, %195, %cst_42 {dimension_numbers = #tpu.dot_dimension_numbers<[1], [0], [0], [1], [0, 0, 1, 1], [], []>} : vector<16x32xf32>, vector<32x128xf32>, vector<16x128xf32> -> vector<16x128xf32>
    %199 = vector.broadcast %197 : vector<1x128xf32> to vector<16x128xf32>
    %200 = arith.addf %198, %199 : vector<16x128xf32>
    %cst_43 = arith.constant 0.000000e+00 : f32
    %201 = vector.broadcast %cst_43 : f32 to vector<2x32xf32>
    %cst_44 = arith.constant 1.000000e+00 : f32
    %202 = vector.broadcast %cst_44 : f32 to vector<2x32xf32>
    %203 = vector.extract_strided_slice %200 {offsets = [0, 0], sizes = [2, 128], strides = [1, 1]} : vector<16x128xf32> to vector<2x128xf32>
    %cst_45 = arith.constant dense<0.000000e+00> : vector<2x128xf32>
    %204 = tpu.matmul %201, %196, %cst_45 {dimension_numbers = #tpu.dot_dimension_numbers<[1], [0], [0], [1], [0, 0, 1, 1], [], []>} : vector<2x32xf32>, vector<32x128xf32>, vector<2x128xf32> -> vector<2x128xf32>
    %205 = arith.addf %203, %204 : vector<2x128xf32>
    %206 = arith.negf %205 : vector<2x128xf32>
    %207 = math.exp %206 : vector<2x128xf32>
    %cst_46 = arith.constant 1.000000e+00 : f32
    %208 = vector.broadcast %cst_46 : f32 to vector<2x128xf32>
    %209 = arith.addf %208, %207 : vector<2x128xf32>
    %210 = arith.divf %208, %209 : vector<2x128xf32>
    %211 = vector.extract_strided_slice %210 {offsets = [0, 0], sizes = [2, 32], strides = [1, 1]} : vector<2x128xf32> to vector<2x32xf32>
    %212 = vector.extract_strided_slice %210 {offsets = [0, 32], sizes = [2, 32], strides = [1, 1]} : vector<2x128xf32> to vector<2x32xf32>
    %213 = vector.extract_strided_slice %210 {offsets = [0, 64], sizes = [2, 32], strides = [1, 1]} : vector<2x128xf32> to vector<2x32xf32>
    %cst_47 = arith.constant 2.000000e+00 : f32
    %214 = vector.broadcast %cst_47 : f32 to vector<2x32xf32>
    %215 = arith.mulf %214, %213 : vector<2x32xf32>
    %cst_48 = arith.constant 1.000000e+00 : f32
    %216 = vector.broadcast %cst_48 : f32 to vector<2x32xf32>
    %217 = arith.subf %215, %216 : vector<2x32xf32>
    %218 = vector.extract_strided_slice %210 {offsets = [0, 96], sizes = [2, 32], strides = [1, 1]} : vector<2x128xf32> to vector<2x32xf32>
    %219 = arith.mulf %212, %202 : vector<2x32xf32>
    %220 = arith.mulf %211, %217 : vector<2x32xf32>
    %221 = arith.addf %219, %220 : vector<2x32xf32>
    %222 = math.tanh %221 : vector<2x32xf32>
    %223 = arith.mulf %218, %222 : vector<2x32xf32>
    %224 = vector.extract_strided_slice %200 {offsets = [2, 0], sizes = [2, 128], strides = [1, 1]} : vector<16x128xf32> to vector<2x128xf32>
    %cst_49 = arith.constant dense<0.000000e+00> : vector<2x128xf32>
    %225 = tpu.matmul %223, %196, %cst_49 {dimension_numbers = #tpu.dot_dimension_numbers<[1], [0], [0], [1], [0, 0, 1, 1], [], []>} : vector<2x32xf32>, vector<32x128xf32>, vector<2x128xf32> -> vector<2x128xf32>
    %226 = arith.addf %224, %225 : vector<2x128xf32>
    %227 = arith.negf %226 : vector<2x128xf32>
    %228 = math.exp %227 : vector<2x128xf32>
    %cst_50 = arith.constant 1.000000e+00 : f32
    %229 = vector.broadcast %cst_50 : f32 to vector<2x128xf32>
    %230 = arith.addf %229, %228 : vector<2x128xf32>
    %231 = arith.divf %229, %230 : vector<2x128xf32>
    %232 = vector.extract_strided_slice %231 {offsets = [0, 0], sizes = [2, 32], strides = [1, 1]} : vector<2x128xf32> to vector<2x32xf32>
    %233 = vector.extract_strided_slice %231 {offsets = [0, 32], sizes = [2, 32], strides = [1, 1]} : vector<2x128xf32> to vector<2x32xf32>
    %234 = vector.extract_strided_slice %231 {offsets = [0, 64], sizes = [2, 32], strides = [1, 1]} : vector<2x128xf32> to vector<2x32xf32>
    %cst_51 = arith.constant 2.000000e+00 : f32
    %235 = vector.broadcast %cst_51 : f32 to vector<2x32xf32>
    %236 = arith.mulf %235, %234 : vector<2x32xf32>
    %cst_52 = arith.constant 1.000000e+00 : f32
    %237 = vector.broadcast %cst_52 : f32 to vector<2x32xf32>
    %238 = arith.subf %236, %237 : vector<2x32xf32>
    %239 = vector.extract_strided_slice %231 {offsets = [0, 96], sizes = [2, 32], strides = [1, 1]} : vector<2x128xf32> to vector<2x32xf32>
    %240 = arith.mulf %233, %221 : vector<2x32xf32>
    %241 = arith.mulf %232, %238 : vector<2x32xf32>
    %242 = arith.addf %240, %241 : vector<2x32xf32>
    %243 = math.tanh %242 : vector<2x32xf32>
    %244 = arith.mulf %239, %243 : vector<2x32xf32>
    %245 = vector.extract_strided_slice %200 {offsets = [4, 0], sizes = [2, 128], strides = [1, 1]} : vector<16x128xf32> to vector<2x128xf32>
    %cst_53 = arith.constant dense<0.000000e+00> : vector<2x128xf32>
    %246 = tpu.matmul %244, %196, %cst_53 {dimension_numbers = #tpu.dot_dimension_numbers<[1], [0], [0], [1], [0, 0, 1, 1], [], []>} : vector<2x32xf32>, vector<32x128xf32>, vector<2x128xf32> -> vector<2x128xf32>
    %247 = arith.addf %245, %246 : vector<2x128xf32>
    %248 = arith.negf %247 : vector<2x128xf32>
    %249 = math.exp %248 : vector<2x128xf32>
    %cst_54 = arith.constant 1.000000e+00 : f32
    %250 = vector.broadcast %cst_54 : f32 to vector<2x128xf32>
    %251 = arith.addf %250, %249 : vector<2x128xf32>
    %252 = arith.divf %250, %251 : vector<2x128xf32>
    %253 = vector.extract_strided_slice %252 {offsets = [0, 0], sizes = [2, 32], strides = [1, 1]} : vector<2x128xf32> to vector<2x32xf32>
    %254 = vector.extract_strided_slice %252 {offsets = [0, 32], sizes = [2, 32], strides = [1, 1]} : vector<2x128xf32> to vector<2x32xf32>
    %255 = vector.extract_strided_slice %252 {offsets = [0, 64], sizes = [2, 32], strides = [1, 1]} : vector<2x128xf32> to vector<2x32xf32>
    %cst_55 = arith.constant 2.000000e+00 : f32
    %256 = vector.broadcast %cst_55 : f32 to vector<2x32xf32>
    %257 = arith.mulf %256, %255 : vector<2x32xf32>
    %cst_56 = arith.constant 1.000000e+00 : f32
    %258 = vector.broadcast %cst_56 : f32 to vector<2x32xf32>
    %259 = arith.subf %257, %258 : vector<2x32xf32>
    %260 = vector.extract_strided_slice %252 {offsets = [0, 96], sizes = [2, 32], strides = [1, 1]} : vector<2x128xf32> to vector<2x32xf32>
    %261 = arith.mulf %254, %242 : vector<2x32xf32>
    %262 = arith.mulf %253, %259 : vector<2x32xf32>
    %263 = arith.addf %261, %262 : vector<2x32xf32>
    %264 = math.tanh %263 : vector<2x32xf32>
    %265 = arith.mulf %260, %264 : vector<2x32xf32>
    %266 = vector.extract_strided_slice %200 {offsets = [6, 0], sizes = [2, 128], strides = [1, 1]} : vector<16x128xf32> to vector<2x128xf32>
    %cst_57 = arith.constant dense<0.000000e+00> : vector<2x128xf32>
    %267 = tpu.matmul %265, %196, %cst_57 {dimension_numbers = #tpu.dot_dimension_numbers<[1], [0], [0], [1], [0, 0, 1, 1], [], []>} : vector<2x32xf32>, vector<32x128xf32>, vector<2x128xf32> -> vector<2x128xf32>
    %268 = arith.addf %266, %267 : vector<2x128xf32>
    %269 = arith.negf %268 : vector<2x128xf32>
    %270 = math.exp %269 : vector<2x128xf32>
    %cst_58 = arith.constant 1.000000e+00 : f32
    %271 = vector.broadcast %cst_58 : f32 to vector<2x128xf32>
    %272 = arith.addf %271, %270 : vector<2x128xf32>
    %273 = arith.divf %271, %272 : vector<2x128xf32>
    %274 = vector.extract_strided_slice %273 {offsets = [0, 0], sizes = [2, 32], strides = [1, 1]} : vector<2x128xf32> to vector<2x32xf32>
    %275 = vector.extract_strided_slice %273 {offsets = [0, 32], sizes = [2, 32], strides = [1, 1]} : vector<2x128xf32> to vector<2x32xf32>
    %276 = vector.extract_strided_slice %273 {offsets = [0, 64], sizes = [2, 32], strides = [1, 1]} : vector<2x128xf32> to vector<2x32xf32>
    %cst_59 = arith.constant 2.000000e+00 : f32
    %277 = vector.broadcast %cst_59 : f32 to vector<2x32xf32>
    %278 = arith.mulf %277, %276 : vector<2x32xf32>
    %cst_60 = arith.constant 1.000000e+00 : f32
    %279 = vector.broadcast %cst_60 : f32 to vector<2x32xf32>
    %280 = arith.subf %278, %279 : vector<2x32xf32>
    %281 = vector.extract_strided_slice %273 {offsets = [0, 96], sizes = [2, 32], strides = [1, 1]} : vector<2x128xf32> to vector<2x32xf32>
    %282 = arith.mulf %275, %263 : vector<2x32xf32>
    %283 = arith.mulf %274, %280 : vector<2x32xf32>
    %284 = arith.addf %282, %283 : vector<2x32xf32>
    %285 = math.tanh %284 : vector<2x32xf32>
    %286 = arith.mulf %281, %285 : vector<2x32xf32>
    %287 = vector.extract_strided_slice %200 {offsets = [8, 0], sizes = [2, 128], strides = [1, 1]} : vector<16x128xf32> to vector<2x128xf32>
    %cst_61 = arith.constant dense<0.000000e+00> : vector<2x128xf32>
    %288 = tpu.matmul %286, %196, %cst_61 {dimension_numbers = #tpu.dot_dimension_numbers<[1], [0], [0], [1], [0, 0, 1, 1], [], []>} : vector<2x32xf32>, vector<32x128xf32>, vector<2x128xf32> -> vector<2x128xf32>
    %289 = arith.addf %287, %288 : vector<2x128xf32>
    %290 = arith.negf %289 : vector<2x128xf32>
    %291 = math.exp %290 : vector<2x128xf32>
    %cst_62 = arith.constant 1.000000e+00 : f32
    %292 = vector.broadcast %cst_62 : f32 to vector<2x128xf32>
    %293 = arith.addf %292, %291 : vector<2x128xf32>
    %294 = arith.divf %292, %293 : vector<2x128xf32>
    %295 = vector.extract_strided_slice %294 {offsets = [0, 0], sizes = [2, 32], strides = [1, 1]} : vector<2x128xf32> to vector<2x32xf32>
    %296 = vector.extract_strided_slice %294 {offsets = [0, 32], sizes = [2, 32], strides = [1, 1]} : vector<2x128xf32> to vector<2x32xf32>
    %297 = vector.extract_strided_slice %294 {offsets = [0, 64], sizes = [2, 32], strides = [1, 1]} : vector<2x128xf32> to vector<2x32xf32>
    %cst_63 = arith.constant 2.000000e+00 : f32
    %298 = vector.broadcast %cst_63 : f32 to vector<2x32xf32>
    %299 = arith.mulf %298, %297 : vector<2x32xf32>
    %cst_64 = arith.constant 1.000000e+00 : f32
    %300 = vector.broadcast %cst_64 : f32 to vector<2x32xf32>
    %301 = arith.subf %299, %300 : vector<2x32xf32>
    %302 = vector.extract_strided_slice %294 {offsets = [0, 96], sizes = [2, 32], strides = [1, 1]} : vector<2x128xf32> to vector<2x32xf32>
    %303 = arith.mulf %296, %284 : vector<2x32xf32>
    %304 = arith.mulf %295, %301 : vector<2x32xf32>
    %305 = arith.addf %303, %304 : vector<2x32xf32>
    %306 = math.tanh %305 : vector<2x32xf32>
    %307 = arith.mulf %302, %306 : vector<2x32xf32>
    %308 = vector.extract_strided_slice %200 {offsets = [10, 0], sizes = [2, 128], strides = [1, 1]} : vector<16x128xf32> to vector<2x128xf32>
    %cst_65 = arith.constant dense<0.000000e+00> : vector<2x128xf32>
    %309 = tpu.matmul %307, %196, %cst_65 {dimension_numbers = #tpu.dot_dimension_numbers<[1], [0], [0], [1], [0, 0, 1, 1], [], []>} : vector<2x32xf32>, vector<32x128xf32>, vector<2x128xf32> -> vector<2x128xf32>
    %310 = arith.addf %308, %309 : vector<2x128xf32>
    %311 = arith.negf %310 : vector<2x128xf32>
    %312 = math.exp %311 : vector<2x128xf32>
    %cst_66 = arith.constant 1.000000e+00 : f32
    %313 = vector.broadcast %cst_66 : f32 to vector<2x128xf32>
    %314 = arith.addf %313, %312 : vector<2x128xf32>
    %315 = arith.divf %313, %314 : vector<2x128xf32>
    %316 = vector.extract_strided_slice %315 {offsets = [0, 0], sizes = [2, 32], strides = [1, 1]} : vector<2x128xf32> to vector<2x32xf32>
    %317 = vector.extract_strided_slice %315 {offsets = [0, 32], sizes = [2, 32], strides = [1, 1]} : vector<2x128xf32> to vector<2x32xf32>
    %318 = vector.extract_strided_slice %315 {offsets = [0, 64], sizes = [2, 32], strides = [1, 1]} : vector<2x128xf32> to vector<2x32xf32>
    %cst_67 = arith.constant 2.000000e+00 : f32
    %319 = vector.broadcast %cst_67 : f32 to vector<2x32xf32>
    %320 = arith.mulf %319, %318 : vector<2x32xf32>
    %cst_68 = arith.constant 1.000000e+00 : f32
    %321 = vector.broadcast %cst_68 : f32 to vector<2x32xf32>
    %322 = arith.subf %320, %321 : vector<2x32xf32>
    %323 = vector.extract_strided_slice %315 {offsets = [0, 96], sizes = [2, 32], strides = [1, 1]} : vector<2x128xf32> to vector<2x32xf32>
    %324 = arith.mulf %317, %305 : vector<2x32xf32>
    %325 = arith.mulf %316, %322 : vector<2x32xf32>
    %326 = arith.addf %324, %325 : vector<2x32xf32>
    %327 = math.tanh %326 : vector<2x32xf32>
    %328 = arith.mulf %323, %327 : vector<2x32xf32>
    %329 = vector.extract_strided_slice %200 {offsets = [12, 0], sizes = [2, 128], strides = [1, 1]} : vector<16x128xf32> to vector<2x128xf32>
    %cst_69 = arith.constant dense<0.000000e+00> : vector<2x128xf32>
    %330 = tpu.matmul %328, %196, %cst_69 {dimension_numbers = #tpu.dot_dimension_numbers<[1], [0], [0], [1], [0, 0, 1, 1], [], []>} : vector<2x32xf32>, vector<32x128xf32>, vector<2x128xf32> -> vector<2x128xf32>
    %331 = arith.addf %329, %330 : vector<2x128xf32>
    %332 = arith.negf %331 : vector<2x128xf32>
    %333 = math.exp %332 : vector<2x128xf32>
    %cst_70 = arith.constant 1.000000e+00 : f32
    %334 = vector.broadcast %cst_70 : f32 to vector<2x128xf32>
    %335 = arith.addf %334, %333 : vector<2x128xf32>
    %336 = arith.divf %334, %335 : vector<2x128xf32>
    %337 = vector.extract_strided_slice %336 {offsets = [0, 0], sizes = [2, 32], strides = [1, 1]} : vector<2x128xf32> to vector<2x32xf32>
    %338 = vector.extract_strided_slice %336 {offsets = [0, 32], sizes = [2, 32], strides = [1, 1]} : vector<2x128xf32> to vector<2x32xf32>
    %339 = vector.extract_strided_slice %336 {offsets = [0, 64], sizes = [2, 32], strides = [1, 1]} : vector<2x128xf32> to vector<2x32xf32>
    %cst_71 = arith.constant 2.000000e+00 : f32
    %340 = vector.broadcast %cst_71 : f32 to vector<2x32xf32>
    %341 = arith.mulf %340, %339 : vector<2x32xf32>
    %cst_72 = arith.constant 1.000000e+00 : f32
    %342 = vector.broadcast %cst_72 : f32 to vector<2x32xf32>
    %343 = arith.subf %341, %342 : vector<2x32xf32>
    %344 = vector.extract_strided_slice %336 {offsets = [0, 96], sizes = [2, 32], strides = [1, 1]} : vector<2x128xf32> to vector<2x32xf32>
    %345 = arith.mulf %338, %326 : vector<2x32xf32>
    %346 = arith.mulf %337, %343 : vector<2x32xf32>
    %347 = arith.addf %345, %346 : vector<2x32xf32>
    %348 = math.tanh %347 : vector<2x32xf32>
    %349 = arith.mulf %344, %348 : vector<2x32xf32>
    %350 = vector.extract_strided_slice %200 {offsets = [14, 0], sizes = [2, 128], strides = [1, 1]} : vector<16x128xf32> to vector<2x128xf32>
    %cst_73 = arith.constant dense<0.000000e+00> : vector<2x128xf32>
    %351 = tpu.matmul %349, %196, %cst_73 {dimension_numbers = #tpu.dot_dimension_numbers<[1], [0], [0], [1], [0, 0, 1, 1], [], []>} : vector<2x32xf32>, vector<32x128xf32>, vector<2x128xf32> -> vector<2x128xf32>
    %352 = arith.addf %350, %351 : vector<2x128xf32>
    %353 = arith.negf %352 : vector<2x128xf32>
    %354 = math.exp %353 : vector<2x128xf32>
    %cst_74 = arith.constant 1.000000e+00 : f32
    %355 = vector.broadcast %cst_74 : f32 to vector<2x128xf32>
    %356 = arith.addf %355, %354 : vector<2x128xf32>
    %357 = arith.divf %355, %356 : vector<2x128xf32>
    %358 = vector.extract_strided_slice %357 {offsets = [0, 0], sizes = [2, 32], strides = [1, 1]} : vector<2x128xf32> to vector<2x32xf32>
    %359 = vector.extract_strided_slice %357 {offsets = [0, 32], sizes = [2, 32], strides = [1, 1]} : vector<2x128xf32> to vector<2x32xf32>
    %360 = vector.extract_strided_slice %357 {offsets = [0, 64], sizes = [2, 32], strides = [1, 1]} : vector<2x128xf32> to vector<2x32xf32>
    %cst_75 = arith.constant 2.000000e+00 : f32
    %361 = vector.broadcast %cst_75 : f32 to vector<2x32xf32>
    %362 = arith.mulf %361, %360 : vector<2x32xf32>
    %cst_76 = arith.constant 1.000000e+00 : f32
    %363 = vector.broadcast %cst_76 : f32 to vector<2x32xf32>
    %364 = arith.subf %362, %363 : vector<2x32xf32>
    %365 = vector.extract_strided_slice %357 {offsets = [0, 96], sizes = [2, 32], strides = [1, 1]} : vector<2x128xf32> to vector<2x32xf32>
    %366 = arith.mulf %359, %347 : vector<2x32xf32>
    %367 = arith.mulf %358, %364 : vector<2x32xf32>
    %368 = arith.addf %366, %367 : vector<2x32xf32>
    %369 = math.tanh %368 : vector<2x32xf32>
    %370 = arith.mulf %365, %369 : vector<2x32xf32>
    %371 = tpu.concatenate %223, %244, %265, %286, %307, %328, %349, %370 in 0 : vector<2x32xf32>, vector<2x32xf32>, vector<2x32xf32>, vector<2x32xf32>, vector<2x32xf32>, vector<2x32xf32>, vector<2x32xf32>, vector<2x32xf32> -> vector<16x32xf32>
    %c272 = arith.constant 272 : index
    %c0_77 = arith.constant 0 : index
    %372 = vector.load %arg1[%c272, %c0_77] : memref<440x128xf32, #tpu.memory_space<vmem>>, vector<32x24xf32>
    %c304 = arith.constant 304 : index
    %c0_78 = arith.constant 0 : index
    %373 = vector.load %arg1[%c304, %c0_78] : memref<440x128xf32, #tpu.memory_space<vmem>>, vector<1x24xf32>
    %cst_79 = arith.constant dense<0.000000e+00> : vector<16x24xf32>
    %374 = tpu.matmul %371, %372, %cst_79 {dimension_numbers = #tpu.dot_dimension_numbers<[1], [0], [0], [1], [0, 0, 1, 1], [], []>} : vector<16x32xf32>, vector<32x24xf32>, vector<16x24xf32> -> vector<16x24xf32>
    %375 = vector.broadcast %373 : vector<1x24xf32> to vector<16x24xf32>
    %376 = arith.addf %374, %375 : vector<16x24xf32>
    %377 = math.tanh %376 : vector<16x24xf32>
    %c312 = arith.constant 312 : index
    %c0_80 = arith.constant 0 : index
    %378 = vector.load %arg1[%c312, %c0_80] : memref<440x128xf32, #tpu.memory_space<vmem>>, vector<24x10xf32>
    %c336 = arith.constant 336 : index
    %c0_81 = arith.constant 0 : index
    %379 = vector.load %arg1[%c336, %c0_81] : memref<440x128xf32, #tpu.memory_space<vmem>>, vector<1x10xf32>
    %cst_82 = arith.constant dense<0.000000e+00> : vector<16x10xf32>
    %380 = tpu.matmul %377, %378, %cst_82 {dimension_numbers = #tpu.dot_dimension_numbers<[1], [0], [0], [1], [0, 0, 1, 1], [], []>} : vector<16x24xf32>, vector<24x10xf32>, vector<16x10xf32> -> vector<16x10xf32>
    %381 = vector.broadcast %379 : vector<1x10xf32> to vector<16x10xf32>
    %382 = arith.addf %380, %381 : vector<16x10xf32>
    %c344 = arith.constant 344 : index
    %c0_83 = arith.constant 0 : index
    %383 = vector.load %arg1[%c344, %c0_83] : memref<440x128xf32, #tpu.memory_space<vmem>>, vector<10x24xf32>
    %c360 = arith.constant 360 : index
    %c0_84 = arith.constant 0 : index
    %384 = vector.load %arg1[%c360, %c0_84] : memref<440x128xf32, #tpu.memory_space<vmem>>, vector<1x24xf32>
    %cst_85 = arith.constant dense<0.000000e+00> : vector<16x24xf32>
    %385 = tpu.matmul %382, %383, %cst_85 {dimension_numbers = #tpu.dot_dimension_numbers<[1], [0], [0], [1], [0, 0, 1, 1], [], []>} : vector<16x10xf32>, vector<10x24xf32>, vector<16x24xf32> -> vector<16x24xf32>
    %386 = vector.broadcast %384 : vector<1x24xf32> to vector<16x24xf32>
    %387 = arith.addf %385, %386 : vector<16x24xf32>
    %388 = math.tanh %387 : vector<16x24xf32>
    %c368 = arith.constant 368 : index
    %c0_86 = arith.constant 0 : index
    %389 = vector.load %arg1[%c368, %c0_86] : memref<440x128xf32, #tpu.memory_space<vmem>>, vector<24x32xf32>
    %c392 = arith.constant 392 : index
    %c0_87 = arith.constant 0 : index
    %390 = vector.load %arg1[%c392, %c0_87] : memref<440x128xf32, #tpu.memory_space<vmem>>, vector<1x32xf32>
    %cst_88 = arith.constant dense<0.000000e+00> : vector<16x32xf32>
    %391 = tpu.matmul %388, %389, %cst_88 {dimension_numbers = #tpu.dot_dimension_numbers<[1], [0], [0], [1], [0, 0, 1, 1], [], []>} : vector<16x24xf32>, vector<24x32xf32>, vector<16x32xf32> -> vector<16x32xf32>
    %392 = vector.broadcast %390 : vector<1x32xf32> to vector<16x32xf32>
    %393 = arith.addf %391, %392 : vector<16x32xf32>
    %c128 = arith.constant 128 : index
    %c0_89 = arith.constant 0 : index
    %394 = vector.load %arg1[%c128, %c0_89] : memref<440x128xf32, #tpu.memory_space<vmem>>, vector<32x128xf32>
    %c160 = arith.constant 160 : index
    %c0_90 = arith.constant 0 : index
    %395 = vector.load %arg1[%c160, %c0_90] : memref<440x128xf32, #tpu.memory_space<vmem>>, vector<32x128xf32>
    %c192 = arith.constant 192 : index
    %c0_91 = arith.constant 0 : index
    %396 = vector.load %arg1[%c192, %c0_91] : memref<440x128xf32, #tpu.memory_space<vmem>>, vector<1x128xf32>
    %cst_92 = arith.constant dense<0.000000e+00> : vector<16x128xf32>
    %397 = tpu.matmul %393, %394, %cst_92 {dimension_numbers = #tpu.dot_dimension_numbers<[1], [0], [0], [1], [0, 0, 1, 1], [], []>} : vector<16x32xf32>, vector<32x128xf32>, vector<16x128xf32> -> vector<16x128xf32>
    %398 = vector.broadcast %396 : vector<1x128xf32> to vector<16x128xf32>
    %399 = arith.addf %397, %398 : vector<16x128xf32>
    %cst_93 = arith.constant 0.000000e+00 : f32
    %400 = vector.broadcast %cst_93 : f32 to vector<2x32xf32>
    %cst_94 = arith.constant 1.000000e+00 : f32
    %401 = vector.broadcast %cst_94 : f32 to vector<2x32xf32>
    %402 = vector.extract_strided_slice %399 {offsets = [0, 0], sizes = [2, 128], strides = [1, 1]} : vector<16x128xf32> to vector<2x128xf32>
    %cst_95 = arith.constant dense<0.000000e+00> : vector<2x128xf32>
    %403 = tpu.matmul %400, %395, %cst_95 {dimension_numbers = #tpu.dot_dimension_numbers<[1], [0], [0], [1], [0, 0, 1, 1], [], []>} : vector<2x32xf32>, vector<32x128xf32>, vector<2x128xf32> -> vector<2x128xf32>
    %404 = arith.addf %402, %403 : vector<2x128xf32>
    %405 = arith.negf %404 : vector<2x128xf32>
    %406 = math.exp %405 : vector<2x128xf32>
    %cst_96 = arith.constant 1.000000e+00 : f32
    %407 = vector.broadcast %cst_96 : f32 to vector<2x128xf32>
    %408 = arith.addf %407, %406 : vector<2x128xf32>
    %409 = arith.divf %407, %408 : vector<2x128xf32>
    %410 = vector.extract_strided_slice %409 {offsets = [0, 0], sizes = [2, 32], strides = [1, 1]} : vector<2x128xf32> to vector<2x32xf32>
    %411 = vector.extract_strided_slice %409 {offsets = [0, 32], sizes = [2, 32], strides = [1, 1]} : vector<2x128xf32> to vector<2x32xf32>
    %412 = vector.extract_strided_slice %409 {offsets = [0, 64], sizes = [2, 32], strides = [1, 1]} : vector<2x128xf32> to vector<2x32xf32>
    %cst_97 = arith.constant 2.000000e+00 : f32
    %413 = vector.broadcast %cst_97 : f32 to vector<2x32xf32>
    %414 = arith.mulf %413, %412 : vector<2x32xf32>
    %cst_98 = arith.constant 1.000000e+00 : f32
    %415 = vector.broadcast %cst_98 : f32 to vector<2x32xf32>
    %416 = arith.subf %414, %415 : vector<2x32xf32>
    %417 = vector.extract_strided_slice %409 {offsets = [0, 96], sizes = [2, 32], strides = [1, 1]} : vector<2x128xf32> to vector<2x32xf32>
    %418 = arith.mulf %411, %401 : vector<2x32xf32>
    %419 = arith.mulf %410, %416 : vector<2x32xf32>
    %420 = arith.addf %418, %419 : vector<2x32xf32>
    %421 = math.tanh %420 : vector<2x32xf32>
    %422 = arith.mulf %417, %421 : vector<2x32xf32>
    %423 = vector.extract_strided_slice %399 {offsets = [2, 0], sizes = [2, 128], strides = [1, 1]} : vector<16x128xf32> to vector<2x128xf32>
    %cst_99 = arith.constant dense<0.000000e+00> : vector<2x128xf32>
    %424 = tpu.matmul %422, %395, %cst_99 {dimension_numbers = #tpu.dot_dimension_numbers<[1], [0], [0], [1], [0, 0, 1, 1], [], []>} : vector<2x32xf32>, vector<32x128xf32>, vector<2x128xf32> -> vector<2x128xf32>
    %425 = arith.addf %423, %424 : vector<2x128xf32>
    %426 = arith.negf %425 : vector<2x128xf32>
    %427 = math.exp %426 : vector<2x128xf32>
    %cst_100 = arith.constant 1.000000e+00 : f32
    %428 = vector.broadcast %cst_100 : f32 to vector<2x128xf32>
    %429 = arith.addf %428, %427 : vector<2x128xf32>
    %430 = arith.divf %428, %429 : vector<2x128xf32>
    %431 = vector.extract_strided_slice %430 {offsets = [0, 0], sizes = [2, 32], strides = [1, 1]} : vector<2x128xf32> to vector<2x32xf32>
    %432 = vector.extract_strided_slice %430 {offsets = [0, 32], sizes = [2, 32], strides = [1, 1]} : vector<2x128xf32> to vector<2x32xf32>
    %433 = vector.extract_strided_slice %430 {offsets = [0, 64], sizes = [2, 32], strides = [1, 1]} : vector<2x128xf32> to vector<2x32xf32>
    %cst_101 = arith.constant 2.000000e+00 : f32
    %434 = vector.broadcast %cst_101 : f32 to vector<2x32xf32>
    %435 = arith.mulf %434, %433 : vector<2x32xf32>
    %cst_102 = arith.constant 1.000000e+00 : f32
    %436 = vector.broadcast %cst_102 : f32 to vector<2x32xf32>
    %437 = arith.subf %435, %436 : vector<2x32xf32>
    %438 = vector.extract_strided_slice %430 {offsets = [0, 96], sizes = [2, 32], strides = [1, 1]} : vector<2x128xf32> to vector<2x32xf32>
    %439 = arith.mulf %432, %420 : vector<2x32xf32>
    %440 = arith.mulf %431, %437 : vector<2x32xf32>
    %441 = arith.addf %439, %440 : vector<2x32xf32>
    %442 = math.tanh %441 : vector<2x32xf32>
    %443 = arith.mulf %438, %442 : vector<2x32xf32>
    %444 = vector.extract_strided_slice %399 {offsets = [4, 0], sizes = [2, 128], strides = [1, 1]} : vector<16x128xf32> to vector<2x128xf32>
    %cst_103 = arith.constant dense<0.000000e+00> : vector<2x128xf32>
    %445 = tpu.matmul %443, %395, %cst_103 {dimension_numbers = #tpu.dot_dimension_numbers<[1], [0], [0], [1], [0, 0, 1, 1], [], []>} : vector<2x32xf32>, vector<32x128xf32>, vector<2x128xf32> -> vector<2x128xf32>
    %446 = arith.addf %444, %445 : vector<2x128xf32>
    %447 = arith.negf %446 : vector<2x128xf32>
    %448 = math.exp %447 : vector<2x128xf32>
    %cst_104 = arith.constant 1.000000e+00 : f32
    %449 = vector.broadcast %cst_104 : f32 to vector<2x128xf32>
    %450 = arith.addf %449, %448 : vector<2x128xf32>
    %451 = arith.divf %449, %450 : vector<2x128xf32>
    %452 = vector.extract_strided_slice %451 {offsets = [0, 0], sizes = [2, 32], strides = [1, 1]} : vector<2x128xf32> to vector<2x32xf32>
    %453 = vector.extract_strided_slice %451 {offsets = [0, 32], sizes = [2, 32], strides = [1, 1]} : vector<2x128xf32> to vector<2x32xf32>
    %454 = vector.extract_strided_slice %451 {offsets = [0, 64], sizes = [2, 32], strides = [1, 1]} : vector<2x128xf32> to vector<2x32xf32>
    %cst_105 = arith.constant 2.000000e+00 : f32
    %455 = vector.broadcast %cst_105 : f32 to vector<2x32xf32>
    %456 = arith.mulf %455, %454 : vector<2x32xf32>
    %cst_106 = arith.constant 1.000000e+00 : f32
    %457 = vector.broadcast %cst_106 : f32 to vector<2x32xf32>
    %458 = arith.subf %456, %457 : vector<2x32xf32>
    %459 = vector.extract_strided_slice %451 {offsets = [0, 96], sizes = [2, 32], strides = [1, 1]} : vector<2x128xf32> to vector<2x32xf32>
    %460 = arith.mulf %453, %441 : vector<2x32xf32>
    %461 = arith.mulf %452, %458 : vector<2x32xf32>
    %462 = arith.addf %460, %461 : vector<2x32xf32>
    %463 = math.tanh %462 : vector<2x32xf32>
    %464 = arith.mulf %459, %463 : vector<2x32xf32>
    %465 = vector.extract_strided_slice %399 {offsets = [6, 0], sizes = [2, 128], strides = [1, 1]} : vector<16x128xf32> to vector<2x128xf32>
    %cst_107 = arith.constant dense<0.000000e+00> : vector<2x128xf32>
    %466 = tpu.matmul %464, %395, %cst_107 {dimension_numbers = #tpu.dot_dimension_numbers<[1], [0], [0], [1], [0, 0, 1, 1], [], []>} : vector<2x32xf32>, vector<32x128xf32>, vector<2x128xf32> -> vector<2x128xf32>
    %467 = arith.addf %465, %466 : vector<2x128xf32>
    %468 = arith.negf %467 : vector<2x128xf32>
    %469 = math.exp %468 : vector<2x128xf32>
    %cst_108 = arith.constant 1.000000e+00 : f32
    %470 = vector.broadcast %cst_108 : f32 to vector<2x128xf32>
    %471 = arith.addf %470, %469 : vector<2x128xf32>
    %472 = arith.divf %470, %471 : vector<2x128xf32>
    %473 = vector.extract_strided_slice %472 {offsets = [0, 0], sizes = [2, 32], strides = [1, 1]} : vector<2x128xf32> to vector<2x32xf32>
    %474 = vector.extract_strided_slice %472 {offsets = [0, 32], sizes = [2, 32], strides = [1, 1]} : vector<2x128xf32> to vector<2x32xf32>
    %475 = vector.extract_strided_slice %472 {offsets = [0, 64], sizes = [2, 32], strides = [1, 1]} : vector<2x128xf32> to vector<2x32xf32>
    %cst_109 = arith.constant 2.000000e+00 : f32
    %476 = vector.broadcast %cst_109 : f32 to vector<2x32xf32>
    %477 = arith.mulf %476, %475 : vector<2x32xf32>
    %cst_110 = arith.constant 1.000000e+00 : f32
    %478 = vector.broadcast %cst_110 : f32 to vector<2x32xf32>
    %479 = arith.subf %477, %478 : vector<2x32xf32>
    %480 = vector.extract_strided_slice %472 {offsets = [0, 96], sizes = [2, 32], strides = [1, 1]} : vector<2x128xf32> to vector<2x32xf32>
    %481 = arith.mulf %474, %462 : vector<2x32xf32>
    %482 = arith.mulf %473, %479 : vector<2x32xf32>
    %483 = arith.addf %481, %482 : vector<2x32xf32>
    %484 = math.tanh %483 : vector<2x32xf32>
    %485 = arith.mulf %480, %484 : vector<2x32xf32>
    %486 = vector.extract_strided_slice %399 {offsets = [8, 0], sizes = [2, 128], strides = [1, 1]} : vector<16x128xf32> to vector<2x128xf32>
    %cst_111 = arith.constant dense<0.000000e+00> : vector<2x128xf32>
    %487 = tpu.matmul %485, %395, %cst_111 {dimension_numbers = #tpu.dot_dimension_numbers<[1], [0], [0], [1], [0, 0, 1, 1], [], []>} : vector<2x32xf32>, vector<32x128xf32>, vector<2x128xf32> -> vector<2x128xf32>
    %488 = arith.addf %486, %487 : vector<2x128xf32>
    %489 = arith.negf %488 : vector<2x128xf32>
    %490 = math.exp %489 : vector<2x128xf32>
    %cst_112 = arith.constant 1.000000e+00 : f32
    %491 = vector.broadcast %cst_112 : f32 to vector<2x128xf32>
    %492 = arith.addf %491, %490 : vector<2x128xf32>
    %493 = arith.divf %491, %492 : vector<2x128xf32>
    %494 = vector.extract_strided_slice %493 {offsets = [0, 0], sizes = [2, 32], strides = [1, 1]} : vector<2x128xf32> to vector<2x32xf32>
    %495 = vector.extract_strided_slice %493 {offsets = [0, 32], sizes = [2, 32], strides = [1, 1]} : vector<2x128xf32> to vector<2x32xf32>
    %496 = vector.extract_strided_slice %493 {offsets = [0, 64], sizes = [2, 32], strides = [1, 1]} : vector<2x128xf32> to vector<2x32xf32>
    %cst_113 = arith.constant 2.000000e+00 : f32
    %497 = vector.broadcast %cst_113 : f32 to vector<2x32xf32>
    %498 = arith.mulf %497, %496 : vector<2x32xf32>
    %cst_114 = arith.constant 1.000000e+00 : f32
    %499 = vector.broadcast %cst_114 : f32 to vector<2x32xf32>
    %500 = arith.subf %498, %499 : vector<2x32xf32>
    %501 = vector.extract_strided_slice %493 {offsets = [0, 96], sizes = [2, 32], strides = [1, 1]} : vector<2x128xf32> to vector<2x32xf32>
    %502 = arith.mulf %495, %483 : vector<2x32xf32>
    %503 = arith.mulf %494, %500 : vector<2x32xf32>
    %504 = arith.addf %502, %503 : vector<2x32xf32>
    %505 = math.tanh %504 : vector<2x32xf32>
    %506 = arith.mulf %501, %505 : vector<2x32xf32>
    %507 = vector.extract_strided_slice %399 {offsets = [10, 0], sizes = [2, 128], strides = [1, 1]} : vector<16x128xf32> to vector<2x128xf32>
    %cst_115 = arith.constant dense<0.000000e+00> : vector<2x128xf32>
    %508 = tpu.matmul %506, %395, %cst_115 {dimension_numbers = #tpu.dot_dimension_numbers<[1], [0], [0], [1], [0, 0, 1, 1], [], []>} : vector<2x32xf32>, vector<32x128xf32>, vector<2x128xf32> -> vector<2x128xf32>
    %509 = arith.addf %507, %508 : vector<2x128xf32>
    %510 = arith.negf %509 : vector<2x128xf32>
    %511 = math.exp %510 : vector<2x128xf32>
    %cst_116 = arith.constant 1.000000e+00 : f32
    %512 = vector.broadcast %cst_116 : f32 to vector<2x128xf32>
    %513 = arith.addf %512, %511 : vector<2x128xf32>
    %514 = arith.divf %512, %513 : vector<2x128xf32>
    %515 = vector.extract_strided_slice %514 {offsets = [0, 0], sizes = [2, 32], strides = [1, 1]} : vector<2x128xf32> to vector<2x32xf32>
    %516 = vector.extract_strided_slice %514 {offsets = [0, 32], sizes = [2, 32], strides = [1, 1]} : vector<2x128xf32> to vector<2x32xf32>
    %517 = vector.extract_strided_slice %514 {offsets = [0, 64], sizes = [2, 32], strides = [1, 1]} : vector<2x128xf32> to vector<2x32xf32>
    %cst_117 = arith.constant 2.000000e+00 : f32
    %518 = vector.broadcast %cst_117 : f32 to vector<2x32xf32>
    %519 = arith.mulf %518, %517 : vector<2x32xf32>
    %cst_118 = arith.constant 1.000000e+00 : f32
    %520 = vector.broadcast %cst_118 : f32 to vector<2x32xf32>
    %521 = arith.subf %519, %520 : vector<2x32xf32>
    %522 = vector.extract_strided_slice %514 {offsets = [0, 96], sizes = [2, 32], strides = [1, 1]} : vector<2x128xf32> to vector<2x32xf32>
    %523 = arith.mulf %516, %504 : vector<2x32xf32>
    %524 = arith.mulf %515, %521 : vector<2x32xf32>
    %525 = arith.addf %523, %524 : vector<2x32xf32>
    %526 = math.tanh %525 : vector<2x32xf32>
    %527 = arith.mulf %522, %526 : vector<2x32xf32>
    %528 = vector.extract_strided_slice %399 {offsets = [12, 0], sizes = [2, 128], strides = [1, 1]} : vector<16x128xf32> to vector<2x128xf32>
    %cst_119 = arith.constant dense<0.000000e+00> : vector<2x128xf32>
    %529 = tpu.matmul %527, %395, %cst_119 {dimension_numbers = #tpu.dot_dimension_numbers<[1], [0], [0], [1], [0, 0, 1, 1], [], []>} : vector<2x32xf32>, vector<32x128xf32>, vector<2x128xf32> -> vector<2x128xf32>
    %530 = arith.addf %528, %529 : vector<2x128xf32>
    %531 = arith.negf %530 : vector<2x128xf32>
    %532 = math.exp %531 : vector<2x128xf32>
    %cst_120 = arith.constant 1.000000e+00 : f32
    %533 = vector.broadcast %cst_120 : f32 to vector<2x128xf32>
    %534 = arith.addf %533, %532 : vector<2x128xf32>
    %535 = arith.divf %533, %534 : vector<2x128xf32>
    %536 = vector.extract_strided_slice %535 {offsets = [0, 0], sizes = [2, 32], strides = [1, 1]} : vector<2x128xf32> to vector<2x32xf32>
    %537 = vector.extract_strided_slice %535 {offsets = [0, 32], sizes = [2, 32], strides = [1, 1]} : vector<2x128xf32> to vector<2x32xf32>
    %538 = vector.extract_strided_slice %535 {offsets = [0, 64], sizes = [2, 32], strides = [1, 1]} : vector<2x128xf32> to vector<2x32xf32>
    %cst_121 = arith.constant 2.000000e+00 : f32
    %539 = vector.broadcast %cst_121 : f32 to vector<2x32xf32>
    %540 = arith.mulf %539, %538 : vector<2x32xf32>
    %cst_122 = arith.constant 1.000000e+00 : f32
    %541 = vector.broadcast %cst_122 : f32 to vector<2x32xf32>
    %542 = arith.subf %540, %541 : vector<2x32xf32>
    %543 = vector.extract_strided_slice %535 {offsets = [0, 96], sizes = [2, 32], strides = [1, 1]} : vector<2x128xf32> to vector<2x32xf32>
    %544 = arith.mulf %537, %525 : vector<2x32xf32>
    %545 = arith.mulf %536, %542 : vector<2x32xf32>
    %546 = arith.addf %544, %545 : vector<2x32xf32>
    %547 = math.tanh %546 : vector<2x32xf32>
    %548 = arith.mulf %543, %547 : vector<2x32xf32>
    %549 = vector.extract_strided_slice %399 {offsets = [14, 0], sizes = [2, 128], strides = [1, 1]} : vector<16x128xf32> to vector<2x128xf32>
    %cst_123 = arith.constant dense<0.000000e+00> : vector<2x128xf32>
    %550 = tpu.matmul %548, %395, %cst_123 {dimension_numbers = #tpu.dot_dimension_numbers<[1], [0], [0], [1], [0, 0, 1, 1], [], []>} : vector<2x32xf32>, vector<32x128xf32>, vector<2x128xf32> -> vector<2x128xf32>
    %551 = arith.addf %549, %550 : vector<2x128xf32>
    %552 = arith.negf %551 : vector<2x128xf32>
    %553 = math.exp %552 : vector<2x128xf32>
    %cst_124 = arith.constant 1.000000e+00 : f32
    %554 = vector.broadcast %cst_124 : f32 to vector<2x128xf32>
    %555 = arith.addf %554, %553 : vector<2x128xf32>
    %556 = arith.divf %554, %555 : vector<2x128xf32>
    %557 = vector.extract_strided_slice %556 {offsets = [0, 0], sizes = [2, 32], strides = [1, 1]} : vector<2x128xf32> to vector<2x32xf32>
    %558 = vector.extract_strided_slice %556 {offsets = [0, 32], sizes = [2, 32], strides = [1, 1]} : vector<2x128xf32> to vector<2x32xf32>
    %559 = vector.extract_strided_slice %556 {offsets = [0, 64], sizes = [2, 32], strides = [1, 1]} : vector<2x128xf32> to vector<2x32xf32>
    %cst_125 = arith.constant 2.000000e+00 : f32
    %560 = vector.broadcast %cst_125 : f32 to vector<2x32xf32>
    %561 = arith.mulf %560, %559 : vector<2x32xf32>
    %cst_126 = arith.constant 1.000000e+00 : f32
    %562 = vector.broadcast %cst_126 : f32 to vector<2x32xf32>
    %563 = arith.subf %561, %562 : vector<2x32xf32>
    %564 = vector.extract_strided_slice %556 {offsets = [0, 96], sizes = [2, 32], strides = [1, 1]} : vector<2x128xf32> to vector<2x32xf32>
    %565 = arith.mulf %558, %546 : vector<2x32xf32>
    %566 = arith.mulf %557, %563 : vector<2x32xf32>
    %567 = arith.addf %565, %566 : vector<2x32xf32>
    %568 = math.tanh %567 : vector<2x32xf32>
    %569 = arith.mulf %564, %568 : vector<2x32xf32>
    %570 = tpu.concatenate %422, %443, %464, %485, %506, %527, %548, %569 in 0 : vector<2x32xf32>, vector<2x32xf32>, vector<2x32xf32>, vector<2x32xf32>, vector<2x32xf32>, vector<2x32xf32>, vector<2x32xf32>, vector<2x32xf32> -> vector<16x32xf32>
    %c200 = arith.constant 200 : index
    %c0_127 = arith.constant 0 : index
    %571 = vector.load %arg1[%c200, %c0_127] : memref<440x128xf32, #tpu.memory_space<vmem>>, vector<32x128xf32>
    %c232 = arith.constant 232 : index
    %c0_128 = arith.constant 0 : index
    %572 = vector.load %arg1[%c232, %c0_128] : memref<440x128xf32, #tpu.memory_space<vmem>>, vector<32x128xf32>
    %c264 = arith.constant 264 : index
    %c0_129 = arith.constant 0 : index
    %573 = vector.load %arg1[%c264, %c0_129] : memref<440x128xf32, #tpu.memory_space<vmem>>, vector<1x128xf32>
    %cst_130 = arith.constant dense<0.000000e+00> : vector<16x128xf32>
    %574 = tpu.matmul %570, %571, %cst_130 {dimension_numbers = #tpu.dot_dimension_numbers<[1], [0], [0], [1], [0, 0, 1, 1], [], []>} : vector<16x32xf32>, vector<32x128xf32>, vector<16x128xf32> -> vector<16x128xf32>
    %575 = vector.broadcast %573 : vector<1x128xf32> to vector<16x128xf32>
    %576 = arith.addf %574, %575 : vector<16x128xf32>
    %cst_131 = arith.constant 0.000000e+00 : f32
    %577 = vector.broadcast %cst_131 : f32 to vector<2x32xf32>
    %cst_132 = arith.constant 1.000000e+00 : f32
    %578 = vector.broadcast %cst_132 : f32 to vector<2x32xf32>
    %579 = vector.extract_strided_slice %576 {offsets = [0, 0], sizes = [2, 128], strides = [1, 1]} : vector<16x128xf32> to vector<2x128xf32>
    %cst_133 = arith.constant dense<0.000000e+00> : vector<2x128xf32>
    %580 = tpu.matmul %577, %572, %cst_133 {dimension_numbers = #tpu.dot_dimension_numbers<[1], [0], [0], [1], [0, 0, 1, 1], [], []>} : vector<2x32xf32>, vector<32x128xf32>, vector<2x128xf32> -> vector<2x128xf32>
    %581 = arith.addf %579, %580 : vector<2x128xf32>
    %582 = arith.negf %581 : vector<2x128xf32>
    %583 = math.exp %582 : vector<2x128xf32>
    %cst_134 = arith.constant 1.000000e+00 : f32
    %584 = vector.broadcast %cst_134 : f32 to vector<2x128xf32>
    %585 = arith.addf %584, %583 : vector<2x128xf32>
    %586 = arith.divf %584, %585 : vector<2x128xf32>
    %587 = vector.extract_strided_slice %586 {offsets = [0, 0], sizes = [2, 32], strides = [1, 1]} : vector<2x128xf32> to vector<2x32xf32>
    %588 = vector.extract_strided_slice %586 {offsets = [0, 32], sizes = [2, 32], strides = [1, 1]} : vector<2x128xf32> to vector<2x32xf32>
    %589 = vector.extract_strided_slice %586 {offsets = [0, 64], sizes = [2, 32], strides = [1, 1]} : vector<2x128xf32> to vector<2x32xf32>
    %cst_135 = arith.constant 2.000000e+00 : f32
    %590 = vector.broadcast %cst_135 : f32 to vector<2x32xf32>
    %591 = arith.mulf %590, %589 : vector<2x32xf32>
    %cst_136 = arith.constant 1.000000e+00 : f32
    %592 = vector.broadcast %cst_136 : f32 to vector<2x32xf32>
    %593 = arith.subf %591, %592 : vector<2x32xf32>
    %594 = vector.extract_strided_slice %586 {offsets = [0, 96], sizes = [2, 32], strides = [1, 1]} : vector<2x128xf32> to vector<2x32xf32>
    %595 = arith.mulf %588, %578 : vector<2x32xf32>
    %596 = arith.mulf %587, %593 : vector<2x32xf32>
    %597 = arith.addf %595, %596 : vector<2x32xf32>
    %598 = math.tanh %597 : vector<2x32xf32>
    %599 = arith.mulf %594, %598 : vector<2x32xf32>
    %600 = vector.extract_strided_slice %576 {offsets = [2, 0], sizes = [2, 128], strides = [1, 1]} : vector<16x128xf32> to vector<2x128xf32>
    %cst_137 = arith.constant dense<0.000000e+00> : vector<2x128xf32>
    %601 = tpu.matmul %599, %572, %cst_137 {dimension_numbers = #tpu.dot_dimension_numbers<[1], [0], [0], [1], [0, 0, 1, 1], [], []>} : vector<2x32xf32>, vector<32x128xf32>, vector<2x128xf32> -> vector<2x128xf32>
    %602 = arith.addf %600, %601 : vector<2x128xf32>
    %603 = arith.negf %602 : vector<2x128xf32>
    %604 = math.exp %603 : vector<2x128xf32>
    %cst_138 = arith.constant 1.000000e+00 : f32
    %605 = vector.broadcast %cst_138 : f32 to vector<2x128xf32>
    %606 = arith.addf %605, %604 : vector<2x128xf32>
    %607 = arith.divf %605, %606 : vector<2x128xf32>
    %608 = vector.extract_strided_slice %607 {offsets = [0, 0], sizes = [2, 32], strides = [1, 1]} : vector<2x128xf32> to vector<2x32xf32>
    %609 = vector.extract_strided_slice %607 {offsets = [0, 32], sizes = [2, 32], strides = [1, 1]} : vector<2x128xf32> to vector<2x32xf32>
    %610 = vector.extract_strided_slice %607 {offsets = [0, 64], sizes = [2, 32], strides = [1, 1]} : vector<2x128xf32> to vector<2x32xf32>
    %cst_139 = arith.constant 2.000000e+00 : f32
    %611 = vector.broadcast %cst_139 : f32 to vector<2x32xf32>
    %612 = arith.mulf %611, %610 : vector<2x32xf32>
    %cst_140 = arith.constant 1.000000e+00 : f32
    %613 = vector.broadcast %cst_140 : f32 to vector<2x32xf32>
    %614 = arith.subf %612, %613 : vector<2x32xf32>
    %615 = vector.extract_strided_slice %607 {offsets = [0, 96], sizes = [2, 32], strides = [1, 1]} : vector<2x128xf32> to vector<2x32xf32>
    %616 = arith.mulf %609, %597 : vector<2x32xf32>
    %617 = arith.mulf %608, %614 : vector<2x32xf32>
    %618 = arith.addf %616, %617 : vector<2x32xf32>
    %619 = math.tanh %618 : vector<2x32xf32>
    %620 = arith.mulf %615, %619 : vector<2x32xf32>
    %621 = vector.extract_strided_slice %576 {offsets = [4, 0], sizes = [2, 128], strides = [1, 1]} : vector<16x128xf32> to vector<2x128xf32>
    %cst_141 = arith.constant dense<0.000000e+00> : vector<2x128xf32>
    %622 = tpu.matmul %620, %572, %cst_141 {dimension_numbers = #tpu.dot_dimension_numbers<[1], [0], [0], [1], [0, 0, 1, 1], [], []>} : vector<2x32xf32>, vector<32x128xf32>, vector<2x128xf32> -> vector<2x128xf32>
    %623 = arith.addf %621, %622 : vector<2x128xf32>
    %624 = arith.negf %623 : vector<2x128xf32>
    %625 = math.exp %624 : vector<2x128xf32>
    %cst_142 = arith.constant 1.000000e+00 : f32
    %626 = vector.broadcast %cst_142 : f32 to vector<2x128xf32>
    %627 = arith.addf %626, %625 : vector<2x128xf32>
    %628 = arith.divf %626, %627 : vector<2x128xf32>
    %629 = vector.extract_strided_slice %628 {offsets = [0, 0], sizes = [2, 32], strides = [1, 1]} : vector<2x128xf32> to vector<2x32xf32>
    %630 = vector.extract_strided_slice %628 {offsets = [0, 32], sizes = [2, 32], strides = [1, 1]} : vector<2x128xf32> to vector<2x32xf32>
    %631 = vector.extract_strided_slice %628 {offsets = [0, 64], sizes = [2, 32], strides = [1, 1]} : vector<2x128xf32> to vector<2x32xf32>
    %cst_143 = arith.constant 2.000000e+00 : f32
    %632 = vector.broadcast %cst_143 : f32 to vector<2x32xf32>
    %633 = arith.mulf %632, %631 : vector<2x32xf32>
    %cst_144 = arith.constant 1.000000e+00 : f32
    %634 = vector.broadcast %cst_144 : f32 to vector<2x32xf32>
    %635 = arith.subf %633, %634 : vector<2x32xf32>
    %636 = vector.extract_strided_slice %628 {offsets = [0, 96], sizes = [2, 32], strides = [1, 1]} : vector<2x128xf32> to vector<2x32xf32>
    %637 = arith.mulf %630, %618 : vector<2x32xf32>
    %638 = arith.mulf %629, %635 : vector<2x32xf32>
    %639 = arith.addf %637, %638 : vector<2x32xf32>
    %640 = math.tanh %639 : vector<2x32xf32>
    %641 = arith.mulf %636, %640 : vector<2x32xf32>
    %642 = vector.extract_strided_slice %576 {offsets = [6, 0], sizes = [2, 128], strides = [1, 1]} : vector<16x128xf32> to vector<2x128xf32>
    %cst_145 = arith.constant dense<0.000000e+00> : vector<2x128xf32>
    %643 = tpu.matmul %641, %572, %cst_145 {dimension_numbers = #tpu.dot_dimension_numbers<[1], [0], [0], [1], [0, 0, 1, 1], [], []>} : vector<2x32xf32>, vector<32x128xf32>, vector<2x128xf32> -> vector<2x128xf32>
    %644 = arith.addf %642, %643 : vector<2x128xf32>
    %645 = arith.negf %644 : vector<2x128xf32>
    %646 = math.exp %645 : vector<2x128xf32>
    %cst_146 = arith.constant 1.000000e+00 : f32
    %647 = vector.broadcast %cst_146 : f32 to vector<2x128xf32>
    %648 = arith.addf %647, %646 : vector<2x128xf32>
    %649 = arith.divf %647, %648 : vector<2x128xf32>
    %650 = vector.extract_strided_slice %649 {offsets = [0, 0], sizes = [2, 32], strides = [1, 1]} : vector<2x128xf32> to vector<2x32xf32>
    %651 = vector.extract_strided_slice %649 {offsets = [0, 32], sizes = [2, 32], strides = [1, 1]} : vector<2x128xf32> to vector<2x32xf32>
    %652 = vector.extract_strided_slice %649 {offsets = [0, 64], sizes = [2, 32], strides = [1, 1]} : vector<2x128xf32> to vector<2x32xf32>
    %cst_147 = arith.constant 2.000000e+00 : f32
    %653 = vector.broadcast %cst_147 : f32 to vector<2x32xf32>
    %654 = arith.mulf %653, %652 : vector<2x32xf32>
    %cst_148 = arith.constant 1.000000e+00 : f32
    %655 = vector.broadcast %cst_148 : f32 to vector<2x32xf32>
    %656 = arith.subf %654, %655 : vector<2x32xf32>
    %657 = vector.extract_strided_slice %649 {offsets = [0, 96], sizes = [2, 32], strides = [1, 1]} : vector<2x128xf32> to vector<2x32xf32>
    %658 = arith.mulf %651, %639 : vector<2x32xf32>
    %659 = arith.mulf %650, %656 : vector<2x32xf32>
    %660 = arith.addf %658, %659 : vector<2x32xf32>
    %661 = math.tanh %660 : vector<2x32xf32>
    %662 = arith.mulf %657, %661 : vector<2x32xf32>
    %663 = vector.extract_strided_slice %576 {offsets = [8, 0], sizes = [2, 128], strides = [1, 1]} : vector<16x128xf32> to vector<2x128xf32>
    %cst_149 = arith.constant dense<0.000000e+00> : vector<2x128xf32>
    %664 = tpu.matmul %662, %572, %cst_149 {dimension_numbers = #tpu.dot_dimension_numbers<[1], [0], [0], [1], [0, 0, 1, 1], [], []>} : vector<2x32xf32>, vector<32x128xf32>, vector<2x128xf32> -> vector<2x128xf32>
    %665 = arith.addf %663, %664 : vector<2x128xf32>
    %666 = arith.negf %665 : vector<2x128xf32>
    %667 = math.exp %666 : vector<2x128xf32>
    %cst_150 = arith.constant 1.000000e+00 : f32
    %668 = vector.broadcast %cst_150 : f32 to vector<2x128xf32>
    %669 = arith.addf %668, %667 : vector<2x128xf32>
    %670 = arith.divf %668, %669 : vector<2x128xf32>
    %671 = vector.extract_strided_slice %670 {offsets = [0, 0], sizes = [2, 32], strides = [1, 1]} : vector<2x128xf32> to vector<2x32xf32>
    %672 = vector.extract_strided_slice %670 {offsets = [0, 32], sizes = [2, 32], strides = [1, 1]} : vector<2x128xf32> to vector<2x32xf32>
    %673 = vector.extract_strided_slice %670 {offsets = [0, 64], sizes = [2, 32], strides = [1, 1]} : vector<2x128xf32> to vector<2x32xf32>
    %cst_151 = arith.constant 2.000000e+00 : f32
    %674 = vector.broadcast %cst_151 : f32 to vector<2x32xf32>
    %675 = arith.mulf %674, %673 : vector<2x32xf32>
    %cst_152 = arith.constant 1.000000e+00 : f32
    %676 = vector.broadcast %cst_152 : f32 to vector<2x32xf32>
    %677 = arith.subf %675, %676 : vector<2x32xf32>
    %678 = vector.extract_strided_slice %670 {offsets = [0, 96], sizes = [2, 32], strides = [1, 1]} : vector<2x128xf32> to vector<2x32xf32>
    %679 = arith.mulf %672, %660 : vector<2x32xf32>
    %680 = arith.mulf %671, %677 : vector<2x32xf32>
    %681 = arith.addf %679, %680 : vector<2x32xf32>
    %682 = math.tanh %681 : vector<2x32xf32>
    %683 = arith.mulf %678, %682 : vector<2x32xf32>
    %684 = vector.extract_strided_slice %576 {offsets = [10, 0], sizes = [2, 128], strides = [1, 1]} : vector<16x128xf32> to vector<2x128xf32>
    %cst_153 = arith.constant dense<0.000000e+00> : vector<2x128xf32>
    %685 = tpu.matmul %683, %572, %cst_153 {dimension_numbers = #tpu.dot_dimension_numbers<[1], [0], [0], [1], [0, 0, 1, 1], [], []>} : vector<2x32xf32>, vector<32x128xf32>, vector<2x128xf32> -> vector<2x128xf32>
    %686 = arith.addf %684, %685 : vector<2x128xf32>
    %687 = arith.negf %686 : vector<2x128xf32>
    %688 = math.exp %687 : vector<2x128xf32>
    %cst_154 = arith.constant 1.000000e+00 : f32
    %689 = vector.broadcast %cst_154 : f32 to vector<2x128xf32>
    %690 = arith.addf %689, %688 : vector<2x128xf32>
    %691 = arith.divf %689, %690 : vector<2x128xf32>
    %692 = vector.extract_strided_slice %691 {offsets = [0, 0], sizes = [2, 32], strides = [1, 1]} : vector<2x128xf32> to vector<2x32xf32>
    %693 = vector.extract_strided_slice %691 {offsets = [0, 32], sizes = [2, 32], strides = [1, 1]} : vector<2x128xf32> to vector<2x32xf32>
    %694 = vector.extract_strided_slice %691 {offsets = [0, 64], sizes = [2, 32], strides = [1, 1]} : vector<2x128xf32> to vector<2x32xf32>
    %cst_155 = arith.constant 2.000000e+00 : f32
    %695 = vector.broadcast %cst_155 : f32 to vector<2x32xf32>
    %696 = arith.mulf %695, %694 : vector<2x32xf32>
    %cst_156 = arith.constant 1.000000e+00 : f32
    %697 = vector.broadcast %cst_156 : f32 to vector<2x32xf32>
    %698 = arith.subf %696, %697 : vector<2x32xf32>
    %699 = vector.extract_strided_slice %691 {offsets = [0, 96], sizes = [2, 32], strides = [1, 1]} : vector<2x128xf32> to vector<2x32xf32>
    %700 = arith.mulf %693, %681 : vector<2x32xf32>
    %701 = arith.mulf %692, %698 : vector<2x32xf32>
    %702 = arith.addf %700, %701 : vector<2x32xf32>
    %703 = math.tanh %702 : vector<2x32xf32>
    %704 = arith.mulf %699, %703 : vector<2x32xf32>
    %705 = vector.extract_strided_slice %576 {offsets = [12, 0], sizes = [2, 128], strides = [1, 1]} : vector<16x128xf32> to vector<2x128xf32>
    %cst_157 = arith.constant dense<0.000000e+00> : vector<2x128xf32>
    %706 = tpu.matmul %704, %572, %cst_157 {dimension_numbers = #tpu.dot_dimension_numbers<[1], [0], [0], [1], [0, 0, 1, 1], [], []>} : vector<2x32xf32>, vector<32x128xf32>, vector<2x128xf32> -> vector<2x128xf32>
    %707 = arith.addf %705, %706 : vector<2x128xf32>
    %708 = arith.negf %707 : vector<2x128xf32>
    %709 = math.exp %708 : vector<2x128xf32>
    %cst_158 = arith.constant 1.000000e+00 : f32
    %710 = vector.broadcast %cst_158 : f32 to vector<2x128xf32>
    %711 = arith.addf %710, %709 : vector<2x128xf32>
    %712 = arith.divf %710, %711 : vector<2x128xf32>
    %713 = vector.extract_strided_slice %712 {offsets = [0, 0], sizes = [2, 32], strides = [1, 1]} : vector<2x128xf32> to vector<2x32xf32>
    %714 = vector.extract_strided_slice %712 {offsets = [0, 32], sizes = [2, 32], strides = [1, 1]} : vector<2x128xf32> to vector<2x32xf32>
    %715 = vector.extract_strided_slice %712 {offsets = [0, 64], sizes = [2, 32], strides = [1, 1]} : vector<2x128xf32> to vector<2x32xf32>
    %cst_159 = arith.constant 2.000000e+00 : f32
    %716 = vector.broadcast %cst_159 : f32 to vector<2x32xf32>
    %717 = arith.mulf %716, %715 : vector<2x32xf32>
    %cst_160 = arith.constant 1.000000e+00 : f32
    %718 = vector.broadcast %cst_160 : f32 to vector<2x32xf32>
    %719 = arith.subf %717, %718 : vector<2x32xf32>
    %720 = vector.extract_strided_slice %712 {offsets = [0, 96], sizes = [2, 32], strides = [1, 1]} : vector<2x128xf32> to vector<2x32xf32>
    %721 = arith.mulf %714, %702 : vector<2x32xf32>
    %722 = arith.mulf %713, %719 : vector<2x32xf32>
    %723 = arith.addf %721, %722 : vector<2x32xf32>
    %724 = math.tanh %723 : vector<2x32xf32>
    %725 = arith.mulf %720, %724 : vector<2x32xf32>
    %726 = vector.extract_strided_slice %576 {offsets = [14, 0], sizes = [2, 128], strides = [1, 1]} : vector<16x128xf32> to vector<2x128xf32>
    %cst_161 = arith.constant dense<0.000000e+00> : vector<2x128xf32>
    %727 = tpu.matmul %725, %572, %cst_161 {dimension_numbers = #tpu.dot_dimension_numbers<[1], [0], [0], [1], [0, 0, 1, 1], [], []>} : vector<2x32xf32>, vector<32x128xf32>, vector<2x128xf32> -> vector<2x128xf32>
    %728 = arith.addf %726, %727 : vector<2x128xf32>
    %729 = arith.negf %728 : vector<2x128xf32>
    %730 = math.exp %729 : vector<2x128xf32>
    %cst_162 = arith.constant 1.000000e+00 : f32
    %731 = vector.broadcast %cst_162 : f32 to vector<2x128xf32>
    %732 = arith.addf %731, %730 : vector<2x128xf32>
    %733 = arith.divf %731, %732 : vector<2x128xf32>
    %734 = vector.extract_strided_slice %733 {offsets = [0, 0], sizes = [2, 32], strides = [1, 1]} : vector<2x128xf32> to vector<2x32xf32>
    %735 = vector.extract_strided_slice %733 {offsets = [0, 32], sizes = [2, 32], strides = [1, 1]} : vector<2x128xf32> to vector<2x32xf32>
    %736 = vector.extract_strided_slice %733 {offsets = [0, 64], sizes = [2, 32], strides = [1, 1]} : vector<2x128xf32> to vector<2x32xf32>
    %cst_163 = arith.constant 2.000000e+00 : f32
    %737 = vector.broadcast %cst_163 : f32 to vector<2x32xf32>
    %738 = arith.mulf %737, %736 : vector<2x32xf32>
    %cst_164 = arith.constant 1.000000e+00 : f32
    %739 = vector.broadcast %cst_164 : f32 to vector<2x32xf32>
    %740 = arith.subf %738, %739 : vector<2x32xf32>
    %741 = vector.extract_strided_slice %733 {offsets = [0, 96], sizes = [2, 32], strides = [1, 1]} : vector<2x128xf32> to vector<2x32xf32>
    %742 = arith.mulf %735, %723 : vector<2x32xf32>
    %743 = arith.mulf %734, %740 : vector<2x32xf32>
    %744 = arith.addf %742, %743 : vector<2x32xf32>
    %745 = math.tanh %744 : vector<2x32xf32>
    %746 = arith.mulf %741, %745 : vector<2x32xf32>
    %747 = tpu.concatenate %599, %620, %641, %662, %683, %704, %725, %746 in 0 : vector<2x32xf32>, vector<2x32xf32>, vector<2x32xf32>, vector<2x32xf32>, vector<2x32xf32>, vector<2x32xf32>, vector<2x32xf32>, vector<2x32xf32> -> vector<16x32xf32>
    %c400 = arith.constant 400 : index
    %c0_165 = arith.constant 0 : index
    %748 = vector.load %arg1[%c400, %c0_165] : memref<440x128xf32, #tpu.memory_space<vmem>>, vector<32x16xf32>
    %c432 = arith.constant 432 : index
    %c0_166 = arith.constant 0 : index
    %749 = vector.load %arg1[%c432, %c0_166] : memref<440x128xf32, #tpu.memory_space<vmem>>, vector<1x16xf32>
    %cst_167 = arith.constant dense<0.000000e+00> : vector<16x16xf32>
    %750 = tpu.matmul %747, %748, %cst_167 {dimension_numbers = #tpu.dot_dimension_numbers<[1], [0], [0], [1], [0, 0, 1, 1], [], []>} : vector<16x32xf32>, vector<32x16xf32>, vector<16x16xf32> -> vector<16x16xf32>
    %751 = vector.broadcast %749 : vector<1x16xf32> to vector<16x16xf32>
    %752 = arith.addf %750, %751 : vector<16x16xf32>
    %753 = vector.extract_strided_slice %752 {offsets = [0, 0], sizes = [1, 16], strides = [1, 1]} : vector<16x16xf32> to vector<1x16xf32>
    %754 = vector.extract_strided_slice %752 {offsets = [2, 0], sizes = [1, 16], strides = [1, 1]} : vector<16x16xf32> to vector<1x16xf32>
    %755 = vector.extract_strided_slice %752 {offsets = [4, 0], sizes = [1, 16], strides = [1, 1]} : vector<16x16xf32> to vector<1x16xf32>
    %756 = vector.extract_strided_slice %752 {offsets = [6, 0], sizes = [1, 16], strides = [1, 1]} : vector<16x16xf32> to vector<1x16xf32>
    %757 = vector.extract_strided_slice %752 {offsets = [8, 0], sizes = [1, 16], strides = [1, 1]} : vector<16x16xf32> to vector<1x16xf32>
    %758 = vector.extract_strided_slice %752 {offsets = [10, 0], sizes = [1, 16], strides = [1, 1]} : vector<16x16xf32> to vector<1x16xf32>
    %759 = vector.extract_strided_slice %752 {offsets = [12, 0], sizes = [1, 16], strides = [1, 1]} : vector<16x16xf32> to vector<1x16xf32>
    %760 = vector.extract_strided_slice %752 {offsets = [14, 0], sizes = [1, 16], strides = [1, 1]} : vector<16x16xf32> to vector<1x16xf32>
    %761 = vector.extract_strided_slice %752 {offsets = [1, 0], sizes = [1, 16], strides = [1, 1]} : vector<16x16xf32> to vector<1x16xf32>
    %762 = vector.extract_strided_slice %752 {offsets = [3, 0], sizes = [1, 16], strides = [1, 1]} : vector<16x16xf32> to vector<1x16xf32>
    %763 = vector.extract_strided_slice %752 {offsets = [5, 0], sizes = [1, 16], strides = [1, 1]} : vector<16x16xf32> to vector<1x16xf32>
    %764 = vector.extract_strided_slice %752 {offsets = [7, 0], sizes = [1, 16], strides = [1, 1]} : vector<16x16xf32> to vector<1x16xf32>
    %765 = vector.extract_strided_slice %752 {offsets = [9, 0], sizes = [1, 16], strides = [1, 1]} : vector<16x16xf32> to vector<1x16xf32>
    %766 = vector.extract_strided_slice %752 {offsets = [11, 0], sizes = [1, 16], strides = [1, 1]} : vector<16x16xf32> to vector<1x16xf32>
    %767 = vector.extract_strided_slice %752 {offsets = [13, 0], sizes = [1, 16], strides = [1, 1]} : vector<16x16xf32> to vector<1x16xf32>
    %768 = vector.extract_strided_slice %752 {offsets = [15, 0], sizes = [1, 16], strides = [1, 1]} : vector<16x16xf32> to vector<1x16xf32>
    %769 = tpu.concatenate %753, %754, %755, %756, %757, %758, %759, %760, %761, %762, %763, %764, %765, %766, %767, %768 in 0 : vector<1x16xf32>, vector<1x16xf32>, vector<1x16xf32>, vector<1x16xf32>, vector<1x16xf32>, vector<1x16xf32>, vector<1x16xf32>, vector<1x16xf32>, vector<1x16xf32>, vector<1x16xf32>, vector<1x16xf32>, vector<1x16xf32>, vector<1x16xf32>, vector<1x16xf32>, vector<1x16xf32>, vector<1x16xf32> -> vector<16x16xf32>
    %c0_168 = arith.constant 0 : index
    %c0_169 = arith.constant 0 : index
    %770 = vector.load %arg2[%c0_168, %c0_169] : memref<16x16xf32, #tpu.memory_space<vmem>>, vector<16x16xf32>
    tpu.vector_store %arg2[%c0_168, %c0_169], %769 {strides = array<i32>} : memref<16x16xf32, #tpu.memory_space<vmem>>, vector<16x16xf32>,
    %771 = vector.extract_strided_slice %382 {offsets = [0, 0], sizes = [1, 10], strides = [1, 1]} : vector<16x10xf32> to vector<1x10xf32>
    %772 = vector.extract_strided_slice %382 {offsets = [2, 0], sizes = [1, 10], strides = [1, 1]} : vector<16x10xf32> to vector<1x10xf32>
    %773 = vector.extract_strided_slice %382 {offsets = [4, 0], sizes = [1, 10], strides = [1, 1]} : vector<16x10xf32> to vector<1x10xf32>
    %774 = vector.extract_strided_slice %382 {offsets = [6, 0], sizes = [1, 10], strides = [1, 1]} : vector<16x10xf32> to vector<1x10xf32>
    %775 = vector.extract_strided_slice %382 {offsets = [8, 0], sizes = [1, 10], strides = [1, 1]} : vector<16x10xf32> to vector<1x10xf32>
    %776 = vector.extract_strided_slice %382 {offsets = [10, 0], sizes = [1, 10], strides = [1, 1]} : vector<16x10xf32> to vector<1x10xf32>
    %777 = vector.extract_strided_slice %382 {offsets = [12, 0], sizes = [1, 10], strides = [1, 1]} : vector<16x10xf32> to vector<1x10xf32>
    %778 = vector.extract_strided_slice %382 {offsets = [14, 0], sizes = [1, 10], strides = [1, 1]} : vector<16x10xf32> to vector<1x10xf32>
    %779 = vector.extract_strided_slice %382 {offsets = [1, 0], sizes = [1, 10], strides = [1, 1]} : vector<16x10xf32> to vector<1x10xf32>
    %780 = vector.extract_strided_slice %382 {offsets = [3, 0], sizes = [1, 10], strides = [1, 1]} : vector<16x10xf32> to vector<1x10xf32>
    %781 = vector.extract_strided_slice %382 {offsets = [5, 0], sizes = [1, 10], strides = [1, 1]} : vector<16x10xf32> to vector<1x10xf32>
    %782 = vector.extract_strided_slice %382 {offsets = [7, 0], sizes = [1, 10], strides = [1, 1]} : vector<16x10xf32> to vector<1x10xf32>
    %783 = vector.extract_strided_slice %382 {offsets = [9, 0], sizes = [1, 10], strides = [1, 1]} : vector<16x10xf32> to vector<1x10xf32>
    %784 = vector.extract_strided_slice %382 {offsets = [11, 0], sizes = [1, 10], strides = [1, 1]} : vector<16x10xf32> to vector<1x10xf32>
    %785 = vector.extract_strided_slice %382 {offsets = [13, 0], sizes = [1, 10], strides = [1, 1]} : vector<16x10xf32> to vector<1x10xf32>
    %786 = vector.extract_strided_slice %382 {offsets = [15, 0], sizes = [1, 10], strides = [1, 1]} : vector<16x10xf32> to vector<1x10xf32>
    %787 = tpu.concatenate %771, %772, %773, %774, %775, %776, %777, %778, %779, %780, %781, %782, %783, %784, %785, %786 in 0 : vector<1x10xf32>, vector<1x10xf32>, vector<1x10xf32>, vector<1x10xf32>, vector<1x10xf32>, vector<1x10xf32>, vector<1x10xf32>, vector<1x10xf32>, vector<1x10xf32>, vector<1x10xf32>, vector<1x10xf32>, vector<1x10xf32>, vector<1x10xf32>, vector<1x10xf32>, vector<1x10xf32>, vector<1x10xf32> -> vector<16x10xf32>
    %c0_170 = arith.constant 0 : index
    %c0_171 = arith.constant 0 : index
    %788 = vector.load %arg3[%c0_170, %c0_171] : memref<16x10xf32, #tpu.memory_space<vmem>>, vector<16x10xf32>
    tpu.vector_store %arg3[%c0_170, %c0_171], %787 {strides = array<i32>} : memref<16x10xf32, #tpu.memory_space<vmem>>, vector<16x10xf32>,
    return
  }
}

</mosaic_0001>

<bundles_post_ra>
// kernel: lstm_autoencoder_forward.1
= control target key start
LH: loop header
LB: loop body
LE: loop exit
PB: predicated region body
PF: predicated region fallthrough
CT: control target
= control target key end

     0   :  { %9 = vsyncpa [#allocation3], 0  ;;  %s3806_s0 = inlined_call_operand.hbm [shape: f32[16,16], index: 0, kind: input, shape index: {}]   ;;  %s3807_s1 = inlined_call_operand.hbm [shape: f32[440,128], index: 1, kind: input, shape index: {}]   ;;  %s3808_s2 = inlined_call_operand.hbm [shape: f32[16,16], index: 2, kind: output, shape index: {0}]   ;;  %s3809_s3 = inlined_call_operand.hbm [shape: f32[16,10], index: 3, kind: output, shape index: {1}]  }
   0x1   :  { %10 = vsyncpa [#allocation6], 0 }
   0x2   :  { %11 = vsyncpa [#allocation4], 0 }
   0x3   :  { %12 = vsyncpa [#allocation9], 0  ;;  %s17_s14 = sshll.u32 %s3806_s0, 4  ;;  %s3218_s15 = smov [#allocation2]   ;;  %s18_s14 = int_to_ptr.hbm [resolvable:$true] %s17_s14 }
   0x4   :  { %s19_s16 = sshll.u32 %s3218_s15, 4  ;;  %s30_s19 = sshll.u32 %s3807_s1, 4  ;;  %s20_s16 = int_to_ptr.vmem [resolvable:$true] %s19_s16  ;;  %s31_s19 = int_to_ptr.hbm [resolvable:$true] %s30_s19 }
   0x5   :  { %s3219_s20 = smov 128   ;;  %s3220_s21 = smov 8  }
   0x6   :  { %25 = dma.hbm_to_vmem [thread:$0]  %s18_s14, 256, %s20_s16, [#allocation3], %s3219_s20, %s3219_s20, %s3220_s21  }
   0x7   :  { %s3221_s22 = smov [#allocation5]  }
   0x8   :  { %s32_s23 = sshll.u32 %s3221_s22, 4  ;;  %s33_s23 = int_to_ptr.vmem [resolvable:$true] %s32_s23 }
   0x9   :  { %38 = dma.hbm_to_vmem [thread:$0]  %s31_s19, 7040, %s33_s23, [#allocation6], %s3219_s20, %s3219_s20, %s3220_s21  }
   0xa   :  { %3210 = dma.done.wait [#allocation3], 256  }
   0xb   :  { %3211 = vsyncadd [#allocation3], 4294967040 }
   0xc   :  { %3212 = dma.done.wait [#allocation6], 7040  }
   0xd   :  { %3213 = vsyncadd [#allocation6], 4294960256  ;;  %vm79_vm0 = vcmask 1040384   ;;  %vm81_vm1 = vcmask 1041408   ;;  %vm83_vm2 = vcmask 1042432   ;;  %v101_v0 = vld [vmem:[#allocation5 + $0x8] sm:$0xff] }
   0xe   :  { %v100_v1 = vld [vmem:[#allocation5] sm:$0xff]  ;;  %v47_v2 = vld [vmem:[#allocation2] sm:$0xff]  ;;  %vm85_vm3 = vcmask 1043456   ;;  %vm87_vm4 = vcmask 1044480   ;;  %vm89_vm5 = vcmask 1045504   ;;  %2894 = vmatpush.msra.mxu1 %v101_v0  ;;  %v48_v3 = vld [vmem:[#allocation2 + $0x8] sm:$0xff]  ;;  %129 = vmatpush.msra.mxu0 %v101_v0 }
   0xf   :  { %v65_v4 = vrot.slane %v47_v2, 4  ;;  %v69_v5 = vrot.slane %v47_v2, 3  ;;  %v73_v6 = vrot.slane %v47_v2, 2  ;;  %v77_v7 = vrot.slane %v47_v2, 1  ;;  %v3259_v8 = vld [vmem:[#allocation5 + $0x28] sm:$0xff]  ;;  %v104_v13 = vld [vmem:[#allocation5 + $0x20] sm:$0xff] }
  0x10   :  { %v67_v9 = vrot.slane %v48_v3, 3  ;;  %v71_v10 = vrot.slane %v48_v3, 2  ;;  %v75_v11 = vrot.slane %v48_v3, 1  ;;  %v50_v12 = vrot.slane %v48_v3, 7  ;;  %217 = vmatpush.msra.mxu2 %v3259_v8  ;;  %288 = vmatpush.msra.mxu3 %v3259_v8  ;;  %v103_v19 = vld [vmem:[#allocation5 + $0x18] sm:$0xff]  ;;  %v102_v29 = vld [vmem:[#allocation5 + $0x10] sm:$0xff] }
  0x11   :  { %2895 = vmatpush.msra.mxu1 %v100_v1  ;;  %130 = vmatpush.msra.mxu0 %v100_v1  ;;  %v53_v14 = vrot.slane %v47_v2, 7  ;;  %v55_v15 = vrot.slane %v48_v3, 6  ;;  %v57_v16 = vrot.slane %v47_v2, 6  ;;  %v59_v17 = vrot.slane %v48_v3, 5  ;;  %v2905_v37 = vld [vmem:[#allocation5 + $0x30] ss:$0 sm:$0xff] }
  0x12   :  { %v93_v18 = vsel %vm79_vm0, %v65_v4, %v67_v9  ;;  %v61_v20 = vrot.slane %v47_v2, 5  ;;  %v63_v21 = vrot.slane %v48_v3, 4  ;;  %v80_v22 = vsel %vm79_vm0, %v47_v2, %v50_v12  ;;  %218 = vmatpush.msra.mxu2 %v104_v13  ;;  %289 = vmatpush.msra.mxu3 %v104_v13  ;;  %s3223_s0 = smov 64   ;;  %s3224_s1 = smov 32  }
  0x13   :  { %154 = vmatpush.msrb.mxu1 %v3259_v8  ;;  %v94_v23 = vsel %vm81_vm1, %v93_v18, %v69_v5  ;;  %v82_v24 = vsel %vm81_vm1, %v80_v22, %v53_v14  ;;  %568 = vmatpush.msrb.mxu0 %v3259_v8  ;;  %vm91_vm6 = vcmask 1046528   ;;  %vm3810_vm7 = vcmask 130048   ;;  %s3225_s24 = smov [#allocation8]   ;;  %s2764_s28 = sshll.u32 %s3809_s3, 4  ;;  %s2765_s28 = int_to_ptr.hbm [resolvable:$true] %s2764_s28 }
  0x14   :  { %v95_v25 = vsel %vm83_vm2, %v94_v23, %v71_v10  ;;  %v84_v26 = vsel %vm83_vm2, %v82_v24, %v55_v15  ;;  %219 = vmatpush.msra.mxu2 %v103_v19  ;;  %290 = vmatpush.msra.mxu3 %v103_v19  ;;  %v3222_v36 = vmov 0.0   ;;  %vm138_vm12 = vcmask 261120   ;;  %s2762_s25 = sshll.u32 %s3225_s24, 4  ;;  %s3226_s3 = smov [#allocation7]   ;;  %s2763_s25 = int_to_ptr.vmem [resolvable:$true] %s2762_s25 }
  0x15   :  { %155 = vmatpush.msrb.mxu1 %v104_v13  ;;  %v96_v27 = vsel %vm85_vm3, %v95_v25, %v73_v6  ;;  %v86_v28 = vsel %vm85_vm3, %v84_v26, %v57_v16  ;;  %569 = vmatpush.msrb.mxu0 %v104_v13  ;;  %s2749_s29 = sshll.u32 %s3226_s3, 4  ;;  %s2751_s5 = sshll.u32 %s3808_s2, 4  ;;  %s2750_s29 = int_to_ptr.vmem [resolvable:$true] %s2749_s29  ;;  %s2752_s5 = int_to_ptr.hbm [resolvable:$true] %s2751_s5 }
  0x16   :  { %v97_v30 = vsel %vm87_vm4, %v96_v27, %v75_v11  ;;  %v88_v31 = vsel %vm87_vm4, %v86_v28, %v59_v17  ;;  %220 = vmatpush.msra.mxu2 %v102_v29  ;;  %291 = vmatpush.msra.mxu3 %v102_v29 }
  0x17   :  { %156 = vmatpush.msrb.mxu1 %v103_v19  ;;  %v98_v32 = vsel %vm89_vm5, %v97_v30, %v77_v7  ;;  %v90_v33 = vsel %vm89_vm5, %v88_v31, %v61_v20  ;;  %570 = vmatpush.msrb.mxu0 %v103_v19 }
  0x18   :  { %430 = vmatpush.msrb.mxu2 %v3259_v8  ;;  %v99_v34 = vsel %vm91_vm6, %v98_v32, %v48_v3  ;;  %v92_v35 = vsel %vm91_vm6, %v90_v33, %v63_v21  ;;  %497 = vmatpush.msrb.mxu3 %v3259_v8 }
  0x19   :  { %157 = vmatpush.msrb.mxu1 %v102_v29  ;;  %2783 = vmatmul.msk.f32.vlgmr.msra.gmra.mxu0 %vm3810_vm7, %v92_v35 }
  0x1a   :  { %2784 = vmatmul.msk.f32.vlgmr.msra.gmra.mxu1 %vm3810_vm7, %v99_v34  ;;  %431 = vmatpush.msrb.mxu2 %v104_v13 }
  0x1b   :  { %359 = vmatpush.msra.mxu1 %v3259_v8  ;;  %498 = vmatpush.msrb.mxu3 %v104_v13 }
  0x1c   :  { %432 = vmatpush.msrb.mxu2 %v103_v19  ;;  %571 = vmatpush.msrb.mxu0 %v102_v29 }
  0x1d   :  { %360 = vmatpush.msra.mxu1 %v104_v13  ;;  %499 = vmatpush.msrb.mxu3 %v103_v19 }
  0x1e   :  { %433 = vmatpush.msrb.mxu2 %v102_v29 }
  0x1f   :  { %361 = vmatpush.msra.mxu1 %v103_v19  ;;  %500 = vmatpush.msrb.mxu3 %v102_v29 }
  0x21   :  { %362 = vmatpush.msra.mxu1 %v102_v29 }
  0x22   :  { %158 = vmatmul.f32.vlgmr.msrb.gmra.mxu1 %v3222_v36 }
  0x23   :  { %639 = vmatpush.msrb.mxu1 %v3259_v8 }
  0x25   :  { %640 = vmatpush.msrb.mxu1 %v104_v13 }
  0x27   :  { %641 = vmatpush.msrb.mxu1 %v103_v19 }
  0x29   :  { %642 = vmatpush.msrb.mxu1 %v102_v29 }
  0x96   :  { %v132_v40 = vpop.f32.mrf.mxu0 }
  0x97   :  { %v135_v38 = vpop.f32.mrf.mxu1  ;;  %v3288_v41 = vadd.f32 %v2905_v37, %v132_v40 }
  0x98   :  { %v3286_v39 = vadd.f32 %v2905_v37, %v135_v38 }
  0x9f   :  { %v159_v42 = vpop.f32.mrf.mxu1 }
  0xa0   :  { %v162_v43 = vadd.f32 %v159_v42, %v3288_v41 }
  0xa2   :  { %v2785_v44 = vmul.f32 -1.442695, %v162_v43 }
  0xa4   :  { %2914 = vpow2.f32 %v2785_v44 }
  0xaa   :  { %v2915_v45 = vpop.eup %2914 }
  0xab   :  { %v166_v46 = vadd.f32 1.0, %v2915_v45 }
  0xad   :  { %2916 = vrcp.f32 %v166_v46  ;;  %v178_v50 = vand.u32 2147483648, %v166_v46  ;;  %v176_v52 = vand.u32 2147483647, %v166_v46  ;;  %vm172_vm9 = vweird.f32 %v166_v46 }
  0xaf   :  { %v179_v54 = vor.u32 1.1754944e-38, %v178_v50  ;;  %vm177_vm11 = vcmp.eq.f32.partialorder %v176_v52, 8.507059e+37 }
  0xb3   :  { %v2917_v47 = vpop.eup %2916 }
  0xb4   :  { %v168_v48 = vmul.f32 %v2917_v47, %v166_v46  ;;  %vm173_vm8 = vweird.f32 %v2917_v47 }
  0xb5   :  { %vm174_vm10 = vmor %vm172_vm9, %vm173_vm8 }
  0xb6   :  { %v169_v49 = vsub.f32 1.0, %v168_v48 }
  0xb8   :  { %v170_v51 = vmul.f32 %v2917_v47, %v169_v49 }
  0xba   :  { %v171_v53 = vadd.f32 %v2917_v47, %v170_v51 }
  0xbc   :  { %v175_v55 = vsel %vm174_vm10, %v2917_v47, %v171_v53 }
  0xbd   :  { %v180_v56 = vsel %vm177_vm11, %v179_v54, %v175_v55 }
  0xbe   :  { %v182_v57 = vmul.f32 2.0, %v180_v56 }
  0xc0   :  { %v2786_v58 = vadd.f32 -1.0, %v182_v57 }
  0xc2   :  { %185 = vrot.lane.b32.xlu0 %v2786_v58, %s3223_s0 }
 0x134   :  { %v186_v59 = vpop.permute.xlu0 %185 }
 0x135   :  { %v188_v60 = vmul.f32 %v186_v59, %v180_v56 }
 0x137   :  { %190 = vrot.lane.b32.xlu0 %v188_v60, %s3224_s1 }
 0x1a9   :  { %v191_v61 = vpop.permute.xlu0 %190 }
 0x1aa   :  { %v193_v62 = vadd.f32 %v191_v61, %v180_v56 }
 0x1ac   :  { %2918 = vtanh.f32 %v193_v62  ;;  %v251_v23 = vrot.slane %v193_v62, 6 }
 0x1b2   :  { %v2919_v63 = vpop.eup %2918 }
 0x1b3   :  { %196 = vrot.lane.b32.xlu1 %v2919_v63, %s3223_s0 }
 0x225   :  { %v197_v0 = vpop.permute.xlu1 %196 }
 0x226   :  { %v3294_v1 = vmul.f32 %v197_v0, %v180_v56 }
 0x228   :  { %201 = vrot.lane.b32.xlu1 %v3294_v1, %s3224_s1 }
 0x29a   :  { %v202_v2 = vpop.permute.xlu1 %201 }
 0x29b   :  { %2787 = vmatmul.msk.f32.vlgmr.msra.gmra.mxu2 %vm138_vm12, %v202_v2 }
 0x31e   :  { %v222_v3 = vpop.f32.mrf.mxu2 }
 0x31f   :  { %v226_v4 = vrot.slane %v222_v3, 6 }
 0x321   :  { %v228_v5 = vadd.f32 %v226_v4, %v3288_v41 }
 0x323   :  { %v2788_v6 = vmul.f32 -1.442695, %v228_v5 }
 0x325   :  { %2920 = vpow2.f32 %v2788_v6 }
 0x32b   :  { %v2921_v7 = vpop.eup %2920 }
 0x32c   :  { %v232_v8 = vadd.f32 1.0, %v2921_v7 }
 0x32e   :  { %2922 = vrcp.f32 %v232_v8  ;;  %v244_v12 = vand.u32 2147483648, %v232_v8  ;;  %v242_v14 = vand.u32 2147483647, %v232_v8  ;;  %vm238_vm14 = vweird.f32 %v232_v8 }
 0x330   :  { %v245_v16 = vor.u32 1.1754944e-38, %v244_v12  ;;  %vm243_vm8 = vcmp.eq.f32.partialorder %v242_v14, 8.507059e+37 }
 0x334   :  { %v2923_v9 = vpop.eup %2922 }
 0x335   :  { %v234_v10 = vmul.f32 %v2923_v9, %v232_v8  ;;  %vm239_vm13 = vweird.f32 %v2923_v9 }
 0x336   :  { %vm240_vm15 = vmor %vm238_vm14, %vm239_vm13 }
 0x337   :  { %v235_v11 = vsub.f32 1.0, %v234_v10 }
 0x339   :  { %v236_v13 = vmul.f32 %v2923_v9, %v235_v11 }
 0x33b   :  { %v237_v15 = vadd.f32 %v2923_v9, %v236_v13 }
 0x33d   :  { %v241_v17 = vsel %vm240_vm15, %v2923_v9, %v237_v15 }
 0x33e   :  { %v246_v18 = vsel %vm243_vm8, %v245_v16, %v241_v17 }
 0x33f   :  { %v248_v19 = vmul.f32 2.0, %v246_v18  ;;  %v253_v24 = vmul.f32 %v251_v23, %v246_v18 }
 0x341   :  { %v2789_v20 = vadd.f32 -1.0, %v248_v19 }
 0x343   :  { %255 = vrot.lane.b32.xlu2 %v2789_v20, %s3223_s0 }
 0x39d   :  { %v256_v21 = vpop.permute.xlu2 %255 }
 0x39e   :  { %v258_v22 = vmul.f32 %v256_v21, %v246_v18 }
 0x3a0   :  { %260 = vrot.lane.b32.xlu2 %v258_v22, %s3224_s1 }
 0x3fa   :  { %v261_v25 = vpop.permute.xlu2 %260 }
 0x3fb   :  { %v263_v26 = vadd.f32 %v261_v25, %v253_v24 }
 0x3fd   :  { %2924 = vtanh.f32 %v263_v26  ;;  %v322_v55 = vrot.slane %v263_v26, 6 }
 0x403   :  { %v2925_v27 = vpop.eup %2924 }
 0x404   :  { %266 = vrot.lane.b32.xlu0 %v2925_v27, %s3223_s0 }
 0x476   :  { %v267_v28 = vpop.permute.xlu0 %266 }
 0x477   :  { %v269_v29 = vmul.f32 %v267_v28, %v246_v18 }
 0x479   :  { %v271_v30 = vrot.slane %v269_v29, 2  ;;  %v692_v62 = vsel %vm81_vm1, %v3294_v1, %v269_v29 }
 0x47b   :  { %272 = vrot.lane.b32.xlu1 %v271_v30, %s3224_s1 }
 0x4ed   :  { %v273_v31 = vpop.permute.xlu1 %272 }
 0x4ee   :  { %2790 = vmatmul.msk.f32.vlgmr.msra.gmra.mxu3 %vm138_vm12, %v273_v31 }
 0x571   :  { %v293_v32 = vpop.f32.mrf.mxu3 }
 0x572   :  { %v297_v33 = vrot.slane %v293_v32, 4 }
 0x574   :  { %v299_v34 = vadd.f32 %v297_v33, %v3288_v41 }
 0x576   :  { %v2791_v35 = vmul.f32 -1.442695, %v299_v34 }
 0x578   :  { %2926 = vpow2.f32 %v2791_v35 }
 0x57e   :  { %v2927_v37 = vpop.eup %2926 }
 0x57f   :  { %v303_v38 = vadd.f32 1.0, %v2927_v37 }
 0x581   :  { %2928 = vrcp.f32 %v303_v38  ;;  %v315_v44 = vand.u32 2147483648, %v303_v38  ;;  %v313_v46 = vand.u32 2147483647, %v303_v38  ;;  %vm309_vm10 = vweird.f32 %v303_v38 }
 0x583   :  { %v316_v48 = vor.u32 1.1754944e-38, %v315_v44  ;;  %vm314_vm13 = vcmp.eq.f32.partialorder %v313_v46, 8.507059e+37 }
 0x587   :  { %v2929_v40 = vpop.eup %2928 }
 0x588   :  { %v305_v42 = vmul.f32 %v2929_v40, %v303_v38  ;;  %vm310_vm9 = vweird.f32 %v2929_v40 }
 0x589   :  { %vm311_vm11 = vmor %vm309_vm10, %vm310_vm9 }
 0x58a   :  { %v306_v43 = vsub.f32 1.0, %v305_v42 }
 0x58c   :  { %v307_v45 = vmul.f32 %v2929_v40, %v306_v43 }
 0x58e   :  { %v308_v47 = vadd.f32 %v2929_v40, %v307_v45 }
 0x590   :  { %v312_v49 = vsel %vm311_vm11, %v2929_v40, %v308_v47 }
 0x591   :  { %v317_v50 = vsel %vm314_vm13, %v316_v48, %v312_v49 }
 0x592   :  { %v319_v51 = vmul.f32 2.0, %v317_v50  ;;  %v324_v56 = vmul.f32 %v322_v55, %v317_v50  ;;  %v699_v55 = vld [vmem:[#allocation5 + $0x40] sm:$0xff] }
 0x594   :  { %v2792_v52 = vadd.f32 -1.0, %v319_v51 }
 0x596   :  { %326 = vrot.lane.b32.xlu2 %v2792_v52, %s3223_s0 }
 0x5f0   :  { %v327_v53 = vpop.permute.xlu2 %326 }
 0x5f1   :  { %v329_v54 = vmul.f32 %v327_v53, %v317_v50  ;;  %v701_v53 = vld [vmem:[#allocation5 + $0x50] sm:$0xff] }
 0x5f2   :  { %730 = vmatpush.msra.mxu2 %v701_v53 }
 0x5f3   :  { %331 = vrot.lane.b32.xlu0 %v329_v54, %s3224_s1  ;;  %v700_v54 = vld [vmem:[#allocation5 + $0x48] sm:$0xff] }
 0x5f4   :  { %731 = vmatpush.msra.mxu2 %v700_v54 }
 0x5f6   :  { %732 = vmatpush.msra.mxu2 %v699_v55 }
 0x665   :  { %v332_v57 = vpop.permute.xlu0 %331 }
 0x666   :  { %v334_v58 = vadd.f32 %v332_v57, %v324_v56  ;;  %v698_v56 = vld [vmem:[#allocation5 + $0x38] sm:$0xff] }
 0x667   :  { %733 = vmatpush.msra.mxu2 %v698_v56 }
 0x668   :  { %2930 = vtanh.f32 %v334_v58  ;;  %v393_v21 = vrot.slane %v334_v58, 6 }
 0x66e   :  { %v2931_v59 = vpop.eup %2930 }
 0x66f   :  { %337 = vrot.lane.b32.xlu1 %v2931_v59, %s3223_s0 }
 0x6e1   :  { %v338_v60 = vpop.permute.xlu1 %337 }
 0x6e2   :  { %v340_v61 = vmul.f32 %v338_v60, %v317_v50 }
 0x6e4   :  { %v342_v63 = vrot.slane %v340_v61, 4  ;;  %v693_v0 = vsel %vm85_vm3, %v692_v62, %v340_v61 }
 0x6e6   :  { %343 = vrot.lane.b32.xlu2 %v342_v63, %s3224_s1 }
 0x740   :  { %v344_v2 = vpop.permute.xlu2 %343 }
 0x741   :  { %2793 = vmatmul.msk.f32.vlgmr.msra.gmra.mxu1 %vm138_vm12, %v344_v2  ;;  %v3334_v2 = vld [vmem:[#allocation5 + $0x70] sm:$0xff] }
 0x742   :  { %753 = vmatpush.msra.mxu3 %v3334_v2  ;;  %816 = vmatpush.msra.mxu0 %v3334_v2 }
 0x743   :  { %887 = vmatpush.msra.mxu1 %v3334_v2 }
 0x7be   :  { %v364_v3 = vpop.f32.mrf.mxu1 }
 0x7bf   :  { %v368_v4 = vrot.slane %v364_v3, 2  ;;  %v3336_v3 = vld [vmem:[#allocation5 + $0x68] sm:$0xff] }
 0x7c0   :  { %754 = vmatpush.msra.mxu3 %v3336_v3  ;;  %817 = vmatpush.msra.mxu0 %v3336_v3 }
 0x7c1   :  { %v370_v5 = vadd.f32 %v368_v4, %v3288_v41  ;;  %v3340_v4 = vld [vmem:[#allocation5 + $0x60] sm:$0xff]  ;;  %888 = vmatpush.msra.mxu1 %v3336_v3 }
 0x7c2   :  { %755 = vmatpush.msra.mxu3 %v3340_v4  ;;  %818 = vmatpush.msra.mxu0 %v3340_v4 }
 0x7c3   :  { %v2794_v6 = vmul.f32 -1.442695, %v370_v5  ;;  %v3346_v5 = vld [vmem:[#allocation5 + $0x58] sm:$0xff]  ;;  %889 = vmatpush.msra.mxu1 %v3340_v4 }
 0x7c4   :  { %756 = vmatpush.msra.mxu3 %v3346_v5  ;;  %819 = vmatpush.msra.mxu0 %v3346_v5 }
 0x7c5   :  { %2932 = vpow2.f32 %v2794_v6  ;;  %890 = vmatpush.msra.mxu1 %v3346_v5 }
 0x7cb   :  { %v2933_v7 = vpop.eup %2932 }
 0x7cc   :  { %v374_v8 = vadd.f32 1.0, %v2933_v7 }
 0x7ce   :  { %2934 = vrcp.f32 %v374_v8  ;;  %v386_v11 = vand.u32 2147483648, %v374_v8  ;;  %v384_v13 = vand.u32 2147483647, %v374_v8  ;;  %vm380_vm15 = vweird.f32 %v374_v8 }
 0x7d0   :  { %v387_v15 = vor.u32 1.1754944e-38, %v386_v11  ;;  %vm385_vm9 = vcmp.eq.f32.partialorder %v384_v13, 8.507059e+37 }
 0x7d4   :  { %v2935_v9 = vpop.eup %2934 }
 0x7d5   :  { %v376_v10 = vmul.f32 %v2935_v9, %v374_v8  ;;  %vm381_vm14 = vweird.f32 %v2935_v9 }
 0x7d6   :  { %vm382_vm8 = vmor %vm380_vm15, %vm381_vm14 }
 0x7d7   :  { %v377_v1 = vsub.f32 1.0, %v376_v10 }
 0x7d9   :  { %v378_v12 = vmul.f32 %v2935_v9, %v377_v1 }
 0x7db   :  { %v379_v14 = vadd.f32 %v2935_v9, %v378_v12 }
 0x7dd   :  { %v383_v16 = vsel %vm382_vm8, %v2935_v9, %v379_v14  ;;  %v3368_v9 = vld [vmem:[#allocation5 + $0x78] ss:$0 sm:$0xff] }
 0x7de   :  { %v388_v17 = vsel %vm385_vm9, %v387_v15, %v383_v16 }
 0x7df   :  { %v390_v41 = vmul.f32 2.0, %v388_v17  ;;  %v395_v22 = vmul.f32 %v393_v21, %v388_v17 }
 0x7e1   :  { %v2795_v18 = vadd.f32 -1.0, %v390_v41 }
 0x7e3   :  { %397 = vrot.lane.b32.xlu0 %v2795_v18, %s3223_s0 }
 0x855   :  { %v398_v19 = vpop.permute.xlu0 %397 }
 0x856   :  { %v400_v20 = vmul.f32 %v398_v19, %v388_v17 }
 0x858   :  { %402 = vrot.lane.b32.xlu1 %v400_v20, %s3224_s1 }
 0x8ca   :  { %v403_v23 = vpop.permute.xlu1 %402 }
 0x8cb   :  { %v405_v24 = vadd.f32 %v403_v23, %v395_v22 }
 0x8cd   :  { %2936 = vtanh.f32 %v405_v24  ;;  %v461_v57 = vrot.slane %v405_v24, 6 }
 0x8d3   :  { %v2937_v25 = vpop.eup %2936 }
 0x8d4   :  { %408 = vrot.lane.b32.xlu2 %v2937_v25, %s3223_s0 }
 0x92e   :  { %v409_v26 = vpop.permute.xlu2 %408 }
 0x92f   :  { %v411_v27 = vmul.f32 %v409_v26, %v388_v17 }
 0x931   :  { %v413_v28 = vrot.slane %v411_v27, 6  ;;  %v694_v29 = vsel %vm89_vm5, %v693_v0, %v411_v27 }
 0x933   :  { %414 = vrot.lane.b32.xlu0 %v413_v28, %s3224_s1 }
 0x9a5   :  { %v415_v30 = vpop.permute.xlu0 %414 }
 0x9a6   :  { %2796 = vmatmul.msk.f32.vlgmr.msrb.gmra.mxu2 %vm138_vm12, %v415_v30 }
 0x9a7   :  { %1167 = vmatpush.msrb.mxu2 %v3334_v2 }
 0x9a9   :  { %1168 = vmatpush.msrb.mxu2 %v3336_v3 }
 0x9ab   :  { %1169 = vmatpush.msrb.mxu2 %v3340_v4 }
 0x9ad   :  { %1170 = vmatpush.msrb.mxu2 %v3346_v5 }
 0xa29   :  { %v435_v31 = vpop.f32.mrf.mxu2 }
 0xa2a   :  { %v438_v32 = vadd.f32 %v435_v31, %v3286_v39 }
 0xa2c   :  { %v2797_v33 = vmul.f32 -1.442695, %v438_v32 }
 0xa2e   :  { %2938 = vpow2.f32 %v2797_v33 }
 0xa34   :  { %v2939_v34 = vpop.eup %2938 }
 0xa35   :  { %v442_v35 = vadd.f32 1.0, %v2939_v34 }
 0xa37   :  { %2940 = vrcp.f32 %v442_v35  ;;  %v454_v42 = vand.u32 2147483648, %v442_v35  ;;  %v452_v44 = vand.u32 2147483647, %v442_v35  ;;  %vm448_vm11 = vweird.f32 %v442_v35 }
 0xa39   :  { %v455_v46 = vor.u32 1.1754944e-38, %v454_v42  ;;  %vm453_vm14 = vcmp.eq.f32.partialorder %v452_v44, 8.507059e+37 }
 0xa3d   :  { %v2941_v37 = vpop.eup %2940 }
 0xa3e   :  { %v444_v38 = vmul.f32 %v2941_v37, %v442_v35  ;;  %vm449_vm10 = vweird.f32 %v2941_v37 }
 0xa3f   :  { %vm450_vm13 = vmor %vm448_vm11, %vm449_vm10 }
 0xa40   :  { %v445_v40 = vsub.f32 1.0, %v444_v38 }
 0xa42   :  { %v446_v43 = vmul.f32 %v2941_v37, %v445_v40 }
 0xa44   :  { %v447_v45 = vadd.f32 %v2941_v37, %v446_v43 }
 0xa46   :  { %v451_v47 = vsel %vm450_vm13, %v2941_v37, %v447_v45 }
 0xa47   :  { %v456_v48 = vsel %vm453_vm14, %v455_v46, %v451_v47 }
 0xa48   :  { %v458_v49 = vmul.f32 2.0, %v456_v48  ;;  %v463_v58 = vmul.f32 %v461_v57, %v456_v48 }
 0xa4a   :  { %v2798_v50 = vadd.f32 -1.0, %v458_v49 }
 0xa4c   :  { %465 = vrot.lane.b32.xlu1 %v2798_v50, %s3223_s0 }
 0xabe   :  { %v466_v51 = vpop.permute.xlu1 %465 }
 0xabf   :  { %v468_v52 = vmul.f32 %v466_v51, %v456_v48 }
 0xac1   :  { %470 = vrot.lane.b32.xlu2 %v468_v52, %s3224_s1 }
 0xac9   :  { %710 = vrot.lane.b32.xlu2 %v694_v29, %s3224_s1 }
 0xb1b   :  { %v471_v59 = vpop.permute.xlu2 %470 }
 0xb1c   :  { %v3325_v60 = vadd.f32 %v471_v59, %v463_v58 }
 0xb1e   :  { %2942 = vtanh.f32 %v3325_v60  ;;  %v531_v50 = vrot.slane %v3325_v60, 6 }
 0xb23   :  { %v711_v61 = vpop.permute.xlu2 %710 }
 0xb24   :  { %v2943_v62 = vpop.eup %2942  ;;  %2808 = vmatmul.msk.f32.vlgmr.msra.gmra.mxu2 %vm138_vm12, %v711_v61 }
 0xb25   :  { %476 = vrot.lane.b32.xlu0 %v2943_v62, %s3223_s0 }
 0xb97   :  { %v477_v63 = vpop.permute.xlu0 %476 }
 0xb98   :  { %v3330_v0 = vmul.f32 %v477_v63, %v456_v48 }
 0xb9a   :  { %481 = vrot.lane.b32.xlu1 %v3330_v0, %s3224_s1 }
 0xba7   :  { %v735_v1 = vpop.f32.mrf.mxu2 }
 0xba8   :  { %v3372_v12 = vadd.f32 %v3368_v9, %v735_v1 }
 0xc0c   :  { %v482_v6 = vpop.permute.xlu1 %481 }
 0xc0d   :  { %2799 = vmatmul.msk.f32.vlgmr.msrb.gmra.mxu3 %vm138_vm12, %v482_v6 }
 0xc0e   :  { %958 = vmatpush.msrb.mxu3 %v3334_v2 }
 0xc10   :  { %959 = vmatpush.msrb.mxu3 %v3336_v3 }
 0xc12   :  { %960 = vmatpush.msrb.mxu3 %v3340_v4 }
 0xc14   :  { %961 = vmatpush.msrb.mxu3 %v3346_v5 }
 0xc15   :  { %757 = vmatmul.f32.vlgmr.msra.gmra.mxu3 %v3222_v36 }
 0xc16   :  { %1238 = vmatpush.msra.mxu3 %v3334_v2 }
 0xc18   :  { %1239 = vmatpush.msra.mxu3 %v3336_v3 }
 0xc1a   :  { %1240 = vmatpush.msra.mxu3 %v3340_v4 }
 0xc1c   :  { %1241 = vmatpush.msra.mxu3 %v3346_v5 }
 0xc90   :  { %v502_v7 = vpop.f32.mrf.mxu3 }
 0xc91   :  { %v506_v8 = vrot.slane %v502_v7, 6 }
 0xc93   :  { %v508_v10 = vadd.f32 %v506_v8, %v3286_v39 }
 0xc95   :  { %v2800_v11 = vmul.f32 -1.442695, %v508_v10 }
 0xc97   :  { %2944 = vpow2.f32 %v2800_v11 }
 0xc98   :  { %v758_v13 = vpop.f32.mrf.mxu3 }
 0xc99   :  { %v761_v14 = vadd.f32 %v758_v13, %v3372_v12 }
 0xc9b   :  { %v2810_v15 = vmul.f32 -1.442695, %v761_v14 }
 0xc9d   :  { %v2945_v16 = vpop.eup %2944  ;;  %2946 = vpow2.f32 %v2810_v15 }
 0xc9e   :  { %v512_v17 = vadd.f32 1.0, %v2945_v16 }
 0xca0   :  { %2948 = vrcp.f32 %v512_v17  ;;  %v524_v22 = vand.u32 2147483648, %v512_v17  ;;  %v522_v24 = vand.u32 2147483647, %v512_v17  ;;  %vm518_vm8 = vweird.f32 %v512_v17 }
 0xca2   :  { %v525_v28 = vor.u32 1.1754944e-38, %v524_v22  ;;  %vm523_vm10 = vcmp.eq.f32.partialorder %v522_v24, 8.507059e+37 }
 0xca3   :  { %v2947_v41 = vpop.eup %2946 }
 0xca4   :  { %v765_v18 = vadd.f32 1.0, %v2947_v41 }
 0xca6   :  { %v2949_v19 = vpop.eup %2948  ;;  %2950 = vrcp.f32 %v765_v18  ;;  %v777_v32 = vand.u32 2147483648, %v765_v18  ;;  %v775_v35 = vand.u32 2147483647, %v765_v18  ;;  %vm771_vm13 = vweird.f32 %v765_v18 }
 0xca7   :  { %v514_v20 = vmul.f32 %v2949_v19, %v512_v17  ;;  %vm519_vm15 = vweird.f32 %v2949_v19 }
 0xca8   :  { %vm520_vm9 = vmor %vm518_vm8, %vm519_vm15  ;;  %v778_v40 = vor.u32 1.1754944e-38, %v777_v32  ;;  %vm776_vm7 = vcmp.eq.f32.partialorder %v775_v35, 8.507059e+37 }
 0xca9   :  { %v515_v21 = vsub.f32 1.0, %v514_v20 }
 0xcab   :  { %v516_v23 = vmul.f32 %v2949_v19, %v515_v21 }
 0xcac   :  { %v2951_v25 = vpop.eup %2950 }
 0xcad   :  { %v767_v26 = vmul.f32 %v2951_v25, %v765_v18  ;;  %v517_v27 = vadd.f32 %v2949_v19, %v516_v23  ;;  %vm772_vm11 = vweird.f32 %v2951_v25 }
 0xcae   :  { %vm773_vm14 = vmor %vm771_vm13, %vm772_vm11 }
 0xcaf   :  { %v768_v29 = vsub.f32 1.0, %v767_v26  ;;  %v521_v30 = vsel %vm520_vm9, %v2949_v19, %v517_v27 }
 0xcb0   :  { %v526_v31 = vsel %vm523_vm10, %v525_v28, %v521_v30 }
 0xcb1   :  { %v528_v33 = vmul.f32 2.0, %v526_v31  ;;  %v769_v34 = vmul.f32 %v2951_v25, %v768_v29  ;;  %v533_v51 = vmul.f32 %v531_v50, %v526_v31 }
 0xcb3   :  { %v2801_v37 = vadd.f32 -1.0, %v528_v33  ;;  %v770_v38 = vadd.f32 %v2951_v25, %v769_v34 }
 0xcb5   :  { %535 = vrot.lane.b32.xlu0 %v2801_v37, %s3223_s0  ;;  %v774_v42 = vsel %vm773_vm14, %v2951_v25, %v770_v38 }
 0xcb6   :  { %v779_v43 = vsel %vm776_vm7, %v778_v40, %v774_v42 }
 0xcb7   :  { %v781_v44 = vmul.f32 2.0, %v779_v43 }
 0xcb9   :  { %v2811_v45 = vadd.f32 -1.0, %v781_v44 }
 0xcbb   :  { %784 = vrot.lane.b32.xlu1 %v2811_v45, %s3223_s0 }
 0xd27   :  { %v536_v46 = vpop.permute.xlu0 %535 }
 0xd28   :  { %v538_v47 = vmul.f32 %v536_v46, %v526_v31 }
 0xd2a   :  { %540 = vrot.lane.b32.xlu2 %v538_v47, %s3224_s1 }
 0xd2d   :  { %v785_v48 = vpop.permute.xlu1 %784 }
 0xd2e   :  { %v787_v49 = vmul.f32 %v785_v48, %v779_v43 }
 0xd30   :  { %789 = vrot.lane.b32.xlu0 %v787_v49, %s3224_s1 }
 0xd84   :  { %v541_v52 = vpop.permute.xlu2 %540 }
 0xd85   :  { %v3380_v53 = vadd.f32 %v541_v52, %v533_v51 }
 0xd87   :  { %2952 = vtanh.f32 %v3380_v53  ;;  %v602_v50 = vrot.slane %v3380_v53, 6 }
 0xd8d   :  { %v2953_v54 = vpop.eup %2952 }
 0xd8e   :  { %546 = vrot.lane.b32.xlu1 %v2953_v54, %s3223_s0 }
 0xda2   :  { %v790_v55 = vpop.permute.xlu0 %789 }
 0xda3   :  { %v3384_v56 = vadd.f32 %v790_v55, %v779_v43 }
 0xda5   :  { %2954 = vtanh.f32 %v3384_v56  ;;  %v850_v55 = vrot.slane %v3384_v56, 6 }
 0xdab   :  { %v2955_v57 = vpop.eup %2954 }
 0xdac   :  { %795 = vrot.lane.b32.xlu2 %v2955_v57, %s3223_s0 }
 0xe00   :  { %v547_v58 = vpop.permute.xlu1 %546 }
 0xe01   :  { %v3388_v59 = vmul.f32 %v547_v58, %v526_v31 }
 0xe03   :  { %v551_v60 = vrot.slane %v3388_v59, 2 }
 0xe05   :  { %552 = vrot.lane.b32.xlu0 %v551_v60, %s3224_s1 }
 0xe06   :  { %v796_v61 = vpop.permute.xlu2 %795 }
 0xe07   :  { %v3392_v62 = vmul.f32 %v796_v61, %v779_v43 }
 0xe09   :  { %800 = vrot.lane.b32.xlu1 %v3392_v62, %s3224_s1 }
 0xe77   :  { %v553_v63 = vpop.permute.xlu0 %552 }
 0xe78   :  { %2802 = vmatmul.msk.f32.vlgmr.msrb.gmra.mxu0 %vm138_vm12, %v553_v63 }
 0xe79   :  { %1029 = vmatpush.msrb.mxu0 %v3334_v2 }
 0xe7b   :  { %1030 = vmatpush.msrb.mxu0 %v3336_v3  ;;  %v801_v6 = vpop.permute.xlu1 %800 }
 0xe7d   :  { %1031 = vmatpush.msrb.mxu0 %v3340_v4 }
 0xe7f   :  { %1032 = vmatpush.msrb.mxu0 %v3346_v5 }
 0xe80   :  { %2812 = vmatmul.msk.f32.vlgmr.msra.gmra.mxu0 %vm138_vm12, %v801_v6 }
 0xef5   :  { %v573_v7 = vpop.f32.mrf.mxu0 }
 0xef6   :  { %v577_v8 = vrot.slane %v573_v7, 4  ;;  %v695_v7 = vsel %vm81_vm1, %v3330_v0, %v3388_v59 }
 0xef8   :  { %v579_v10 = vadd.f32 %v577_v8, %v3286_v39 }
 0xefa   :  { %v2803_v1 = vmul.f32 -1.442695, %v579_v10 }
 0xefc   :  { %2956 = vpow2.f32 %v2803_v1 }
 0xefd   :  { %v821_v11 = vpop.f32.mrf.mxu0 }
 0xefe   :  { %v825_v13 = vrot.slane %v821_v11, 6 }
 0xf00   :  { %v827_v14 = vadd.f32 %v825_v13, %v3372_v12 }
 0xf02   :  { %v2957_v15 = vpop.eup %2956  ;;  %v2813_v16 = vmul.f32 -1.442695, %v827_v14 }
 0xf03   :  { %v583_v17 = vadd.f32 1.0, %v2957_v15 }
 0xf04   :  { %2958 = vpow2.f32 %v2813_v16 }
 0xf05   :  { %2960 = vrcp.f32 %v583_v17  ;;  %v595_v22 = vand.u32 2147483648, %v583_v17  ;;  %v593_v24 = vand.u32 2147483647, %v583_v17  ;;  %vm589_vm15 = vweird.f32 %v583_v17 }
 0xf07   :  { %v596_v27 = vor.u32 1.1754944e-38, %v595_v22  ;;  %vm594_vm9 = vcmp.eq.f32.partialorder %v593_v24, 8.507059e+37 }
 0xf0a   :  { %v2959_v41 = vpop.eup %2958 }
 0xf0b   :  { %v2961_v18 = vpop.eup %2960  ;;  %v831_v19 = vadd.f32 1.0, %v2959_v41 }
 0xf0c   :  { %v585_v20 = vmul.f32 %v2961_v18, %v583_v17  ;;  %vm590_vm7 = vweird.f32 %v2961_v18 }
 0xf0d   :  { %2962 = vrcp.f32 %v831_v19  ;;  %vm591_vm8 = vmor %vm589_vm15, %vm590_vm7  ;;  %v843_v33 = vand.u32 2147483648, %v831_v19  ;;  %v841_v37 = vand.u32 2147483647, %v831_v19  ;;  %vm837_vm11 = vweird.f32 %v831_v19 }
 0xf0e   :  { %v586_v21 = vsub.f32 1.0, %v585_v20 }
 0xf0f   :  { %v844_v40 = vor.u32 1.1754944e-38, %v843_v33  ;;  %vm842_vm14 = vcmp.eq.f32.partialorder %v841_v37, 8.507059e+37 }
 0xf10   :  { %v587_v23 = vmul.f32 %v2961_v18, %v586_v21 }
 0xf12   :  { %v588_v25 = vadd.f32 %v2961_v18, %v587_v23 }
 0xf13   :  { %v2963_v26 = vpop.eup %2962 }
 0xf14   :  { %v833_v28 = vmul.f32 %v2963_v26, %v831_v19  ;;  %v592_v29 = vsel %vm591_vm8, %v2961_v18, %v588_v25  ;;  %vm838_vm10 = vweird.f32 %v2963_v26 }
 0xf15   :  { %v597_v30 = vsel %vm594_vm9, %v596_v27, %v592_v29  ;;  %vm839_vm13 = vmor %vm837_vm11, %vm838_vm10 }
 0xf16   :  { %v834_v31 = vsub.f32 1.0, %v833_v28  ;;  %v599_v32 = vmul.f32 2.0, %v597_v30  ;;  %v604_v51 = vmul.f32 %v602_v50, %v597_v30 }
 0xf18   :  { %v2804_v34 = vadd.f32 -1.0, %v599_v32  ;;  %v835_v35 = vmul.f32 %v2963_v26, %v834_v31 }
 0xf1a   :  { %606 = vrot.lane.b32.xlu2 %v2804_v34, %s3223_s0  ;;  %v836_v38 = vadd.f32 %v2963_v26, %v835_v35 }
 0xf1c   :  { %v840_v42 = vsel %vm839_vm13, %v2963_v26, %v836_v38 }
 0xf1d   :  { %v845_v43 = vsel %vm842_vm14, %v844_v40, %v840_v42 }
 0xf1e   :  { %v847_v44 = vmul.f32 2.0, %v845_v43  ;;  %v852_v57 = vmul.f32 %v850_v55, %v845_v43 }
 0xf20   :  { %v2814_v45 = vadd.f32 -1.0, %v847_v44 }
 0xf22   :  { %854 = vrot.lane.b32.xlu0 %v2814_v45, %s3223_s0 }
 0xf74   :  { %v607_v46 = vpop.permute.xlu2 %606 }
 0xf75   :  { %v609_v47 = vmul.f32 %v607_v46, %v597_v30 }
 0xf77   :  { %611 = vrot.lane.b32.xlu1 %v609_v47, %s3224_s1 }
 0xf94   :  { %v855_v48 = vpop.permute.xlu0 %854 }
 0xf95   :  { %v857_v49 = vmul.f32 %v855_v48, %v845_v43 }
 0xf97   :  { %859 = vrot.lane.b32.xlu2 %v857_v49, %s3224_s1 }
 0xfe9   :  { %v612_v52 = vpop.permute.xlu1 %611 }
 0xfea   :  { %v3409_v54 = vadd.f32 %v612_v52, %v604_v51 }
 0xfec   :  { %2964 = vtanh.f32 %v3409_v54 }
 0xff1   :  { %v860_v58 = vpop.permute.xlu2 %859 }
 0xff2   :  { %v2965_v60 = vpop.eup %2964  ;;  %v3413_v61 = vadd.f32 %v860_v58, %v852_v57 }
 0xff3   :  { %617 = vrot.lane.b32.xlu0 %v2965_v60, %s3223_s0 }
 0xff4   :  { %2966 = vtanh.f32 %v3413_v61  ;;  %v921_v48 = vrot.slane %v3413_v61, 6 }
 0xffa   :  { %v2967_v63 = vpop.eup %2966 }
 0xffb   :  { %865 = vrot.lane.b32.xlu1 %v2967_v63, %s3223_s0 }
0x1065   :  { %v618_v53 = vpop.permute.xlu0 %617 }
0x1066   :  { %v620_v6 = vmul.f32 %v618_v53, %v597_v30 }
0x1068   :  { %v622_v8 = vrot.slane %v620_v6, 4  ;;  %v3422_v56 = vsel %vm85_vm3, %v695_v7, %v620_v6 }
0x106a   :  { %623 = vrot.lane.b32.xlu2 %v622_v8, %s3224_s1 }
0x106d   :  { %v866_v10 = vpop.permute.xlu1 %865 }
0x106e   :  { %v3425_v1 = vmul.f32 %v866_v10, %v845_v43 }
0x1070   :  { %v870_v11 = vrot.slane %v3425_v1, 2  ;;  %v1291_v58 = vsel %vm81_vm1, %v3392_v62, %v3425_v1 }
0x1072   :  { %871 = vrot.lane.b32.xlu0 %v870_v11, %s3224_s1 }
0x10c4   :  { %v624_v13 = vpop.permute.xlu2 %623 }
0x10c5   :  { %2805 = vmatmul.msk.f32.vlgmr.msrb.gmra.mxu1 %vm138_vm12, %v624_v13 }
0x10c6   :  { %1096 = vmatpush.msrb.mxu1 %v3334_v2 }
0x10c8   :  { %1097 = vmatpush.msrb.mxu1 %v3336_v3 }
0x10ca   :  { %1098 = vmatpush.msrb.mxu1 %v3340_v4 }
0x10cc   :  { %1099 = vmatpush.msrb.mxu1 %v3346_v5 }
0x10e4   :  { %v872_v0 = vpop.permute.xlu0 %871 }
0x10e5   :  { %2815 = vmatmul.msk.f32.vlgmr.msra.gmra.mxu1 %vm138_vm12, %v872_v0 }
0x1142   :  { %v644_v59 = vpop.f32.mrf.mxu1 }
0x1143   :  { %v648_v27 = vrot.slane %v644_v59, 2 }
0x1145   :  { %v650_v28 = vadd.f32 %v648_v27, %v3286_v39 }
0x1147   :  { %v2806_v29 = vmul.f32 -1.442695, %v650_v28 }
0x1162   :  { %v892_v14 = vpop.f32.mrf.mxu1 }
0x1163   :  { %v896_v15 = vrot.slane %v892_v14, 4 }
0x1165   :  { %v898_v16 = vadd.f32 %v896_v15, %v3372_v12 }
0x1167   :  { %v2816_v17 = vmul.f32 -1.442695, %v898_v16 }
0x1169   :  { %2968 = vpow2.f32 %v2816_v17 }
0x116f   :  { %v2969_v41 = vpop.eup %2968 }
0x1170   :  { %v902_v18 = vadd.f32 1.0, %v2969_v41  ;;  %v673_v41 = vrot.slane %v3409_v54, 6 }
0x1172   :  { %2970 = vrcp.f32 %v902_v18  ;;  %v914_v20 = vand.u32 2147483648, %v902_v18  ;;  %v912_v5 = vand.u32 2147483647, %v902_v18  ;;  %vm908_vm15 = vweird.f32 %v902_v18 }
0x1173   :  { %2972 = vpow2.f32 %v2806_v29 }
0x1174   :  { %v915_v22 = vor.u32 1.1754944e-38, %v914_v20  ;;  %vm913_vm9 = vcmp.eq.f32.partialorder %v912_v5, 8.507059e+37 }
0x1178   :  { %v2971_v2 = vpop.eup %2970 }
0x1179   :  { %v904_v19 = vmul.f32 %v2971_v2, %v902_v18  ;;  %vm909_vm7 = vweird.f32 %v2971_v2  ;;  %v2973_v30 = vpop.eup %2972 }
0x117a   :  { %vm910_vm8 = vmor %vm908_vm15, %vm909_vm7  ;;  %v654_v31 = vadd.f32 1.0, %v2973_v30 }
0x117b   :  { %v905_v3 = vsub.f32 1.0, %v904_v19 }
0x117c   :  { %2974 = vrcp.f32 %v654_v31  ;;  %v666_v38 = vand.u32 2147483648, %v654_v31  ;;  %vm660_vm11 = vweird.f32 %v654_v31  ;;  %v664_v40 = vand.u32 2147483647, %v654_v31 }
0x117d   :  { %v906_v4 = vmul.f32 %v2971_v2, %v905_v3 }
0x117e   :  { %v667_v44 = vor.u32 1.1754944e-38, %v666_v38  ;;  %vm665_vm14 = vcmp.eq.f32.partialorder %v664_v40, 8.507059e+37 }
0x117f   :  { %v907_v21 = vadd.f32 %v2971_v2, %v906_v4 }
0x1181   :  { %v911_v23 = vsel %vm910_vm8, %v2971_v2, %v907_v21 }
0x1182   :  { %v916_v24 = vsel %vm913_vm9, %v915_v22, %v911_v23  ;;  %v2975_v32 = vpop.eup %2974 }
0x1183   :  { %v918_v25 = vmul.f32 2.0, %v916_v24  ;;  %v656_v33 = vmul.f32 %v2975_v32, %v654_v31  ;;  %vm661_vm10 = vweird.f32 %v2975_v32  ;;  %v923_v49 = vmul.f32 %v921_v48, %v916_v24 }
0x1184   :  { %vm662_vm13 = vmor %vm660_vm11, %vm661_vm10 }
0x1185   :  { %v2817_v26 = vadd.f32 -1.0, %v918_v25  ;;  %v657_v34 = vsub.f32 1.0, %v656_v33 }
0x1187   :  { %925 = vrot.lane.b32.xlu1 %v2817_v26, %s3223_s0  ;;  %v658_v35 = vmul.f32 %v2975_v32, %v657_v34 }
0x1189   :  { %v659_v37 = vadd.f32 %v2975_v32, %v658_v35 }
0x118b   :  { %v663_v42 = vsel %vm662_vm13, %v2975_v32, %v659_v37 }
0x118c   :  { %v668_v39 = vsel %vm665_vm14, %v667_v44, %v663_v42 }
0x118d   :  { %v670_v46 = vmul.f32 2.0, %v668_v39  ;;  %v675_v19 = vmul.f32 %v673_v41, %v668_v39 }
0x118f   :  { %v2807_v47 = vadd.f32 -1.0, %v670_v46 }
0x11f9   :  { %v926_v43 = vpop.permute.xlu1 %925 }
0x11fa   :  { %v928_v45 = vmul.f32 %v926_v43, %v916_v24 }
0x11fc   :  { %930 = vrot.lane.b32.xlu2 %v928_v45, %s3224_s1 }
0x1204   :  { %677 = vrot.lane.b32.xlu2 %v2807_v47, %s3223_s0 }
0x1256   :  { %v931_v50 = vpop.permute.xlu2 %930 }
0x1257   :  { %v933_v51 = vadd.f32 %v931_v50, %v923_v49 }
0x1259   :  { %2976 = vtanh.f32 %v933_v51  ;;  %v992_v26 = vrot.slane %v933_v51, 6 }
0x125e   :  { %v678_v53 = vpop.permute.xlu2 %677 }
0x125f   :  { %v2977_v52 = vpop.eup %2976  ;;  %v680_v61 = vmul.f32 %v678_v53, %v668_v39 }
0x1260   :  { %936 = vrot.lane.b32.xlu0 %v2977_v52, %s3223_s0 }
0x12d2   :  { %v937_v55 = vpop.permute.xlu0 %936 }
0x12d3   :  { %v939_v57 = vmul.f32 %v937_v55, %v916_v24 }
0x12d5   :  { %v941_v60 = vrot.slane %v939_v57, 4  ;;  %v1292_v63 = vsel %vm85_vm3, %v1291_v58, %v939_v57 }
0x12d7   :  { %942 = vrot.lane.b32.xlu1 %v941_v60, %s3224_s1 }
0x12df   :  { %682 = vrot.lane.b32.xlu1 %v680_v61, %s3224_s1 }
0x1349   :  { %v943_v6 = vpop.permute.xlu1 %942 }
0x134a   :  { %2818 = vmatmul.msk.f32.vlgmr.msrb.gmra.mxu3 %vm138_vm12, %v943_v6 }
0x1351   :  { %v683_v2 = vpop.permute.xlu1 %682 }
0x1352   :  { %v685_v4 = vadd.f32 %v683_v2, %v675_v19 }
0x13cd   :  { %v963_v7 = vpop.f32.mrf.mxu3 }
0x13ce   :  { %v967_v8 = vrot.slane %v963_v7, 2 }
0x13d0   :  { %v969_v10 = vadd.f32 %v967_v8, %v3372_v12 }
0x13d2   :  { %v2819_v11 = vmul.f32 -1.442695, %v969_v10 }
0x13d4   :  { %2978 = vpow2.f32 %v2819_v11 }
0x13da   :  { %v2979_v13 = vpop.eup %2978 }
0x13db   :  { %v973_v62 = vadd.f32 1.0, %v2979_v13 }
0x13dd   :  { %2980 = vrcp.f32 %v973_v62  ;;  %v985_v14 = vand.u32 2147483648, %v973_v62  ;;  %v983_v16 = vand.u32 2147483647, %v973_v62  ;;  %vm979_vm15 = vweird.f32 %v973_v62 }
0x13de   :  { %2982 = vtanh.f32 %v685_v4 }
0x13df   :  { %v986_v18 = vor.u32 1.1754944e-38, %v985_v14  ;;  %vm984_vm9 = vcmp.eq.f32.partialorder %v983_v16, 8.507059e+37 }
0x13e3   :  { %v2981_v1 = vpop.eup %2980 }
0x13e4   :  { %v975_v0 = vmul.f32 %v2981_v1, %v973_v62  ;;  %vm980_vm7 = vweird.f32 %v2981_v1  ;;  %v2983_v21 = vpop.eup %2982 }
0x13e5   :  { %vm981_vm8 = vmor %vm979_vm15, %vm980_vm7 }
0x13e6   :  { %v976_v59 = vsub.f32 1.0, %v975_v0 }
0x13e8   :  { %v977_v15 = vmul.f32 %v2981_v1, %v976_v59 }
0x13ea   :  { %v978_v17 = vadd.f32 %v2981_v1, %v977_v15 }
0x13ec   :  { %v982_v12 = vsel %vm981_vm8, %v2981_v1, %v978_v17 }
0x13ed   :  { %v987_v3 = vsel %vm984_vm9, %v986_v18, %v982_v12 }
0x13ee   :  { %v989_v20 = vmul.f32 2.0, %v987_v3  ;;  %v994_v27 = vmul.f32 %v992_v26, %v987_v3 }
0x13f0   :  { %v2820_v5 = vadd.f32 -1.0, %v989_v20 }
0x13f2   :  { %996 = vrot.lane.b32.xlu0 %v2820_v5, %s3223_s0 }
0x13fa   :  { %688 = vrot.lane.b32.xlu0 %v2983_v21, %s3223_s0 }
0x1464   :  { %v997_v22 = vpop.permute.xlu0 %996 }
0x1465   :  { %v999_v23 = vmul.f32 %v997_v22, %v987_v3 }
0x1467   :  { %1001 = vrot.lane.b32.xlu2 %v999_v23, %s3224_s1 }
0x146c   :  { %v689_v54 = vpop.permute.xlu0 %688 }
0x146d   :  { %v691_v24 = vmul.f32 %v689_v54, %v668_v39 }
0x146f   :  { %v697_v25 = vsel %vm89_vm5, %v3422_v56, %v691_v24 }
0x1470   :  { %712 = vrot.lane.b32.xlu2 %v697_v25, %s3224_s1 }
0x14c1   :  { %v1002_v28 = vpop.permute.xlu2 %1001 }
0x14c2   :  { %v1004_v29 = vadd.f32 %v1002_v28, %v994_v27 }
0x14c4   :  { %2984 = vtanh.f32 %v1004_v29  ;;  %v1060_v53 = vrot.slane %v1004_v29, 6 }
0x14ca   :  { %v2985_v30 = vpop.eup %2984  ;;  %v713_v31 = vpop.permute.xlu2 %712 }
0x14cb   :  { %1007 = vrot.lane.b32.xlu1 %v2985_v30, %s3223_s0  ;;  %2809 = vmatmul.msk.f32.gmra.mxu2 %vm138_vm12, %v713_v31  ;;  %v1300_v31 = vld [vmem:[#allocation5 + $0x128] sm:$0xff] }
0x14cc   :  { %1325 = vmatpush.msra.mxu0 %v1300_v31 }
0x153d   :  { %v1008_v32 = vpop.permute.xlu1 %1007 }
0x153e   :  { %v1010_v33 = vmul.f32 %v1008_v32, %v987_v3  ;;  %v1299_v32 = vld [vmem:[#allocation5 + $0x120] sm:$0xff] }
0x153f   :  { %1326 = vmatpush.msra.mxu0 %v1299_v32 }
0x1540   :  { %v1012_v34 = vrot.slane %v1010_v33, 6  ;;  %v3460_v35 = vsel %vm89_vm5, %v1292_v63, %v1010_v33  ;;  %v1298_v33 = vld [vmem:[#allocation5 + $0x118] sm:$0xff] }
0x1541   :  { %1327 = vmatpush.msra.mxu0 %v1298_v33 }
0x1542   :  { %1013 = vrot.lane.b32.xlu0 %v1012_v34, %s3224_s1  ;;  %v1297_v34 = vld [vmem:[#allocation5 + $0x110] sm:$0xff] }
0x1543   :  { %1328 = vmatpush.msra.mxu0 %v1297_v34 }
0x154e   :  { %v738_v37 = vpop.f32.mrf.mxu2 }
0x154f   :  { %v3465_v38 = vadd.f32 %v3368_v9, %v738_v37 }
0x15b4   :  { %v1014_v56 = vpop.permute.xlu0 %1013 }
0x15b5   :  { %2821 = vmatmul.msk.f32.vlgmr.msrb.gmra.mxu0 %vm138_vm12, %v1014_v56 }
0x1632   :  { %v1034_v40 = vpop.f32.mrf.mxu0 }
0x1633   :  { %v1037_v42 = vadd.f32 %v1034_v40, %v3465_v38  ;;  %v1340_v40 = vld [vmem:[#allocation5 + $0x148] sm:$0xff] }
0x1634   :  { %1363 = vmatpush.msra.mxu1 %v1340_v40 }
0x1635   :  { %v2822_v43 = vmul.f32 -1.442695, %v1037_v42  ;;  %v1339_v42 = vld [vmem:[#allocation5 + $0x140] sm:$0xff] }
0x1636   :  { %1364 = vmatpush.msra.mxu1 %v1339_v42 }
0x1637   :  { %2986 = vpow2.f32 %v2822_v43  ;;  %v1338_v43 = vld [vmem:[#allocation5 + $0x138] sm:$0xff] }
0x1638   :  { %1365 = vmatpush.msra.mxu1 %v1338_v43 }
0x163d   :  { %v2987_v44 = vpop.eup %2986 }
0x163e   :  { %v1041_v45 = vadd.f32 1.0, %v2987_v44 }
0x1640   :  { %2988 = vrcp.f32 %v1041_v45  ;;  %v1053_v48 = vand.u32 2147483648, %v1041_v45  ;;  %v1051_v50 = vand.u32 2147483647, %v1041_v45  ;;  %vm1047_vm11 = vweird.f32 %v1041_v45 }
0x1642   :  { %v1054_v9 = vor.u32 1.1754944e-38, %v1053_v48  ;;  %vm1052_vm14 = vcmp.eq.f32.partialorder %v1051_v50, 8.507059e+37 }
0x1646   :  { %v2989_v39 = vpop.eup %2988 }
0x1647   :  { %v1043_v46 = vmul.f32 %v2989_v39, %v1041_v45  ;;  %vm1048_vm10 = vweird.f32 %v2989_v39 }
0x1648   :  { %vm1049_vm13 = vmor %vm1047_vm11, %vm1048_vm10  ;;  %vm1343_vm10 = vcmask 195584  }
0x1649   :  { %v1044_v47 = vsub.f32 1.0, %v1043_v46 }
0x164b   :  { %v1045_v49 = vmul.f32 %v2989_v39, %v1044_v47 }
0x164d   :  { %v1046_v51 = vadd.f32 %v2989_v39, %v1045_v49 }
0x164f   :  { %v1050_v52 = vsel %vm1049_vm13, %v2989_v39, %v1046_v51 }
0x1650   :  { %v1055_v55 = vsel %vm1052_vm14, %v1054_v9, %v1050_v52 }
0x1651   :  { %v1057_v57 = vmul.f32 2.0, %v1055_v55  ;;  %v1062_v61 = vmul.f32 %v1060_v53, %v1055_v55 }
0x1653   :  { %v2823_v58 = vadd.f32 -1.0, %v1057_v57 }
0x1655   :  { %1064 = vrot.lane.b32.xlu1 %v2823_v58, %s3223_s0 }
0x16c7   :  { %v1065_v60 = vpop.permute.xlu1 %1064 }
0x16c8   :  { %v1067_v63 = vmul.f32 %v1065_v60, %v1055_v55 }
0x16ca   :  { %1069 = vrot.lane.b32.xlu2 %v1067_v63, %s3224_s1 }
0x1724   :  { %v1070_v6 = vpop.permute.xlu2 %1069 }
0x1725   :  { %v1072_v7 = vadd.f32 %v1070_v6, %v1062_v61 }
0x1727   :  { %2990 = vtanh.f32 %v1072_v7  ;;  %v1130_v54 = vrot.slane %v1072_v7, 6 }
0x172d   :  { %v2991_v8 = vpop.eup %2990 }
0x172e   :  { %1075 = vrot.lane.b32.xlu0 %v2991_v8, %s3223_s0 }
0x17a0   :  { %v1076_v10 = vpop.permute.xlu0 %1075 }
0x17a1   :  { %v3471_v11 = vmul.f32 %v1076_v10, %v1055_v55  ;;  %v1374_v10 = vld [vmem:[#allocation5 + $0x160] sm:$0x3] }
0x17a2   :  { %2837 = vmatpush.msk.msra.mxu2 %vm81_vm1, %v1374_v10  ;;  %v1452_v10 = vld [vmem:[#allocation5 + $0xb0] sm:$0xff] }
0x17a3   :  { %1080 = vrot.lane.b32.xlu1 %v3471_v11, %s3224_s1 }
0x1815   :  { %v1081_v13 = vpop.permute.xlu1 %1080 }
0x1816   :  { %2824 = vmatmul.msk.f32.vlgmr.msrb.gmra.mxu1 %vm138_vm12, %v1081_v13  ;;  %v1373_v13 = vld [vmem:[#allocation5 + $0x158] sm:$0xff] }
0x1817   :  { %1402 = vmatpush.msra.mxu2 %v1373_v13  ;;  %v1451_v13 = vld [vmem:[#allocation5 + $0xa8] sm:$0xff] }
0x1893   :  { %v1101_v62 = vpop.f32.mrf.mxu1 }
0x1894   :  { %v1105_v1 = vrot.slane %v1101_v62, 6  ;;  %v3498_v62 = vld [vmem:[#allocation5 + $0x150] ss:$0 sm:$0xff] }
0x1896   :  { %v1107_v0 = vadd.f32 %v1105_v1, %v3465_v38 }
0x1898   :  { %v2825_v59 = vmul.f32 -1.442695, %v1107_v0 }
0x189a   :  { %2992 = vpow2.f32 %v2825_v59 }
0x18a0   :  { %v2993_v14 = vpop.eup %2992 }
0x18a1   :  { %v1111_v15 = vadd.f32 1.0, %v2993_v14 }
0x18a3   :  { %2994 = vrcp.f32 %v1111_v15  ;;  %v1123_v18 = vand.u32 2147483648, %v1111_v15  ;;  %v1121_v12 = vand.u32 2147483647, %v1111_v15  ;;  %vm1117_vm15 = vweird.f32 %v1111_v15 }
0x18a5   :  { %v1124_v3 = vor.u32 1.1754944e-38, %v1123_v18  ;;  %vm1122_vm9 = vcmp.eq.f32.partialorder %v1121_v12, 8.507059e+37 }
0x18a9   :  { %v2995_v16 = vpop.eup %2994 }
0x18aa   :  { %v1113_v17 = vmul.f32 %v2995_v16, %v1111_v15  ;;  %vm1118_vm7 = vweird.f32 %v2995_v16 }
0x18ab   :  { %vm1119_vm8 = vmor %vm1117_vm15, %vm1118_vm7  ;;  %vm1377_vm15 = vcmask 80896  }
0x18ac   :  { %v1114_v41 = vsub.f32 1.0, %v1113_v17 }
0x18ae   :  { %v1115_v2 = vmul.f32 %v2995_v16, %v1114_v41 }
0x18b0   :  { %v1116_v19 = vadd.f32 %v2995_v16, %v1115_v2 }
0x18b2   :  { %v1120_v20 = vsel %vm1119_vm8, %v2995_v16, %v1116_v19 }
0x18b3   :  { %v1125_v4 = vsel %vm1122_vm9, %v1124_v3, %v1120_v20 }
0x18b4   :  { %v1127_v5 = vmul.f32 2.0, %v1125_v4  ;;  %v1132_v24 = vmul.f32 %v1130_v54, %v1125_v4 }
0x18b6   :  { %v2826_v21 = vadd.f32 -1.0, %v1127_v5  ;;  %v1413_v5 = vld [vmem:[#allocation5 + $0x178] sm:$0xff] }
0x18b8   :  { %1134 = vrot.lane.b32.xlu2 %v2826_v21, %s3223_s0  ;;  %v1412_v21 = vld [vmem:[#allocation5 + $0x170] sm:$0xff] }
0x1912   :  { %v1135_v22 = vpop.permute.xlu2 %1134 }
0x1913   :  { %v1137_v23 = vmul.f32 %v1135_v22, %v1125_v4  ;;  %v3513_v22 = vld [vmem:[#allocation5 + $0x168] ss:$0 sm:$0xff] }
0x1915   :  { %1139 = vrot.lane.b32.xlu0 %v1137_v23, %s3224_s1 }
0x1987   :  { %v1140_v25 = vpop.permute.xlu0 %1139 }
0x1988   :  { %v3479_v26 = vadd.f32 %v1140_v25, %v1132_v24 }
0x198a   :  { %2996 = vtanh.f32 %v3479_v26  ;;  %v1201_v15 = vrot.slane %v3479_v26, 6 }
0x1990   :  { %v2997_v27 = vpop.eup %2996 }
0x1991   :  { %1145 = vrot.lane.b32.xlu1 %v2997_v27, %s3223_s0 }
0x1a03   :  { %v1146_v28 = vpop.permute.xlu1 %1145 }
0x1a04   :  { %v3483_v29 = vmul.f32 %v1146_v28, %v1125_v4  ;;  %v1414_v4 = vld [vmem:[#allocation5 + $0x180] sm:$0xff] }
0x1a05   :  { %1436 = vmatpush.msrb.mxu3 %v1414_v4  ;;  %v3542_v4 = vld [vmem:[#allocation5 + $0xc0] ss:$0 sm:$0xff] }
0x1a06   :  { %v1150_v30 = vrot.slane %v3483_v29, 2  ;;  %v1294_v19 = vsel %vm81_vm1, %v3471_v11, %v3483_v29 }
0x1a07   :  { %1437 = vmatpush.msrb.mxu3 %v1413_v5 }
0x1a08   :  { %1151 = vrot.lane.b32.xlu2 %v1150_v30, %s3224_s1 }
0x1a09   :  { %1438 = vmatpush.msrb.mxu3 %v1412_v21 }
0x1a10   :  { %1305 = vrot.lane.b32.xlu2 %v3460_v35, %s3224_s1  ;;  %v3491_v35 = vld [vmem:[#allocation5 + $0x130] ss:$0 sm:$0xff] }
0x1a62   :  { %v1152_v56 = vpop.permute.xlu2 %1151 }
0x1a63   :  { %2827 = vmatmul.msk.f32.vlgmr.msrb.gmra.mxu2 %vm138_vm12, %v1152_v56 }
0x1a6a   :  { %v1306_v37 = vpop.permute.xlu2 %1305 }
0x1a6b   :  { %2833 = vmatmul.msk.f32.vlgmr.msra.gmra.mxu0 %vm138_vm12, %v1306_v37 }
0x1ae6   :  { %v1172_v44 = vpop.f32.mrf.mxu2 }
0x1ae7   :  { %v1176_v45 = vrot.slane %v1172_v44, 4 }
0x1ae8   :  { %v1330_v39 = vpop.f32.mrf.mxu0 }
0x1ae9   :  { %v1178_v46 = vadd.f32 %v1176_v45, %v3465_v38  ;;  %v1331_v47 = vadd.f32 %v3491_v35, %v1330_v39 }
0x1aeb   :  { %v2828_v48 = vmul.f32 -1.442695, %v1178_v46  ;;  %2998 = vtanh.f32 %v1331_v47 }
0x1aed   :  { %3000 = vpow2.f32 %v2828_v48 }
0x1af1   :  { %v2999_v49 = vpop.eup %2998 }
0x1af2   :  { %2835 = vmatmul.msk.f32.vlgmr.msra.gmra.mxu1 %vm1343_vm10, %v2999_v49 }
0x1af3   :  { %v3001_v50 = vpop.eup %3000 }
0x1af4   :  { %v1182_v51 = vadd.f32 1.0, %v3001_v50 }
0x1af6   :  { %3002 = vrcp.f32 %v1182_v51  ;;  %v1194_v57 = vand.u32 2147483648, %v1182_v51  ;;  %v1192_v60 = vand.u32 2147483647, %v1182_v51  ;;  %vm1188_vm13 = vweird.f32 %v1182_v51 }
0x1af8   :  { %v1195_v53 = vor.u32 1.1754944e-38, %v1194_v57  ;;  %vm1193_vm7 = vcmp.eq.f32.partialorder %v1192_v60, 8.507059e+37  ;;  %v1449_v57 = vld [vmem:[#allocation5 + $0x98] sm:$0xff]  ;;  %v1447_v60 = vld [vmem:[#allocation5 + $0x88] sm:$0xff] }
0x1af9   :  { %1474 = vmatpush.msrb.mxu0 %v1449_v57 }
0x1afc   :  { %v3003_v9 = vpop.eup %3002 }
0x1afd   :  { %v1184_v52 = vmul.f32 %v3003_v9, %v1182_v51  ;;  %vm1189_vm11 = vweird.f32 %v3003_v9 }
0x1afe   :  { %vm1190_vm14 = vmor %vm1188_vm13, %vm1189_vm11 }
0x1aff   :  { %v1185_v55 = vsub.f32 1.0, %v1184_v52 }
0x1b01   :  { %v1186_v58 = vmul.f32 %v3003_v9, %v1185_v55 }
0x1b03   :  { %v1187_v63 = vadd.f32 %v3003_v9, %v1186_v58  ;;  %v1448_v58 = vld [vmem:[#allocation5 + $0x90] sm:$0xff] }
0x1b04   :  { %1475 = vmatpush.msrb.mxu0 %v1448_v58 }
0x1b05   :  { %v1191_v61 = vsel %vm1190_vm14, %v3003_v9, %v1187_v63  ;;  %v1446_v63 = vld [vmem:[#allocation5 + $0x80] sm:$0xff] }
0x1b06   :  { %v1196_v6 = vsel %vm1193_vm7, %v1195_v53, %v1191_v61  ;;  %1476 = vmatpush.msrb.mxu0 %v1447_v60  ;;  %v3525_v61 = vld [vmem:[#allocation5 + $0x188] ss:$0 sm:$0xff] }
0x1b07   :  { %v1198_v7 = vmul.f32 2.0, %v1196_v6  ;;  %v1203_v16 = vmul.f32 %v1201_v15, %v1196_v6 }
0x1b08   :  { %1477 = vmatpush.msrb.mxu0 %v1446_v63 }
0x1b09   :  { %v2829_v8 = vadd.f32 -1.0, %v1198_v7 }
0x1b0b   :  { %1205 = vrot.lane.b32.xlu0 %v2829_v8, %s3223_s0  ;;  %v1453_v8 = vld [vmem:[#allocation5 + $0xb8] sm:$0xff] }
0x1b0c   :  { %1497 = vmatpush.msrb.mxu1 %v1453_v8  ;;  %1560 = vmatpush.msrb.mxu2 %v1453_v8 }
0x1b0d   :  { %1911 = vmatpush.msra.mxu0 %v1453_v8 }
0x1b0e   :  { %1498 = vmatpush.msrb.mxu1 %v1452_v10  ;;  %1561 = vmatpush.msrb.mxu2 %v1452_v10 }
0x1b0f   :  { %1912 = vmatpush.msra.mxu0 %v1452_v10 }
0x1b10   :  { %1499 = vmatpush.msrb.mxu1 %v1451_v13  ;;  %1562 = vmatpush.msrb.mxu2 %v1451_v13 }
0x1b11   :  { %1913 = vmatpush.msra.mxu0 %v1451_v13 }
0x1b6f   :  { %v1367_v1 = vpop.f32.mrf.mxu1 }
0x1b70   :  { %v3501_v0 = vadd.f32 %v3498_v62, %v1367_v1  ;;  %v1450_v1 = vld [vmem:[#allocation5 + $0xa0] sm:$0xff] }
0x1b71   :  { %1500 = vmatpush.msrb.mxu1 %v1450_v1  ;;  %1563 = vmatpush.msrb.mxu2 %v1450_v1 }
0x1b72   :  { %2838 = vmatmul.msk.f32.vlgmr.msra.gmra.mxu2 %vm1377_vm15, %v3501_v0  ;;  %1914 = vmatpush.msra.mxu0 %v1450_v1 }
0x1b73   :  { %1702 = vmatpush.msra.mxu1 %v1453_v8  ;;  %1773 = vmatpush.msra.mxu2 %v1453_v8 }
0x1b75   :  { %1703 = vmatpush.msra.mxu1 %v1452_v10  ;;  %1774 = vmatpush.msra.mxu2 %v1452_v10 }
0x1b77   :  { %1704 = vmatpush.msra.mxu1 %v1451_v13  ;;  %1775 = vmatpush.msra.mxu2 %v1451_v13 }
0x1b79   :  { %1705 = vmatpush.msra.mxu1 %v1450_v1  ;;  %1776 = vmatpush.msra.mxu2 %v1450_v1 }
0x1b7d   :  { %v1206_v59 = vpop.permute.xlu0 %1205 }
0x1b7e   :  { %v1208_v14 = vmul.f32 %v1206_v59, %v1196_v6 }
0x1b80   :  { %1210 = vrot.lane.b32.xlu1 %v1208_v14, %s3224_s1 }
0x1bf2   :  { %v1211_v17 = vpop.permute.xlu1 %1210 }
0x1bf3   :  { %v1213_v41 = vadd.f32 %v1211_v17, %v1203_v16  ;;  %v2713_v16 = vrot.slane %v3501_v0, 1  ;;  %v2715_v17 = vrot.slane %v3501_v0, 2 }
0x1bf5   :  { %3004 = vtanh.f32 %v1213_v41  ;;  %v1404_v23 = vpop.f32.mrf.mxu2  ;;  %v1272_v47 = vrot.slane %v1213_v41, 6  ;;  %v2717_v41 = vrot.slane %v3501_v0, 3 }
0x1bf6   :  { %v1405_v54 = vadd.f32 %v3513_v22, %v1404_v23 }
0x1bf8   :  { %3006 = vtanh.f32 %v1405_v54 }
0x1bfb   :  { %v3005_v18 = vpop.eup %3004 }
0x1bfc   :  { %1216 = vrot.lane.b32.xlu0 %v3005_v18, %s3223_s0  ;;  %v2729_v18 = vsel %vm79_vm0, %v3501_v0, %v2713_v16 }
0x1bfe   :  { %v3007_v11 = vpop.eup %3006 }
0x1c6e   :  { %v1217_v2 = vpop.permute.xlu0 %1216 }
0x1c6f   :  { %v1219_v12 = vmul.f32 %v1217_v2, %v1196_v6 }
0x1c71   :  { %v1221_v3 = vrot.slane %v1219_v12, 4  ;;  %v1295_v20 = vsel %vm85_vm3, %v1294_v19, %v1219_v12  ;;  %v2730_v19 = vsel %vm81_vm1, %v2729_v18, %v2715_v17 }
0x1c73   :  { %1222 = vrot.lane.b32.xlu1 %v1221_v3, %s3224_s1 }
0x1ce5   :  { %v1223_v24 = vpop.permute.xlu1 %1222 }
0x1ce6   :  { %2830 = vmatmul.msk.f32.vlgmr.msra.gmra.mxu3 %vm138_vm12, %v1223_v24  ;;  %v2731_v24 = vsel %vm83_vm2, %v2730_v19, %v2717_v41 }
0x1ce7   :  { %1631 = vmatpush.msra.mxu3 %v1453_v8 }
0x1ce9   :  { %1632 = vmatpush.msra.mxu3 %v1452_v10 }
0x1ceb   :  { %1633 = vmatpush.msra.mxu3 %v1451_v13 }
0x1ced   :  { %1634 = vmatpush.msra.mxu3 %v1450_v1 }
0x1cee   :  { %2840 = vmatmul.msk.f32.vlgmr.msrb.gmra.mxu3 %vm1343_vm10, %v3007_v11 }
0x1cef   :  { %1840 = vmatpush.msrb.mxu3 %v1453_v8 }
0x1cf1   :  { %1841 = vmatpush.msrb.mxu3 %v1452_v10 }
0x1cf3   :  { %1842 = vmatpush.msrb.mxu3 %v1451_v13 }
0x1cf5   :  { %1843 = vmatpush.msrb.mxu3 %v1450_v1 }
0x1d69   :  { %v1243_v25 = vpop.f32.mrf.mxu3 }
0x1d6a   :  { %v1247_v26 = vrot.slane %v1243_v25, 2 }
0x1d6c   :  { %v1249_v27 = vadd.f32 %v1247_v26, %v3465_v38 }
0x1d6e   :  { %v2831_v28 = vmul.f32 -1.442695, %v1249_v27 }
0x1d70   :  { %3008 = vpow2.f32 %v2831_v28 }
0x1d71   :  { %v1440_v6 = vpop.f32.mrf.mxu3 }
0x1d72   :  { %v1441_v7 = vadd.f32 %v3525_v61, %v1440_v6 }
0x1d76   :  { %v3009_v29 = vpop.eup %3008 }
0x1d77   :  { %v1253_v30 = vadd.f32 1.0, %v3009_v29 }
0x1d79   :  { %3010 = vrcp.f32 %v1253_v30  ;;  %v1265_v34 = vand.u32 2147483648, %v1253_v30  ;;  %v1263_v37 = vand.u32 2147483647, %v1253_v30  ;;  %vm1259_vm9 = vweird.f32 %v1253_v30 }
0x1d7b   :  { %v1266_v42 = vor.u32 1.1754944e-38, %v1265_v34  ;;  %vm1264_vm13 = vcmp.eq.f32.partialorder %v1263_v37, 8.507059e+37 }
0x1d7f   :  { %v3011_v31 = vpop.eup %3010 }
0x1d80   :  { %v1255_v32 = vmul.f32 %v3011_v31, %v1253_v30  ;;  %vm1260_vm8 = vweird.f32 %v3011_v31 }
0x1d81   :  { %vm1261_vm11 = vmor %vm1259_vm9, %vm1260_vm8 }
0x1d82   :  { %v1256_v33 = vsub.f32 1.0, %v1255_v32 }
0x1d84   :  { %v1257_v56 = vmul.f32 %v3011_v31, %v1256_v33 }
0x1d86   :  { %v1258_v40 = vadd.f32 %v3011_v31, %v1257_v56 }
0x1d88   :  { %v1262_v43 = vsel %vm1261_vm11, %v3011_v31, %v1258_v40 }
0x1d89   :  { %v1267_v44 = vsel %vm1264_vm13, %v1266_v42, %v1262_v43 }
0x1d8a   :  { %v1269_v38 = vmul.f32 2.0, %v1267_v44  ;;  %v1274_v48 = vmul.f32 %v1272_v47, %v1267_v44 }
0x1d8c   :  { %v2832_v45 = vadd.f32 -1.0, %v1269_v38 }
0x1d8e   :  { %1276 = vrot.lane.b32.xlu2 %v2832_v45, %s3223_s0 }
0x1de8   :  { %v1277_v39 = vpop.permute.xlu2 %1276 }
0x1de9   :  { %v1279_v46 = vmul.f32 %v1277_v39, %v1267_v44 }
0x1deb   :  { %1281 = vrot.lane.b32.xlu0 %v1279_v46, %s3224_s1 }
0x1e5d   :  { %v1282_v49 = vpop.permute.xlu0 %1281 }
0x1e5e   :  { %v1284_v50 = vadd.f32 %v1282_v49, %v1274_v48 }
0x1e60   :  { %3012 = vtanh.f32 %v1284_v50 }
0x1e66   :  { %v3013_v51 = vpop.eup %3012 }
0x1e67   :  { %1287 = vrot.lane.b32.xlu1 %v3013_v51, %s3223_s0 }
0x1ed9   :  { %v1288_v9 = vpop.permute.xlu1 %1287 }
0x1eda   :  { %v1290_v52 = vmul.f32 %v1288_v9, %v1267_v44 }
0x1edc   :  { %v1296_v55 = vsel %vm89_vm5, %v1295_v20, %v1290_v52  ;;  %v2727_v20 = vrot.slane %v3501_v0, 4 }
0x1edd   :  { %1307 = vrot.lane.b32.xlu2 %v1296_v55, %s3224_s1 }
0x1f37   :  { %v1308_v53 = vpop.permute.xlu2 %1307 }
0x1f38   :  { %2834 = vmatmul.msk.f32.gmra.mxu0 %vm138_vm12, %v1308_v53 }
0x1f40   :  { %2842 = vmatmul.msk.f32.vlgmr.msrb.gmra.mxu0 %vm138_vm12, %v1441_v7 }
0x1fb5   :  { %v1333_v59 = vpop.f32.mrf.mxu0 }
0x1fb6   :  { %v1334_v14 = vadd.f32 %v3491_v35, %v1333_v59  ;;  %v2736_v35 = vsel %vm79_vm0, %v2713_v16, %v2715_v17 }
0x1fb7   :  { %v2737_v3 = vsel %vm81_vm1, %v2736_v35, %v2717_v41 }
0x1fb8   :  { %3014 = vtanh.f32 %v1334_v14  ;;  %v2738_v11 = vsel %vm83_vm2, %v2737_v3, %v2727_v20 }
0x1fbd   :  { %v1479_v54 = vpop.f32.mrf.mxu0 }
0x1fbe   :  { %v3015_v15 = vpop.eup %3014  ;;  %v3552_v28 = vadd.f32 %v3542_v4, %v1479_v54 }
0x1fbf   :  { %2836 = vmatmul.msk.f32.gmra.mxu1 %vm1343_vm10, %v3015_v15 }
0x1fc7   :  { %1501 = vmatmul.f32.vlgmr.msrb.gmra.mxu1 %v3222_v36 }
0x1fc8   :  { %1982 = vmatpush.msrb.mxu1 %v1453_v8 }
0x1fca   :  { %1983 = vmatpush.msrb.mxu1 %v1452_v10 }
0x1fcc   :  { %1984 = vmatpush.msrb.mxu1 %v1451_v13 }
0x1fce   :  { %1985 = vmatpush.msrb.mxu1 %v1450_v1 }
0x203c   :  { %v1370_v2 = vpop.f32.mrf.mxu1 }
0x203d   :  { %v1371_v12 = vadd.f32 %v3498_v62, %v1370_v2 }
0x203f   :  { %v2719_v5 = vrot.slane %v1371_v12, 4  ;;  %2839 = vmatmul.msk.f32.gmra.mxu2 %vm1377_vm15, %v1371_v12  ;;  %v2721_v21 = vrot.slane %v1371_v12, 5  ;;  %v2723_v23 = vrot.slane %v1371_v12, 6  ;;  %v2725_v25 = vrot.slane %v1371_v12, 7 }
0x2041   :  { %v2732_v62 = vsel %vm85_vm3, %v2731_v24, %v2719_v5  ;;  %v2739_v26 = vsel %vm85_vm3, %v2738_v11, %v2721_v21 }
0x2042   :  { %v2733_v27 = vsel %vm87_vm4, %v2732_v62, %v2721_v21  ;;  %v2740_v0 = vsel %vm87_vm4, %v2739_v26, %v2723_v23 }
0x2043   :  { %v2734_v29 = vsel %vm89_vm5, %v2733_v27, %v2723_v23  ;;  %v2741_v30 = vsel %vm89_vm5, %v2740_v0, %v2725_v25 }
0x2044   :  { %v1502_v31 = vpop.f32.mrf.mxu1  ;;  %v2735_v32 = vsel %vm91_vm6, %v2734_v29, %v2725_v25  ;;  %v2742_v33 = vsel %vm91_vm6, %v2741_v30, %v1371_v12 }
0x2045   :  { %v1505_v34 = vadd.f32 %v1502_v31, %v3552_v28  ;;  %2743 = vst.msk [vmem:[#allocation8] sm:$0xff] %vm1377_vm15, %v2735_v32 }
0x2046   :  { %2744 = vst.msk [vmem:[#allocation8 + $0x8] sm:$0xff] %vm1377_vm15, %v2742_v33 }
0x2047   :  { %v2844_v56 = vmul.f32 -1.442695, %v1505_v34  ;;  %2770 = dma.vmem_to_hbm [thread:$0]  %s2763_s25, 256, %s2765_s28, [#allocation9], %s3219_s20, %s3219_s20, %s3220_s21  }
0x2049   :  { %3016 = vpow2.f32 %v2844_v56 }
0x204f   :  { %v3017_v37 = vpop.eup %3016 }
0x2050   :  { %v1509_v40 = vadd.f32 1.0, %v3017_v37 }
0x2052   :  { %3018 = vrcp.f32 %v1509_v40  ;;  %v1521_v38 = vand.u32 2147483648, %v1509_v40  ;;  %v1519_v39 = vand.u32 2147483647, %v1509_v40  ;;  %vm1515_vm7 = vweird.f32 %v1509_v40 }
0x2054   :  { %v1522_v47 = vor.u32 1.1754944e-38, %v1521_v38  ;;  %vm1520_vm9 = vcmp.eq.f32.partialorder %v1519_v39, 8.507059e+37 }
0x2058   :  { %v3019_v42 = vpop.eup %3018 }
0x2059   :  { %v1511_v43 = vmul.f32 %v3019_v42, %v1509_v40  ;;  %vm1516_vm14 = vweird.f32 %v3019_v42 }
0x205a   :  { %vm1517_vm8 = vmor %vm1515_vm7, %vm1516_vm14 }
0x205b   :  { %v1512_v44 = vsub.f32 1.0, %v1511_v43 }
0x205d   :  { %v1513_v45 = vmul.f32 %v3019_v42, %v1512_v44 }
0x205f   :  { %v1514_v46 = vadd.f32 %v3019_v42, %v1513_v45 }
0x2061   :  { %v1518_v48 = vsel %vm1517_vm8, %v3019_v42, %v1514_v46 }
0x2062   :  { %v1523_v49 = vsel %vm1520_vm9, %v1522_v47, %v1518_v48 }
0x2063   :  { %v1525_v50 = vmul.f32 2.0, %v1523_v49 }
0x2065   :  { %v2845_v51 = vadd.f32 -1.0, %v1525_v50 }
0x2067   :  { %1528 = vrot.lane.b32.xlu0 %v2845_v51, %s3223_s0 }
0x20c2   :  { %v1407_v9 = vpop.f32.mrf.mxu2 }
0x20c3   :  { %v1408_v52 = vadd.f32 %v3513_v22, %v1407_v9 }
0x20c5   :  { %3020 = vtanh.f32 %v1408_v52 }
0x20cb   :  { %v3021_v55 = vpop.eup %3020 }
0x20cc   :  { %2841 = vmatmul.msk.f32.gmra.mxu3 %vm1343_vm10, %v3021_v55 }
0x20d9   :  { %v1529_v57 = vpop.permute.xlu0 %1528 }
0x20da   :  { %v1531_v58 = vmul.f32 %v1529_v57, %v1523_v49 }
0x20dc   :  { %1533 = vrot.lane.b32.xlu1 %v1531_v58, %s3224_s1 }
0x214e   :  { %v1534_v60 = vpop.permute.xlu1 %1533 }
0x214f   :  { %v1536_v63 = vadd.f32 %v1534_v60, %v1523_v49  ;;  %v1443_v53 = vpop.f32.mrf.mxu3 }
0x2150   :  { %v1444_v6 = vadd.f32 %v3525_v61, %v1443_v53 }
0x2151   :  { %3022 = vtanh.f32 %v1536_v63  ;;  %v1594_v24 = vrot.slane %v1536_v63, 6 }
0x2152   :  { %2843 = vmatmul.msk.f32.gmra.mxu0 %vm138_vm12, %v1444_v6 }
0x2157   :  { %v3023_v7 = vpop.eup %3022 }
0x2158   :  { %1539 = vrot.lane.b32.xlu2 %v3023_v7, %s3223_s0 }
0x21b2   :  { %v1540_v22 = vpop.permute.xlu2 %1539 }
0x21b3   :  { %v3568_v8 = vmul.f32 %v1540_v22, %v1523_v49 }
0x21b5   :  { %1544 = vrot.lane.b32.xlu0 %v3568_v8, %s3224_s1 }
0x2227   :  { %v1545_v10 = vpop.permute.xlu0 %1544 }
0x2228   :  { %2846 = vmatmul.msk.f32.vlgmr.msrb.gmra.mxu2 %vm138_vm12, %v1545_v10 }
0x22ab   :  { %v1565_v13 = vpop.f32.mrf.mxu2 }
0x22ac   :  { %v1569_v1 = vrot.slane %v1565_v13, 6 }
0x22ae   :  { %v1571_v59 = vadd.f32 %v1569_v1, %v3552_v28 }
0x22b0   :  { %v2847_v61 = vmul.f32 -1.442695, %v1571_v59 }
0x22b2   :  { %3024 = vpow2.f32 %v2847_v61 }
0x22b8   :  { %v3025_v14 = vpop.eup %3024 }
0x22b9   :  { %v1575_v15 = vadd.f32 1.0, %v3025_v14 }
0x22bb   :  { %3026 = vrcp.f32 %v1575_v15  ;;  %v1587_v18 = vand.u32 2147483648, %v1575_v15  ;;  %v1585_v2 = vand.u32 2147483647, %v1575_v15  ;;  %vm1581_vm15 = vweird.f32 %v1575_v15 }
0x22bd   :  { %v1588_v19 = vor.u32 1.1754944e-38, %v1587_v18  ;;  %vm1586_vm13 = vcmp.eq.f32.partialorder %v1585_v2, 8.507059e+37 }
0x22c1   :  { %v3027_v16 = vpop.eup %3026 }
0x22c2   :  { %v1577_v17 = vmul.f32 %v3027_v16, %v1575_v15  ;;  %vm1582_vm10 = vweird.f32 %v3027_v16 }
0x22c3   :  { %vm1583_vm11 = vmor %vm1581_vm15, %vm1582_vm10 }
0x22c4   :  { %v1578_v41 = vsub.f32 1.0, %v1577_v17 }
0x22c6   :  { %v1579_v35 = vmul.f32 %v3027_v16, %v1578_v41 }
0x22c8   :  { %v1580_v12 = vadd.f32 %v3027_v16, %v1579_v35 }
0x22ca   :  { %v1584_v3 = vsel %vm1583_vm11, %v3027_v16, %v1580_v12 }
0x22cb   :  { %v1589_v20 = vsel %vm1586_vm13, %v1588_v19, %v1584_v3 }
0x22cc   :  { %v1591_v5 = vmul.f32 2.0, %v1589_v20  ;;  %v1596_v11 = vmul.f32 %v1594_v24, %v1589_v20 }
0x22ce   :  { %v2848_v21 = vadd.f32 -1.0, %v1591_v5 }
0x22d0   :  { %1598 = vrot.lane.b32.xlu1 %v2848_v21, %s3223_s0 }
0x2342   :  { %v1599_v23 = vpop.permute.xlu1 %1598 }
0x2343   :  { %v1601_v54 = vmul.f32 %v1599_v23, %v1589_v20 }
0x2345   :  { %1603 = vrot.lane.b32.xlu2 %v1601_v54, %s3224_s1 }
0x239f   :  { %v1604_v25 = vpop.permute.xlu2 %1603 }
0x23a0   :  { %v1606_v62 = vadd.f32 %v1604_v25, %v1596_v11 }
0x23a2   :  { %3028 = vtanh.f32 %v1606_v62  ;;  %v1665_v52 = vrot.slane %v1606_v62, 6 }
0x23a8   :  { %v3029_v26 = vpop.eup %3028 }
0x23a9   :  { %1609 = vrot.lane.b32.xlu0 %v3029_v26, %s3223_s0 }
0x241b   :  { %v1610_v27 = vpop.permute.xlu0 %1609 }
0x241c   :  { %v1612_v0 = vmul.f32 %v1610_v27, %v1589_v20 }
0x241e   :  { %v1614_v29 = vrot.slane %v1612_v0, 2  ;;  %v2035_v6 = vsel %vm81_vm1, %v3568_v8, %v1612_v0 }
0x2420   :  { %1615 = vrot.lane.b32.xlu1 %v1614_v29, %s3224_s1 }
0x2492   :  { %v1616_v30 = vpop.permute.xlu1 %1615 }
0x2493   :  { %2849 = vmatmul.msk.f32.vlgmr.msra.gmra.mxu3 %vm138_vm12, %v1616_v30  ;;  %v1482_v30 = vpop.f32.mrf.mxu0 }
0x2516   :  { %v1636_v31 = vpop.f32.mrf.mxu3 }
0x2517   :  { %v1640_v32 = vrot.slane %v1636_v31, 4  ;;  %v3596_v31 = vadd.f32 %v3542_v4, %v1482_v30 }
0x2519   :  { %v1642_v33 = vadd.f32 %v1640_v32, %v3552_v28 }
0x251b   :  { %v2850_v34 = vmul.f32 -1.442695, %v1642_v33 }
0x251d   :  { %3030 = vpow2.f32 %v2850_v34 }
0x2523   :  { %v3031_v56 = vpop.eup %3030 }
0x2524   :  { %v1646_v37 = vadd.f32 1.0, %v3031_v56 }
0x2526   :  { %3032 = vrcp.f32 %v1646_v37  ;;  %v1658_v44 = vand.u32 2147483648, %v1646_v37  ;;  %v1656_v45 = vand.u32 2147483647, %v1646_v37  ;;  %vm1652_vm7 = vweird.f32 %v1646_v37 }
0x2528   :  { %v1659_v46 = vor.u32 1.1754944e-38, %v1658_v44  ;;  %vm1657_vm9 = vcmp.eq.f32.partialorder %v1656_v45, 8.507059e+37 }
0x252c   :  { %v3033_v40 = vpop.eup %3032 }
0x252d   :  { %v1648_v42 = vmul.f32 %v3033_v40, %v1646_v37  ;;  %vm1653_vm14 = vweird.f32 %v3033_v40 }
0x252e   :  { %vm1654_vm8 = vmor %vm1652_vm7, %vm1653_vm14 }
0x252f   :  { %v1649_v43 = vsub.f32 1.0, %v1648_v42 }
0x2531   :  { %v1650_v38 = vmul.f32 %v3033_v40, %v1649_v43 }
0x2533   :  { %v1651_v39 = vadd.f32 %v3033_v40, %v1650_v38 }
0x2535   :  { %v1655_v47 = vsel %vm1654_vm8, %v3033_v40, %v1651_v39 }
0x2536   :  { %v1660_v48 = vsel %vm1657_vm9, %v1659_v46, %v1655_v47 }
0x2537   :  { %v1662_v49 = vmul.f32 2.0, %v1660_v48  ;;  %v1667_v55 = vmul.f32 %v1665_v52, %v1660_v48  ;;  %v2043_v52 = vld [vmem:[#allocation5 + $0xd8] sm:$0xff] }
0x2539   :  { %v2851_v50 = vadd.f32 -1.0, %v1662_v49 }
0x253b   :  { %1669 = vrot.lane.b32.xlu2 %v2851_v50, %s3223_s0 }
0x2595   :  { %v1670_v51 = vpop.permute.xlu2 %1669 }
0x2596   :  { %v1672_v9 = vmul.f32 %v1670_v51, %v1660_v48 }
0x2598   :  { %1674 = vrot.lane.b32.xlu0 %v1672_v9, %s3224_s1  ;;  %v2044_v9 = vld [vmem:[#allocation5 + $0xe0] sm:$0xff] }
0x2599   :  { %2073 = vmatpush.msrb.mxu2 %v2044_v9 }
0x259b   :  { %2074 = vmatpush.msrb.mxu2 %v2043_v52 }
0x260a   :  { %v1675_v57 = vpop.permute.xlu0 %1674 }
0x260b   :  { %v1677_v58 = vadd.f32 %v1675_v57, %v1667_v55  ;;  %v2042_v55 = vld [vmem:[#allocation5 + $0xd0] sm:$0xff]  ;;  %v2041_v57 = vld [vmem:[#allocation5 + $0xc8] sm:$0xff] }
0x260c   :  { %2075 = vmatpush.msrb.mxu2 %v2042_v55 }
0x260d   :  { %3034 = vtanh.f32 %v1677_v58  ;;  %v1736_v23 = vrot.slane %v1677_v58, 6 }
0x260e   :  { %2076 = vmatpush.msrb.mxu2 %v2041_v57 }
0x2613   :  { %v3035_v60 = vpop.eup %3034 }
0x2614   :  { %1680 = vrot.lane.b32.xlu1 %v3035_v60, %s3223_s0 }
0x2686   :  { %v1681_v63 = vpop.permute.xlu1 %1680 }
0x2687   :  { %v1683_v53 = vmul.f32 %v1681_v63, %v1660_v48 }
0x2689   :  { %v1685_v7 = vrot.slane %v1683_v53, 4  ;;  %v2036_v22 = vsel %vm85_vm3, %v2035_v6, %v1683_v53 }
0x268b   :  { %1686 = vrot.lane.b32.xlu2 %v1685_v7, %s3224_s1 }
0x26e5   :  { %v1687_v10 = vpop.permute.xlu2 %1686 }
0x26e6   :  { %2852 = vmatmul.msk.f32.vlgmr.msra.gmra.mxu1 %vm138_vm12, %v1687_v10 }
0x2763   :  { %v1707_v13 = vpop.f32.mrf.mxu1 }
0x2764   :  { %v1711_v1 = vrot.slane %v1707_v13, 2  ;;  %v3611_v13 = vld [vmem:[#allocation5 + $0x100] sm:$0xff] }
0x2765   :  { %2096 = vmatpush.msra.mxu3 %v3611_v13  ;;  %2159 = vmatpush.msrb.mxu0 %v3611_v13 }
0x2766   :  { %v1713_v59 = vadd.f32 %v1711_v1, %v3552_v28  ;;  %v3613_v1 = vld [vmem:[#allocation5 + $0xf8] sm:$0xff]  ;;  %2230 = vmatpush.msra.mxu1 %v3611_v13 }
0x2767   :  { %2097 = vmatpush.msra.mxu3 %v3613_v1  ;;  %2160 = vmatpush.msrb.mxu0 %v3613_v1 }
0x2768   :  { %v2853_v61 = vmul.f32 -1.442695, %v1713_v59  ;;  %v3617_v59 = vld [vmem:[#allocation5 + $0xf0] sm:$0xff]  ;;  %2231 = vmatpush.msra.mxu1 %v3613_v1 }
0x2769   :  { %2098 = vmatpush.msra.mxu3 %v3617_v59  ;;  %2161 = vmatpush.msrb.mxu0 %v3617_v59 }
0x276a   :  { %3036 = vpow2.f32 %v2853_v61  ;;  %v3623_v61 = vld [vmem:[#allocation5 + $0xe8] sm:$0xff]  ;;  %2232 = vmatpush.msra.mxu1 %v3617_v59 }
0x276b   :  { %2099 = vmatpush.msra.mxu3 %v3623_v61  ;;  %2162 = vmatpush.msrb.mxu0 %v3623_v61 }
0x276c   :  { %2233 = vmatpush.msra.mxu1 %v3623_v61 }
0x2770   :  { %v3037_v14 = vpop.eup %3036 }
0x2771   :  { %v1717_v15 = vadd.f32 1.0, %v3037_v14 }
0x2773   :  { %3038 = vrcp.f32 %v1717_v15  ;;  %v1729_v41 = vand.u32 2147483648, %v1717_v15  ;;  %v1727_v35 = vand.u32 2147483647, %v1717_v15  ;;  %vm1723_vm15 = vweird.f32 %v1717_v15 }
0x2775   :  { %v1730_v12 = vor.u32 1.1754944e-38, %v1729_v41  ;;  %vm1728_vm13 = vcmp.eq.f32.partialorder %v1727_v35, 8.507059e+37 }
0x2779   :  { %v3039_v16 = vpop.eup %3038 }
0x277a   :  { %v1719_v17 = vmul.f32 %v3039_v16, %v1717_v15  ;;  %vm1724_vm10 = vweird.f32 %v3039_v16 }
0x277b   :  { %vm1725_vm11 = vmor %vm1723_vm15, %vm1724_vm10 }
0x277c   :  { %v1720_v8 = vsub.f32 1.0, %v1719_v17  ;;  %v3645_v17 = vld [vmem:[#allocation5 + $0x108] ss:$0 sm:$0xff] }
0x277e   :  { %v1721_v18 = vmul.f32 %v3039_v16, %v1720_v8 }
0x2780   :  { %v1722_v2 = vadd.f32 %v3039_v16, %v1721_v18 }
0x2782   :  { %v1726_v19 = vsel %vm1725_vm11, %v3039_v16, %v1722_v2 }
0x2783   :  { %v1731_v3 = vsel %vm1728_vm13, %v1730_v12, %v1726_v19 }
0x2784   :  { %v1733_v28 = vmul.f32 2.0, %v1731_v3  ;;  %v1738_v54 = vmul.f32 %v1736_v23, %v1731_v3 }
0x2786   :  { %v2854_v20 = vadd.f32 -1.0, %v1733_v28 }
0x2788   :  { %1740 = vrot.lane.b32.xlu0 %v2854_v20, %s3223_s0 }
0x27fa   :  { %v1741_v5 = vpop.permute.xlu0 %1740 }
0x27fb   :  { %v1743_v21 = vmul.f32 %v1741_v5, %v1731_v3 }
0x27fd   :  { %1745 = vrot.lane.b32.xlu1 %v1743_v21, %s3224_s1 }
0x286f   :  { %v1746_v24 = vpop.permute.xlu1 %1745 }
0x2870   :  { %v1748_v11 = vadd.f32 %v1746_v24, %v1738_v54 }
0x2872   :  { %3040 = vtanh.f32 %v1748_v11  ;;  %v1804_v58 = vrot.slane %v1748_v11, 6 }
0x2878   :  { %v3041_v25 = vpop.eup %3040 }
0x2879   :  { %1751 = vrot.lane.b32.xlu2 %v3041_v25, %s3223_s0 }
0x28d3   :  { %v1752_v62 = vpop.permute.xlu2 %1751 }
0x28d4   :  { %v1754_v26 = vmul.f32 %v1752_v62, %v1731_v3 }
0x28d6   :  { %v1756_v27 = vrot.slane %v1754_v26, 6  ;;  %v2037_v0 = vsel %vm89_vm5, %v2036_v22, %v1754_v26 }
0x28d8   :  { %1757 = vrot.lane.b32.xlu0 %v1756_v27, %s3224_s1 }
0x294a   :  { %v1758_v29 = vpop.permute.xlu0 %1757 }
0x294b   :  { %2855 = vmatmul.msk.f32.vlgmr.msra.gmra.mxu2 %vm138_vm12, %v1758_v29 }
0x294c   :  { %2510 = vmatpush.msra.mxu2 %v3611_v13 }
0x294e   :  { %2511 = vmatpush.msra.mxu2 %v3613_v1 }
0x2950   :  { %2512 = vmatpush.msra.mxu2 %v3617_v59 }
0x2952   :  { %2513 = vmatpush.msra.mxu2 %v3623_v61 }
0x29ce   :  { %v1778_v32 = vpop.f32.mrf.mxu2 }
0x29cf   :  { %v1781_v33 = vadd.f32 %v1778_v32, %v3596_v31 }
0x29d1   :  { %v2856_v34 = vmul.f32 -1.442695, %v1781_v33 }
0x29d3   :  { %3042 = vpow2.f32 %v2856_v34 }
0x29d9   :  { %v3043_v56 = vpop.eup %3042 }
0x29da   :  { %v1785_v37 = vadd.f32 1.0, %v3043_v56 }
0x29dc   :  { %3044 = vrcp.f32 %v1785_v37  ;;  %v1797_v44 = vand.u32 2147483648, %v1785_v37  ;;  %v1795_v45 = vand.u32 2147483647, %v1785_v37  ;;  %vm1791_vm7 = vweird.f32 %v1785_v37 }
0x29de   :  { %v1798_v4 = vor.u32 1.1754944e-38, %v1797_v44  ;;  %vm1796_vm9 = vcmp.eq.f32.partialorder %v1795_v45, 8.507059e+37 }
0x29e2   :  { %v3045_v40 = vpop.eup %3044 }
0x29e3   :  { %v1787_v42 = vmul.f32 %v3045_v40, %v1785_v37  ;;  %vm1792_vm14 = vweird.f32 %v3045_v40 }
0x29e4   :  { %vm1793_vm8 = vmor %vm1791_vm7, %vm1792_vm14 }
0x29e5   :  { %v1788_v43 = vsub.f32 1.0, %v1787_v42 }
0x29e7   :  { %v1789_v38 = vmul.f32 %v3045_v40, %v1788_v43 }
0x29e9   :  { %v1790_v39 = vadd.f32 %v3045_v40, %v1789_v38 }
0x29eb   :  { %v1794_v46 = vsel %vm1793_vm8, %v3045_v40, %v1790_v39 }
0x29ec   :  { %v1799_v47 = vsel %vm1796_vm9, %v1798_v4, %v1794_v46 }
0x29ed   :  { %v1801_v48 = vmul.f32 2.0, %v1799_v47  ;;  %v1806_v60 = vmul.f32 %v1804_v58, %v1799_v47 }
0x29ef   :  { %v2857_v49 = vadd.f32 -1.0, %v1801_v48 }
0x29f1   :  { %1808 = vrot.lane.b32.xlu1 %v2857_v49, %s3223_s0 }
0x2a63   :  { %v1809_v50 = vpop.permute.xlu1 %1808 }
0x2a64   :  { %v1811_v51 = vmul.f32 %v1809_v50, %v1799_v47 }
0x2a66   :  { %1813 = vrot.lane.b32.xlu2 %v1811_v51, %s3224_s1 }
0x2a6e   :  { %2053 = vrot.lane.b32.xlu2 %v2037_v0, %s3224_s1 }
0x2ac0   :  { %v1814_v63 = vpop.permute.xlu2 %1813 }
0x2ac1   :  { %v3602_v53 = vadd.f32 %v1814_v63, %v1806_v60 }
0x2ac3   :  { %3046 = vtanh.f32 %v3602_v53  ;;  %v1874_v48 = vrot.slane %v3602_v53, 6 }
0x2ac8   :  { %v2054_v6 = vpop.permute.xlu2 %2053 }
0x2ac9   :  { %v3047_v7 = vpop.eup %3046  ;;  %2867 = vmatmul.msk.f32.vlgmr.msrb.gmra.mxu2 %vm138_vm12, %v2054_v6 }
0x2aca   :  { %1819 = vrot.lane.b32.xlu0 %v3047_v7, %s3223_s0 }
0x2b3c   :  { %v1820_v22 = vpop.permute.xlu0 %1819 }
0x2b3d   :  { %v3607_v10 = vmul.f32 %v1820_v22, %v1799_v47 }
0x2b3f   :  { %1824 = vrot.lane.b32.xlu1 %v3607_v10, %s3224_s1 }
0x2b4c   :  { %v2078_v41 = vpop.f32.mrf.mxu2 }
0x2b4d   :  { %v3649_v35 = vadd.f32 %v3645_v17, %v2078_v41 }
0x2bb1   :  { %v1825_v14 = vpop.permute.xlu1 %1824 }
0x2bb2   :  { %2858 = vmatmul.msk.f32.vlgmr.msrb.gmra.mxu3 %vm138_vm12, %v1825_v14 }
0x2bb3   :  { %2301 = vmatpush.msrb.mxu3 %v3611_v13 }
0x2bb5   :  { %2302 = vmatpush.msrb.mxu3 %v3613_v1 }
0x2bb7   :  { %2303 = vmatpush.msrb.mxu3 %v3617_v59 }
0x2bb9   :  { %2304 = vmatpush.msrb.mxu3 %v3623_v61 }
0x2bba   :  { %2100 = vmatmul.f32.vlgmr.msra.gmra.mxu3 %v3222_v36 }
0x2bbb   :  { %2581 = vmatpush.msra.mxu3 %v3611_v13 }
0x2bbd   :  { %2582 = vmatpush.msra.mxu3 %v3613_v1 }
0x2bbf   :  { %2583 = vmatpush.msra.mxu3 %v3617_v59 }
0x2bc1   :  { %2584 = vmatpush.msra.mxu3 %v3623_v61 }
0x2c35   :  { %v1845_v15 = vpop.f32.mrf.mxu3 }
0x2c36   :  { %v1849_v16 = vrot.slane %v1845_v15, 6 }
0x2c38   :  { %v1851_v8 = vadd.f32 %v1849_v16, %v3596_v31 }
0x2c3a   :  { %v2859_v18 = vmul.f32 -1.442695, %v1851_v8 }
0x2c3c   :  { %3048 = vpow2.f32 %v2859_v18 }
0x2c3d   :  { %v2101_v36 = vpop.f32.mrf.mxu3 }
0x2c3e   :  { %v2104_v2 = vadd.f32 %v2101_v36, %v3649_v35 }
0x2c40   :  { %v2869_v12 = vmul.f32 -1.442695, %v2104_v2 }
0x2c42   :  { %v3049_v19 = vpop.eup %3048  ;;  %3050 = vpow2.f32 %v2869_v12 }
0x2c43   :  { %v1855_v3 = vadd.f32 1.0, %v3049_v19 }
0x2c45   :  { %3052 = vrcp.f32 %v1855_v3  ;;  %v1867_v54 = vand.u32 2147483648, %v1855_v3  ;;  %v1865_v11 = vand.u32 2147483647, %v1855_v3  ;;  %vm1861_vm15 = vweird.f32 %v1855_v3 }
0x2c47   :  { %v1868_v27 = vor.u32 1.1754944e-38, %v1867_v54  ;;  %vm1866_vm13 = vcmp.eq.f32.partialorder %v1865_v11, 8.507059e+37 }
0x2c48   :  { %v3051_v28 = vpop.eup %3050 }
0x2c49   :  { %v2108_v20 = vadd.f32 1.0, %v3051_v28 }
0x2c4b   :  { %v3053_v5 = vpop.eup %3052  ;;  %3054 = vrcp.f32 %v2108_v20  ;;  %v2120_v32 = vand.u32 2147483648, %v2108_v20  ;;  %v2118_v56 = vand.u32 2147483647, %v2108_v20  ;;  %vm2114_vm7 = vweird.f32 %v2108_v20 }
0x2c4c   :  { %v1857_v21 = vmul.f32 %v3053_v5, %v1855_v3  ;;  %vm1862_vm10 = vweird.f32 %v3053_v5 }
0x2c4d   :  { %vm1863_vm11 = vmor %vm1861_vm15, %vm1862_vm10  ;;  %v2121_v42 = vor.u32 1.1754944e-38, %v2120_v32  ;;  %vm2119_vm9 = vcmp.eq.f32.partialorder %v2118_v56, 8.507059e+37 }
0x2c4e   :  { %v1858_v23 = vsub.f32 1.0, %v1857_v21 }
0x2c50   :  { %v1859_v24 = vmul.f32 %v3053_v5, %v1858_v23 }
0x2c51   :  { %v3055_v25 = vpop.eup %3054 }
0x2c52   :  { %v2110_v62 = vmul.f32 %v3055_v25, %v2108_v20  ;;  %v1860_v26 = vadd.f32 %v3053_v5, %v1859_v24  ;;  %vm2115_vm14 = vweird.f32 %v3055_v25 }
0x2c53   :  { %vm2116_vm8 = vmor %vm2114_vm7, %vm2115_vm14 }
0x2c54   :  { %v2111_v0 = vsub.f32 1.0, %v2110_v62  ;;  %v1864_v29 = vsel %vm1863_vm11, %v3053_v5, %v1860_v26 }
0x2c55   :  { %v1869_v30 = vsel %vm1866_vm13, %v1868_v27, %v1864_v29 }
0x2c56   :  { %v1871_v33 = vmul.f32 2.0, %v1869_v30  ;;  %v2112_v34 = vmul.f32 %v3055_v25, %v2111_v0  ;;  %v1876_v49 = vmul.f32 %v1874_v48, %v1869_v30 }
0x2c58   :  { %v2860_v37 = vadd.f32 -1.0, %v1871_v33  ;;  %v2113_v40 = vadd.f32 %v3055_v25, %v2112_v34 }
0x2c5a   :  { %1878 = vrot.lane.b32.xlu0 %v2860_v37, %s3223_s0  ;;  %v2117_v43 = vsel %vm2116_vm8, %v3055_v25, %v2113_v40 }
0x2c5b   :  { %v2122_v44 = vsel %vm2119_vm9, %v2121_v42, %v2117_v43 }
0x2c5c   :  { %v2124_v38 = vmul.f32 2.0, %v2122_v44 }
0x2c5e   :  { %v2870_v45 = vadd.f32 -1.0, %v2124_v38 }
0x2c60   :  { %2127 = vrot.lane.b32.xlu1 %v2870_v45, %s3223_s0 }
0x2ccc   :  { %v1879_v39 = vpop.permute.xlu0 %1878 }
0x2ccd   :  { %v1881_v4 = vmul.f32 %v1879_v39, %v1869_v30 }
0x2ccf   :  { %1883 = vrot.lane.b32.xlu2 %v1881_v4, %s3224_s1 }
0x2cd2   :  { %v2128_v46 = vpop.permute.xlu1 %2127 }
0x2cd3   :  { %v2130_v47 = vmul.f32 %v2128_v46, %v2122_v44 }
0x2cd5   :  { %2132 = vrot.lane.b32.xlu0 %v2130_v47, %s3224_s1 }
0x2d29   :  { %v1884_v50 = vpop.permute.xlu2 %1883 }
0x2d2a   :  { %v3657_v51 = vadd.f32 %v1884_v50, %v1876_v49 }
0x2d2c   :  { %3056 = vtanh.f32 %v3657_v51  ;;  %v1945_v47 = vrot.slane %v3657_v51, 6 }
0x2d32   :  { %v3057_v9 = vpop.eup %3056 }
0x2d33   :  { %1889 = vrot.lane.b32.xlu1 %v3057_v9, %s3223_s0 }
0x2d47   :  { %v2133_v52 = vpop.permute.xlu0 %2132 }
0x2d48   :  { %v3661_v55 = vadd.f32 %v2133_v52, %v2122_v44 }
0x2d4a   :  { %3058 = vtanh.f32 %v3661_v55  ;;  %v2193_v9 = vrot.slane %v3661_v55, 6 }
0x2d50   :  { %v3059_v57 = vpop.eup %3058 }
0x2d51   :  { %2138 = vrot.lane.b32.xlu2 %v3059_v57, %s3223_s0 }
0x2da5   :  { %v1890_v58 = vpop.permute.xlu1 %1889 }
0x2da6   :  { %v3665_v60 = vmul.f32 %v1890_v58, %v1869_v30 }
0x2da8   :  { %v1894_v63 = vrot.slane %v3665_v60, 2 }
0x2daa   :  { %1895 = vrot.lane.b32.xlu0 %v1894_v63, %s3224_s1 }
0x2dab   :  { %v2139_v53 = vpop.permute.xlu2 %2138 }
0x2dac   :  { %v3669_v6 = vmul.f32 %v2139_v53, %v2122_v44 }
0x2dae   :  { %2143 = vrot.lane.b32.xlu1 %v3669_v6, %s3224_s1 }
0x2e1c   :  { %v1896_v7 = vpop.permute.xlu0 %1895 }
0x2e1d   :  { %2861 = vmatmul.msk.f32.vlgmr.msra.gmra.mxu0 %vm138_vm12, %v1896_v7 }
0x2e1e   :  { %2372 = vmatpush.msra.mxu0 %v3611_v13 }
0x2e20   :  { %2373 = vmatpush.msra.mxu0 %v3613_v1  ;;  %v2144_v22 = vpop.permute.xlu1 %2143 }
0x2e22   :  { %2374 = vmatpush.msra.mxu0 %v3617_v59 }
0x2e24   :  { %2375 = vmatpush.msra.mxu0 %v3623_v61 }
0x2e25   :  { %2871 = vmatmul.msk.f32.vlgmr.msrb.gmra.mxu0 %vm138_vm12, %v2144_v22  ;;  %v2038_v22 = vsel %vm81_vm1, %v3607_v10, %v3665_v60 }
0x2e9a   :  { %v1916_v14 = vpop.f32.mrf.mxu0 }
0x2e9b   :  { %v1920_v15 = vrot.slane %v1916_v14, 4 }
0x2e9d   :  { %v1922_v16 = vadd.f32 %v1920_v15, %v3596_v31 }
0x2e9f   :  { %v2862_v8 = vmul.f32 -1.442695, %v1922_v16 }
0x2ea1   :  { %3060 = vpow2.f32 %v2862_v8 }
0x2ea2   :  { %v2164_v41 = vpop.f32.mrf.mxu0 }
0x2ea3   :  { %v2168_v18 = vrot.slane %v2164_v41, 6 }
0x2ea5   :  { %v2170_v36 = vadd.f32 %v2168_v18, %v3649_v35 }
0x2ea7   :  { %v3061_v2 = vpop.eup %3060  ;;  %v2872_v12 = vmul.f32 -1.442695, %v2170_v36 }
0x2ea8   :  { %v1926_v19 = vadd.f32 1.0, %v3061_v2 }
0x2ea9   :  { %3062 = vpow2.f32 %v2872_v12 }
0x2eaa   :  { %3064 = vrcp.f32 %v1926_v19  ;;  %v1938_v23 = vand.u32 2147483648, %v1926_v19  ;;  %v1936_v24 = vand.u32 2147483647, %v1926_v19  ;;  %vm1932_vm15 = vweird.f32 %v1926_v19 }
0x2eac   :  { %v1939_v62 = vor.u32 1.1754944e-38, %v1938_v23  ;;  %vm1937_vm13 = vcmp.eq.f32.partialorder %v1936_v24, 8.507059e+37 }
0x2eaf   :  { %v3063_v3 = vpop.eup %3062 }
0x2eb0   :  { %v3065_v28 = vpop.eup %3064  ;;  %v2174_v20 = vadd.f32 1.0, %v3063_v3 }
0x2eb1   :  { %v1928_v5 = vmul.f32 %v3065_v28, %v1926_v19  ;;  %vm1933_vm10 = vweird.f32 %v3065_v28 }
0x2eb2   :  { %3066 = vrcp.f32 %v2174_v20  ;;  %vm1934_vm11 = vmor %vm1932_vm15, %vm1933_vm10  ;;  %v2186_v32 = vand.u32 2147483648, %v2174_v20  ;;  %v2184_v56 = vand.u32 2147483647, %v2174_v20  ;;  %vm2180_vm7 = vweird.f32 %v2174_v20 }
0x2eb3   :  { %v1929_v21 = vsub.f32 1.0, %v1928_v5 }
0x2eb4   :  { %v2187_v40 = vor.u32 1.1754944e-38, %v2186_v32  ;;  %vm2185_vm9 = vcmp.eq.f32.partialorder %v2184_v56, 8.507059e+37 }
0x2eb5   :  { %v1930_v54 = vmul.f32 %v3065_v28, %v1929_v21 }
0x2eb7   :  { %v1931_v11 = vadd.f32 %v3065_v28, %v1930_v54 }
0x2eb8   :  { %v3067_v25 = vpop.eup %3066 }
0x2eb9   :  { %v2176_v26 = vmul.f32 %v3067_v25, %v2174_v20  ;;  %v1935_v27 = vsel %vm1934_vm11, %v3065_v28, %v1931_v11  ;;  %vm2181_vm14 = vweird.f32 %v3067_v25 }
0x2eba   :  { %v1940_v0 = vsel %vm1937_vm13, %v1939_v62, %v1935_v27  ;;  %vm2182_vm8 = vmor %vm2180_vm7, %vm2181_vm14 }
0x2ebb   :  { %v2177_v29 = vsub.f32 1.0, %v2176_v26  ;;  %v1942_v30 = vmul.f32 2.0, %v1940_v0  ;;  %v1947_v48 = vmul.f32 %v1945_v47, %v1940_v0 }
0x2ebd   :  { %v2863_v33 = vadd.f32 -1.0, %v1942_v30  ;;  %v2178_v34 = vmul.f32 %v3067_v25, %v2177_v29 }
0x2ebf   :  { %1949 = vrot.lane.b32.xlu2 %v2863_v33, %s3223_s0  ;;  %v2179_v37 = vadd.f32 %v3067_v25, %v2178_v34 }
0x2ec1   :  { %v2183_v42 = vsel %vm2182_vm8, %v3067_v25, %v2179_v37 }
0x2ec2   :  { %v2188_v43 = vsel %vm2185_vm9, %v2187_v40, %v2183_v42 }
0x2ec3   :  { %v2190_v44 = vmul.f32 2.0, %v2188_v43  ;;  %v2195_v52 = vmul.f32 %v2193_v9, %v2188_v43 }
0x2ec5   :  { %v2873_v38 = vadd.f32 -1.0, %v2190_v44 }
0x2ec7   :  { %2197 = vrot.lane.b32.xlu0 %v2873_v38, %s3223_s0 }
0x2f19   :  { %v1950_v45 = vpop.permute.xlu2 %1949 }
0x2f1a   :  { %v1952_v39 = vmul.f32 %v1950_v45, %v1940_v0 }
0x2f1c   :  { %1954 = vrot.lane.b32.xlu1 %v1952_v39, %s3224_s1 }
0x2f39   :  { %v2198_v4 = vpop.permute.xlu0 %2197 }
0x2f3a   :  { %v2200_v46 = vmul.f32 %v2198_v4, %v2188_v43 }
0x2f3c   :  { %2202 = vrot.lane.b32.xlu2 %v2200_v46, %s3224_s1 }
0x2f8e   :  { %v1955_v49 = vpop.permute.xlu1 %1954 }
0x2f8f   :  { %v3686_v50 = vadd.f32 %v1955_v49, %v1947_v48 }
0x2f91   :  { %3068 = vtanh.f32 %v3686_v50 }
0x2f96   :  { %v2203_v57 = vpop.permute.xlu2 %2202 }
0x2f97   :  { %v3069_v58 = vpop.eup %3068  ;;  %v3690_v63 = vadd.f32 %v2203_v57, %v2195_v52 }
0x2f98   :  { %1960 = vrot.lane.b32.xlu0 %v3069_v58, %s3223_s0 }
0x2f99   :  { %3070 = vtanh.f32 %v3690_v63  ;;  %v2264_v39 = vrot.slane %v3690_v63, 6 }
0x2f9f   :  { %v3071_v53 = vpop.eup %3070 }
0x2fa0   :  { %2208 = vrot.lane.b32.xlu1 %v3071_v53, %s3223_s0 }
0x300a   :  { %v1961_v51 = vpop.permute.xlu0 %1960 }
0x300b   :  { %v1963_v7 = vmul.f32 %v1961_v51, %v1940_v0 }
0x300d   :  { %v1965_v14 = vrot.slane %v1963_v7, 4  ;;  %v3699_v55 = vsel %vm85_vm3, %v2038_v22, %v1963_v7 }
0x300f   :  { %1966 = vrot.lane.b32.xlu2 %v1965_v14, %s3224_s1 }
0x3012   :  { %v2209_v15 = vpop.permute.xlu1 %2208 }
0x3013   :  { %v3702_v16 = vmul.f32 %v2209_v15, %v2188_v43 }
0x3015   :  { %v2213_v8 = vrot.slane %v3702_v16, 2  ;;  %v2634_v52 = vsel %vm81_vm1, %v3669_v6, %v3702_v16 }
0x3017   :  { %2214 = vrot.lane.b32.xlu0 %v2213_v8, %s3224_s1 }
0x3069   :  { %v1967_v41 = vpop.permute.xlu2 %1966 }
0x306a   :  { %2864 = vmatmul.msk.f32.vlgmr.msrb.gmra.mxu1 %vm138_vm12, %v1967_v41 }
0x306b   :  { %2439 = vmatpush.msrb.mxu1 %v3611_v13 }
0x306d   :  { %2440 = vmatpush.msrb.mxu1 %v3613_v1 }
0x306f   :  { %2441 = vmatpush.msrb.mxu1 %v3617_v59 }
0x3071   :  { %2442 = vmatpush.msrb.mxu1 %v3623_v61 }
0x3089   :  { %v2215_v10 = vpop.permute.xlu0 %2214 }
0x308a   :  { %2874 = vmatmul.msk.f32.vlgmr.msra.gmra.mxu1 %vm138_vm12, %v2215_v10 }
0x30e7   :  { %v1987_v60 = vpop.f32.mrf.mxu1 }
0x30e8   :  { %v1991_v25 = vrot.slane %v1987_v60, 2 }
0x30ea   :  { %v1993_v62 = vadd.f32 %v1991_v25, %v3596_v31 }
0x30ec   :  { %v2865_v26 = vmul.f32 -1.442695, %v1993_v62 }
0x3107   :  { %v2235_v18 = vpop.f32.mrf.mxu1 }
0x3108   :  { %v2239_v36 = vrot.slane %v2235_v18, 4 }
0x310a   :  { %v2241_v2 = vadd.f32 %v2239_v36, %v3649_v35 }
0x310c   :  { %v2875_v12 = vmul.f32 -1.442695, %v2241_v2 }
0x310e   :  { %3072 = vpow2.f32 %v2875_v12  ;;  %v2016_v12 = vrot.slane %v3686_v50, 6 }
0x3114   :  { %v3073_v19 = vpop.eup %3072 }
0x3115   :  { %v2245_v3 = vadd.f32 1.0, %v3073_v19 }
0x3117   :  { %3074 = vrcp.f32 %v2245_v3  ;;  %v2257_v20 = vand.u32 2147483648, %v2245_v3  ;;  %v2255_v61 = vand.u32 2147483647, %v2245_v3  ;;  %vm2251_vm15 = vweird.f32 %v2245_v3 }
0x3118   :  { %3076 = vpow2.f32 %v2865_v26 }
0x3119   :  { %v2258_v21 = vor.u32 1.1754944e-38, %v2257_v20  ;;  %vm2256_vm13 = vcmp.eq.f32.partialorder %v2255_v61, 8.507059e+37 }
0x311d   :  { %v3075_v13 = vpop.eup %3074 }
0x311e   :  { %v2247_v28 = vmul.f32 %v3075_v13, %v2245_v3  ;;  %vm2252_vm10 = vweird.f32 %v3075_v13  ;;  %v3077_v27 = vpop.eup %3076 }
0x311f   :  { %vm2253_vm11 = vmor %vm2251_vm15, %vm2252_vm10  ;;  %v1997_v0 = vadd.f32 1.0, %v3077_v27 }
0x3120   :  { %v2248_v1 = vsub.f32 1.0, %v2247_v28 }
0x3121   :  { %3078 = vrcp.f32 %v1997_v0  ;;  %v2009_v56 = vand.u32 2147483648, %v1997_v0  ;;  %vm2003_vm7 = vweird.f32 %v1997_v0  ;;  %v2007_v37 = vand.u32 2147483647, %v1997_v0 }
0x3122   :  { %v2249_v59 = vmul.f32 %v3075_v13, %v2248_v1 }
0x3123   :  { %v2010_v43 = vor.u32 1.1754944e-38, %v2009_v56  ;;  %vm2008_vm9 = vcmp.eq.f32.partialorder %v2007_v37, 8.507059e+37 }
0x3124   :  { %v2250_v5 = vadd.f32 %v3075_v13, %v2249_v59 }
0x3126   :  { %v2254_v23 = vsel %vm2253_vm11, %v3075_v13, %v2250_v5 }
0x3127   :  { %v2259_v54 = vsel %vm2256_vm13, %v2258_v21, %v2254_v23  ;;  %v3079_v29 = vpop.eup %3078 }
0x3128   :  { %v2261_v24 = vmul.f32 2.0, %v2259_v54  ;;  %v1999_v30 = vmul.f32 %v3079_v29, %v1997_v0  ;;  %vm2004_vm14 = vweird.f32 %v3079_v29  ;;  %v2266_v4 = vmul.f32 %v2264_v39, %v2259_v54 }
0x3129   :  { %vm2005_vm8 = vmor %vm2003_vm7, %vm2004_vm14 }
0x312a   :  { %v2876_v11 = vadd.f32 -1.0, %v2261_v24  ;;  %v2000_v32 = vsub.f32 1.0, %v1999_v30 }
0x312c   :  { %2268 = vrot.lane.b32.xlu1 %v2876_v11, %s3223_s0  ;;  %v2001_v33 = vmul.f32 %v3079_v29, %v2000_v32 }
0x312e   :  { %v2002_v34 = vadd.f32 %v3079_v29, %v2001_v33 }
0x3130   :  { %v2006_v40 = vsel %vm2005_vm8, %v3079_v29, %v2002_v34 }
0x3131   :  { %v2011_v31 = vsel %vm2008_vm9, %v2010_v43, %v2006_v40 }
0x3132   :  { %v2013_v38 = vmul.f32 2.0, %v2011_v31  ;;  %v2018_v13 = vmul.f32 %v2016_v12, %v2011_v31 }
0x3134   :  { %v2866_v45 = vadd.f32 -1.0, %v2013_v38 }
0x319e   :  { %v2269_v42 = vpop.permute.xlu1 %2268 }
0x319f   :  { %v2271_v44 = vmul.f32 %v2269_v42, %v2259_v54 }
0x31a1   :  { %2273 = vrot.lane.b32.xlu2 %v2271_v44, %s3224_s1 }
0x31a9   :  { %2020 = vrot.lane.b32.xlu2 %v2866_v45, %s3223_s0 }
0x31fb   :  { %v2274_v46 = vpop.permute.xlu2 %2273 }
0x31fc   :  { %v2276_v47 = vadd.f32 %v2274_v46, %v2266_v4 }
0x31fe   :  { %3080 = vtanh.f32 %v2276_v47  ;;  %v2335_v24 = vrot.slane %v2276_v47, 6 }
0x3203   :  { %v2021_v53 = vpop.permute.xlu2 %2020 }
0x3204   :  { %v3081_v48 = vpop.eup %3080  ;;  %v2023_v63 = vmul.f32 %v2021_v53, %v2011_v31 }
0x3205   :  { %2279 = vrot.lane.b32.xlu0 %v3081_v48, %s3223_s0 }
0x3277   :  { %v2280_v49 = vpop.permute.xlu0 %2279 }
0x3278   :  { %v2282_v9 = vmul.f32 %v2280_v49, %v2259_v54 }
0x327a   :  { %v2284_v57 = vrot.slane %v2282_v9, 4  ;;  %v2635_v58 = vsel %vm85_vm3, %v2634_v52, %v2282_v9 }
0x327c   :  { %2285 = vrot.lane.b32.xlu1 %v2284_v57, %s3224_s1 }
0x3284   :  { %2025 = vrot.lane.b32.xlu1 %v2023_v63, %s3224_s1 }
0x32ee   :  { %v2286_v51 = vpop.permute.xlu1 %2285 }
0x32ef   :  { %2877 = vmatmul.msk.f32.vlgmr.msrb.gmra.mxu3 %vm138_vm12, %v2286_v51 }
0x32f6   :  { %v2026_v3 = vpop.permute.xlu1 %2025 }
0x32f7   :  { %v2028_v20 = vadd.f32 %v2026_v3, %v2018_v13 }
0x3372   :  { %v2306_v7 = vpop.f32.mrf.mxu3 }
0x3373   :  { %v2310_v22 = vrot.slane %v2306_v7, 2 }
0x3375   :  { %v2312_v14 = vadd.f32 %v2310_v22, %v3649_v35 }
0x3377   :  { %v2878_v15 = vmul.f32 -1.442695, %v2312_v14 }
0x3379   :  { %3082 = vpow2.f32 %v2878_v15 }
0x337f   :  { %v3083_v8 = vpop.eup %3082 }
0x3380   :  { %v2316_v6 = vadd.f32 1.0, %v3083_v8 }
0x3382   :  { %3084 = vrcp.f32 %v2316_v6  ;;  %v2328_v60 = vand.u32 2147483648, %v2316_v6  ;;  %v2326_v36 = vand.u32 2147483647, %v2316_v6  ;;  %vm2322_vm15 = vweird.f32 %v2316_v6 }
0x3383   :  { %3086 = vtanh.f32 %v2028_v20 }
0x3384   :  { %v2329_v19 = vor.u32 1.1754944e-38, %v2328_v60  ;;  %vm2327_vm13 = vcmp.eq.f32.partialorder %v2326_v36, 8.507059e+37 }
0x3388   :  { %v3085_v16 = vpop.eup %3084 }
0x3389   :  { %v2318_v41 = vmul.f32 %v3085_v16, %v2316_v6  ;;  %vm2323_vm10 = vweird.f32 %v3085_v16  ;;  %v3087_v61 = vpop.eup %3086 }
0x338a   :  { %vm2324_vm11 = vmor %vm2322_vm15, %vm2323_vm10 }
0x338b   :  { %v2319_v10 = vsub.f32 1.0, %v2318_v41 }
0x338d   :  { %v2320_v18 = vmul.f32 %v3085_v16, %v2319_v10 }
0x338f   :  { %v2321_v2 = vadd.f32 %v3085_v16, %v2320_v18 }
0x3391   :  { %v2325_v35 = vsel %vm2324_vm11, %v3085_v16, %v2321_v2 }
0x3392   :  { %v2330_v28 = vsel %vm2327_vm13, %v2329_v19, %v2325_v35 }
0x3393   :  { %v2332_v1 = vmul.f32 2.0, %v2330_v28  ;;  %v2337_v11 = vmul.f32 %v2335_v24, %v2330_v28 }
0x3395   :  { %v2879_v59 = vadd.f32 -1.0, %v2332_v1 }
0x3397   :  { %2339 = vrot.lane.b32.xlu0 %v2879_v59, %s3223_s0 }
0x339f   :  { %2031 = vrot.lane.b32.xlu0 %v3087_v61, %s3223_s0 }
0x3409   :  { %v2340_v5 = vpop.permute.xlu0 %2339 }
0x340a   :  { %v2342_v21 = vmul.f32 %v2340_v5, %v2330_v28 }
0x340c   :  { %2344 = vrot.lane.b32.xlu2 %v2342_v21, %s3224_s1 }
0x3411   :  { %v2032_v50 = vpop.permute.xlu0 %2031 }
0x3412   :  { %v2034_v23 = vmul.f32 %v2032_v50, %v2011_v31 }
0x3414   :  { %v2040_v54 = vsel %vm89_vm5, %v3699_v55, %v2034_v23 }
0x3415   :  { %2055 = vrot.lane.b32.xlu2 %v2040_v54, %s3224_s1 }
0x3466   :  { %v2345_v25 = vpop.permute.xlu2 %2344 }
0x3467   :  { %v2347_v62 = vadd.f32 %v2345_v25, %v2337_v11 }
0x3469   :  { %3088 = vtanh.f32 %v2347_v62 }
0x346f   :  { %v3089_v26 = vpop.eup %3088  ;;  %v2056_v27 = vpop.permute.xlu2 %2055 }
0x3470   :  { %2350 = vrot.lane.b32.xlu1 %v3089_v26, %s3223_s0  ;;  %2868 = vmatmul.msk.f32.gmra.mxu2 %vm138_vm12, %v2056_v27 }
0x34e2   :  { %v2351_v0 = vpop.permute.xlu1 %2350 }
0x34e3   :  { %v2353_v29 = vmul.f32 %v2351_v0, %v2330_v28 }
0x34e5   :  { %v2355_v30 = vrot.slane %v2353_v29, 6  ;;  %v3737_v32 = vsel %vm89_vm5, %v2635_v58, %v2353_v29  ;;  %v2403_v58 = vrot.slane %v2347_v62, 6 }
0x34e7   :  { %2356 = vrot.lane.b32.xlu0 %v2355_v30, %s3224_s1 }
0x34f3   :  { %v2081_v33 = vpop.f32.mrf.mxu2 }
0x34f4   :  { %v3742_v34 = vadd.f32 %v3645_v17, %v2081_v33 }
0x3559   :  { %v2357_v55 = vpop.permute.xlu0 %2356 }
0x355a   :  { %2880 = vmatmul.msk.f32.vlgmr.msra.gmra.mxu0 %vm138_vm12, %v2357_v55 }
0x35d7   :  { %v2377_v56 = vpop.f32.mrf.mxu0 }
0x35d8   :  { %v2380_v37 = vadd.f32 %v2377_v56, %v3742_v34 }
0x35da   :  { %v2881_v40 = vmul.f32 -1.442695, %v2380_v37 }
0x35dc   :  { %3090 = vpow2.f32 %v2881_v40 }
0x35e2   :  { %v3091_v42 = vpop.eup %3090 }
0x35e3   :  { %v2384_v43 = vadd.f32 1.0, %v3091_v42 }
0x35e5   :  { %3092 = vrcp.f32 %v2384_v43  ;;  %v2396_v45 = vand.u32 2147483648, %v2384_v43  ;;  %v2394_v4 = vand.u32 2147483647, %v2384_v43  ;;  %vm2390_vm7 = vweird.f32 %v2384_v43 }
0x35e7   :  { %v2397_v17 = vor.u32 1.1754944e-38, %v2396_v45  ;;  %vm2395_vm9 = vcmp.eq.f32.partialorder %v2394_v4, 8.507059e+37 }
0x35eb   :  { %v3093_v44 = vpop.eup %3092 }
0x35ec   :  { %v2386_v31 = vmul.f32 %v3093_v44, %v2384_v43  ;;  %vm2391_vm14 = vweird.f32 %v3093_v44 }
0x35ed   :  { %vm2392_vm8 = vmor %vm2390_vm7, %vm2391_vm14 }
0x35ee   :  { %v2387_v38 = vsub.f32 1.0, %v2386_v31 }
0x35f0   :  { %v2388_v39 = vmul.f32 %v3093_v44, %v2387_v38 }
0x35f2   :  { %v2389_v46 = vadd.f32 %v3093_v44, %v2388_v39 }
0x35f4   :  { %v2393_v47 = vsel %vm2392_vm8, %v3093_v44, %v2389_v46 }
0x35f5   :  { %v2398_v48 = vsel %vm2395_vm9, %v2397_v17, %v2393_v47 }
0x35f6   :  { %v2400_v49 = vmul.f32 2.0, %v2398_v48  ;;  %v2405_v53 = vmul.f32 %v2403_v58, %v2398_v48 }
0x35f8   :  { %v2882_v9 = vadd.f32 -1.0, %v2400_v49 }
0x35fa   :  { %2407 = vrot.lane.b32.xlu1 %v2882_v9, %s3223_s0 }
0x366c   :  { %v2408_v52 = vpop.permute.xlu1 %2407 }
0x366d   :  { %v2410_v57 = vmul.f32 %v2408_v52, %v2398_v48 }
0x366f   :  { %2412 = vrot.lane.b32.xlu2 %v2410_v57, %s3224_s1 }
0x36c9   :  { %v2413_v63 = vpop.permute.xlu2 %2412 }
0x36ca   :  { %v2415_v51 = vadd.f32 %v2413_v63, %v2405_v53 }
0x36cc   :  { %3094 = vtanh.f32 %v2415_v51  ;;  %v2473_v21 = vrot.slane %v2415_v51, 6 }
0x36d2   :  { %v3095_v7 = vpop.eup %3094 }
0x36d3   :  { %2418 = vrot.lane.b32.xlu0 %v3095_v7, %s3223_s0 }
0x3745   :  { %v2419_v22 = vpop.permute.xlu0 %2418 }
0x3746   :  { %v3748_v14 = vmul.f32 %v2419_v22, %v2398_v48 }
0x3748   :  { %2423 = vrot.lane.b32.xlu1 %v3748_v14, %s3224_s1 }
0x37ba   :  { %v2424_v15 = vpop.permute.xlu1 %2423 }
0x37bb   :  { %2883 = vmatmul.msk.f32.vlgmr.msrb.gmra.mxu1 %vm138_vm12, %v2424_v15 }
0x3838   :  { %v2444_v8 = vpop.f32.mrf.mxu1 }
0x3839   :  { %v2448_v6 = vrot.slane %v2444_v8, 6 }
0x383b   :  { %v2450_v16 = vadd.f32 %v2448_v6, %v3742_v34 }
0x383d   :  { %v2884_v41 = vmul.f32 -1.442695, %v2450_v16 }
0x383f   :  { %3096 = vpow2.f32 %v2884_v41 }
0x3845   :  { %v3097_v10 = vpop.eup %3096 }
0x3846   :  { %v2454_v60 = vadd.f32 1.0, %v3097_v10 }
0x3848   :  { %3098 = vrcp.f32 %v2454_v60  ;;  %v2466_v12 = vand.u32 2147483648, %v2454_v60  ;;  %v2464_v3 = vand.u32 2147483647, %v2454_v60  ;;  %vm2460_vm15 = vweird.f32 %v2454_v60 }
0x384a   :  { %v2467_v13 = vor.u32 1.1754944e-38, %v2466_v12  ;;  %vm2465_vm13 = vcmp.eq.f32.partialorder %v2464_v3, 8.507059e+37 }
0x384e   :  { %v3099_v18 = vpop.eup %3098 }
0x384f   :  { %v2456_v36 = vmul.f32 %v3099_v18, %v2454_v60  ;;  %vm2461_vm10 = vweird.f32 %v3099_v18 }
0x3850   :  { %vm2462_vm11 = vmor %vm2460_vm15, %vm2461_vm10 }
0x3851   :  { %v2457_v2 = vsub.f32 1.0, %v2456_v36 }
0x3853   :  { %v2458_v19 = vmul.f32 %v3099_v18, %v2457_v2 }
0x3855   :  { %v2459_v35 = vadd.f32 %v3099_v18, %v2458_v19 }
0x3857   :  { %v2463_v28 = vsel %vm2462_vm11, %v3099_v18, %v2459_v35 }
0x3858   :  { %v2468_v1 = vsel %vm2465_vm13, %v2467_v13, %v2463_v28 }
0x3859   :  { %v2470_v20 = vmul.f32 2.0, %v2468_v1  ;;  %v2475_v50 = vmul.f32 %v2473_v21, %v2468_v1 }
0x385b   :  { %v2885_v59 = vadd.f32 -1.0, %v2470_v20  ;;  %v2642_v20 = vld [vmem:[#allocation5 + $0x1a0] sm:$0xff] }
0x385d   :  { %2477 = vrot.lane.b32.xlu2 %v2885_v59, %s3223_s0  ;;  %v2641_v59 = vld [vmem:[#allocation5 + $0x198] sm:$0xff] }
0x38b7   :  { %v2478_v61 = vpop.permute.xlu2 %2477 }
0x38b8   :  { %v2480_v5 = vmul.f32 %v2478_v61, %v2468_v1  ;;  %v2640_v61 = vld [vmem:[#allocation5 + $0x190] sm:$0xff] }
0x38ba   :  { %2482 = vrot.lane.b32.xlu0 %v2480_v5, %s3224_s1 }
0x392c   :  { %v2483_v23 = vpop.permute.xlu0 %2482 }
0x392d   :  { %v2485_v54 = vadd.f32 %v2483_v23, %v2475_v50 }
0x392f   :  { %3100 = vtanh.f32 %v2485_v54  ;;  %v2544_v48 = vrot.slane %v2485_v54, 6 }
0x3935   :  { %v3101_v24 = vpop.eup %3100 }
0x3936   :  { %2488 = vrot.lane.b32.xlu1 %v3101_v24, %s3223_s0 }
0x39a8   :  { %v2489_v11 = vpop.permute.xlu1 %2488 }
0x39a9   :  { %v2491_v25 = vmul.f32 %v2489_v11, %v2468_v1  ;;  %v2643_v1 = vld [vmem:[#allocation5 + $0x1a8] sm:$0xff] }
0x39aa   :  { %2668 = vmatpush.msrb.mxu0 %v2643_v1 }
0x39ab   :  { %v2493_v62 = vrot.slane %v2491_v25, 2  ;;  %v2637_v63 = vsel %vm81_vm1, %v3748_v14, %v2491_v25 }
0x39ac   :  { %2669 = vmatpush.msrb.mxu0 %v2642_v20 }
0x39ad   :  { %2494 = vrot.lane.b32.xlu2 %v2493_v62, %s3224_s1 }
0x39ae   :  { %2670 = vmatpush.msrb.mxu0 %v2641_v59 }
0x39b0   :  { %2671 = vmatpush.msrb.mxu0 %v2640_v61 }
0x3a07   :  { %v2495_v26 = vpop.permute.xlu2 %2494 }
0x3a08   :  { %2886 = vmatmul.msk.f32.vlgmr.msra.gmra.mxu2 %vm138_vm12, %v2495_v26 }
0x3a8b   :  { %v2515_v27 = vpop.f32.mrf.mxu2 }
0x3a8c   :  { %v2519_v0 = vrot.slane %v2515_v27, 4 }
0x3a8e   :  { %v2521_v29 = vadd.f32 %v2519_v0, %v3742_v34  ;;  %v2913_v0 = vld [vmem:[#allocation5 + $0x1b0] ss:$0 sm:$0xff] }
0x3a90   :  { %v2887_v30 = vmul.f32 -1.442695, %v2521_v29 }
0x3a92   :  { %3102 = vpow2.f32 %v2887_v30 }
0x3a98   :  { %v3103_v55 = vpop.eup %3102 }
0x3a99   :  { %v2525_v33 = vadd.f32 1.0, %v3103_v55 }
0x3a9b   :  { %3104 = vrcp.f32 %v2525_v33  ;;  %v2537_v42 = vand.u32 2147483648, %v2525_v33  ;;  %v2535_v44 = vand.u32 2147483647, %v2525_v33  ;;  %vm2531_vm7 = vweird.f32 %v2525_v33 }
0x3a9d   :  { %v2538_v38 = vor.u32 1.1754944e-38, %v2537_v42  ;;  %vm2536_vm9 = vcmp.eq.f32.partialorder %v2535_v44, 8.507059e+37 }
0x3aa1   :  { %v3105_v56 = vpop.eup %3104 }
0x3aa2   :  { %v2527_v37 = vmul.f32 %v3105_v56, %v2525_v33  ;;  %vm2532_vm14 = vweird.f32 %v3105_v56 }
0x3aa3   :  { %vm2533_vm8 = vmor %vm2531_vm7, %vm2532_vm14 }
0x3aa4   :  { %v2528_v40 = vsub.f32 1.0, %v2527_v37 }
0x3aa6   :  { %v2529_v43 = vmul.f32 %v3105_v56, %v2528_v40 }
0x3aa8   :  { %v2530_v31 = vadd.f32 %v3105_v56, %v2529_v43 }
0x3aaa   :  { %v2534_v45 = vsel %vm2533_vm8, %v3105_v56, %v2530_v31 }
0x3aab   :  { %v2539_v39 = vsel %vm2536_vm9, %v2538_v38, %v2534_v45 }
0x3aac   :  { %v2541_v4 = vmul.f32 2.0, %v2539_v39  ;;  %v2546_v49 = vmul.f32 %v2544_v48, %v2539_v39 }
0x3aae   :  { %v2888_v46 = vadd.f32 -1.0, %v2541_v4 }
0x3ab0   :  { %2548 = vrot.lane.b32.xlu0 %v2888_v46, %s3223_s0 }
0x3b22   :  { %v2549_v17 = vpop.permute.xlu0 %2548 }
0x3b23   :  { %v2551_v47 = vmul.f32 %v2549_v17, %v2539_v39 }
0x3b25   :  { %2553 = vrot.lane.b32.xlu1 %v2551_v47, %s3224_s1 }
0x3b97   :  { %v2554_v9 = vpop.permute.xlu1 %2553 }
0x3b98   :  { %v2556_v52 = vadd.f32 %v2554_v9, %v2546_v49 }
0x3b9a   :  { %3106 = vtanh.f32 %v2556_v52  ;;  %v2615_v23 = vrot.slane %v2556_v52, 6 }
0x3ba0   :  { %v3107_v57 = vpop.eup %3106 }
0x3ba1   :  { %2559 = vrot.lane.b32.xlu2 %v3107_v57, %s3223_s0 }
0x3bfb   :  { %v2560_v58 = vpop.permute.xlu2 %2559 }
0x3bfc   :  { %v2562_v53 = vmul.f32 %v2560_v58, %v2539_v39 }
0x3bfe   :  { %v2564_v51 = vrot.slane %v2562_v53, 4  ;;  %v2638_v7 = vsel %vm85_vm3, %v2637_v63, %v2562_v53 }
0x3c00   :  { %2565 = vrot.lane.b32.xlu0 %v2564_v51, %s3224_s1 }
0x3c72   :  { %v2566_v22 = vpop.permute.xlu0 %2565 }
0x3c73   :  { %2889 = vmatmul.msk.f32.vlgmr.msra.gmra.mxu3 %vm138_vm12, %v2566_v22 }
0x3cf6   :  { %v2586_v15 = vpop.f32.mrf.mxu3 }
0x3cf7   :  { %v2590_v8 = vrot.slane %v2586_v15, 2 }
0x3cf9   :  { %v2592_v6 = vadd.f32 %v2590_v8, %v3742_v34 }
0x3cfb   :  { %v2890_v16 = vmul.f32 -1.442695, %v2592_v6 }
0x3cfd   :  { %3108 = vpow2.f32 %v2890_v16 }
0x3d03   :  { %v3109_v41 = vpop.eup %3108 }
0x3d04   :  { %v2596_v10 = vadd.f32 1.0, %v3109_v41 }
0x3d06   :  { %3110 = vrcp.f32 %v2596_v10  ;;  %v2608_v36 = vand.u32 2147483648, %v2596_v10  ;;  %v2606_v12 = vand.u32 2147483647, %v2596_v10  ;;  %vm2602_vm15 = vweird.f32 %v2596_v10 }
0x3d08   :  { %v2609_v3 = vor.u32 1.1754944e-38, %v2608_v36  ;;  %vm2607_vm13 = vcmp.eq.f32.partialorder %v2606_v12, 8.507059e+37 }
0x3d0c   :  { %v3111_v60 = vpop.eup %3110 }
0x3d0d   :  { %v2598_v18 = vmul.f32 %v3111_v60, %v2596_v10  ;;  %vm2603_vm10 = vweird.f32 %v3111_v60 }
0x3d0e   :  { %vm2604_vm11 = vmor %vm2602_vm15, %vm2603_vm10 }
0x3d0f   :  { %v2599_v14 = vsub.f32 1.0, %v2598_v18 }
0x3d11   :  { %v2600_v2 = vmul.f32 %v3111_v60, %v2599_v14 }
0x3d13   :  { %v2601_v19 = vadd.f32 %v3111_v60, %v2600_v2 }
0x3d15   :  { %v2605_v35 = vsel %vm2604_vm11, %v3111_v60, %v2601_v19 }
0x3d16   :  { %v2610_v13 = vsel %vm2607_vm13, %v2609_v3, %v2605_v35 }
0x3d17   :  { %v2612_v34 = vmul.f32 2.0, %v2610_v13  ;;  %v2617_v54 = vmul.f32 %v2615_v23, %v2610_v13 }
0x3d19   :  { %v2891_v28 = vadd.f32 -1.0, %v2612_v34 }
0x3d1b   :  { %2619 = vrot.lane.b32.xlu1 %v2891_v28, %s3223_s0 }
0x3d23   :  { %2648 = vrot.lane.b32.xlu1 %v3737_v32, %s3224_s1 }
0x3d8d   :  { %v2620_v5 = vpop.permute.xlu1 %2619 }
0x3d8e   :  { %v2622_v21 = vmul.f32 %v2620_v5, %v2610_v13 }
0x3d90   :  { %2624 = vrot.lane.b32.xlu2 %v2622_v21, %s3224_s1 }
0x3d95   :  { %v2649_v50 = vpop.permute.xlu1 %2648 }
0x3d96   :  { %2892 = vmatmul.msk.f32.vlgmr.msrb.gmra.mxu0 %vm138_vm12, %v2649_v50 }
0x3dea   :  { %v2625_v24 = vpop.permute.xlu2 %2624 }
0x3deb   :  { %v2627_v11 = vadd.f32 %v2625_v24, %v2617_v54 }
0x3ded   :  { %3112 = vtanh.f32 %v2627_v11 }
0x3df3   :  { %v3113_v32 = vpop.eup %3112 }
0x3df4   :  { %2630 = vrot.lane.b32.xlu0 %v3113_v32, %s3223_s0 }
0x3e13   :  { %v2673_v29 = vpop.f32.mrf.mxu0 }
0x3e14   :  { %v2674_v30 = vadd.f32 %v2913_v0, %v2673_v29 }
0x3e16   :  { %v2680_v55 = vrot.slane %v2674_v30, 1  ;;  %v2682_v33 = vrot.slane %v2674_v30, 2  ;;  %v2684_v56 = vrot.slane %v2674_v30, 3  ;;  %v2695_v38 = vrot.slane %v2674_v30, 4 }
0x3e18   :  { %v2697_v37 = vsel %vm79_vm0, %v2674_v30, %v2680_v55  ;;  %v2704_v40 = vsel %vm79_vm0, %v2680_v55, %v2682_v33  ;;  %vm3811_vm0 = vcmask 130048  }
0x3e19   :  { %v2698_v43 = vsel %vm81_vm1, %v2697_v37, %v2682_v33  ;;  %v2705_v44 = vsel %vm81_vm1, %v2704_v40, %v2684_v56  ;;  %vm3812_vm1 = vmmov %vm3811_vm0 }
0x3e1a   :  { %v2699_v46 = vsel %vm83_vm2, %v2698_v43, %v2684_v56  ;;  %v2706_v17 = vsel %vm83_vm2, %v2705_v44, %v2695_v38 }
0x3e66   :  { %v2631_v25 = vpop.permute.xlu0 %2630 }
0x3e67   :  { %v2633_v62 = vmul.f32 %v2631_v25, %v2610_v13 }
0x3e69   :  { %v2639_v26 = vsel %vm89_vm5, %v2638_v7, %v2633_v62 }
0x3e6a   :  { %2650 = vrot.lane.b32.xlu2 %v2639_v26, %s3224_s1 }
0x3ec4   :  { %v2651_v27 = vpop.permute.xlu2 %2650 }
0x3ec5   :  { %2893 = vmatmul.msk.f32.gmra.mxu0 %vm138_vm12, %v2651_v27 }
0x3f42   :  { %v2676_v42 = vpop.f32.mrf.mxu0 }
0x3f43   :  { %v2677_v31 = vadd.f32 %v2913_v0, %v2676_v42 }
0x3f45   :  { %v2687_v45 = vrot.slane %v2677_v31, 4  ;;  %v2689_v39 = vrot.slane %v2677_v31, 5  ;;  %v2691_v4 = vrot.slane %v2677_v31, 6  ;;  %v2693_v47 = vrot.slane %v2677_v31, 7 }
0x3f47   :  { %v2700_v48 = vsel %vm85_vm3, %v2699_v46, %v2687_v45  ;;  %v2707_v49 = vsel %vm85_vm3, %v2706_v17, %v2689_v39 }
0x3f48   :  { %v2701_v9 = vsel %vm87_vm4, %v2700_v48, %v2689_v39  ;;  %v2708_v52 = vsel %vm87_vm4, %v2707_v49, %v2691_v4 }
0x3f49   :  { %v2702_v57 = vsel %vm89_vm5, %v2701_v9, %v2691_v4  ;;  %v2709_v58 = vsel %vm89_vm5, %v2708_v52, %v2693_v47 }
0x3f4a   :  { %v2703_v53 = vsel %vm91_vm6, %v2702_v57, %v2693_v47  ;;  %v2710_v63 = vsel %vm91_vm6, %v2709_v58, %v2677_v31 }
0x3f4b   :  { %2711 = vst.msk [vmem:[#allocation7] sm:$0xff] %vm3811_vm0, %v2703_v53 }
0x3f4c   :  { %2712 = vst.msk [vmem:[#allocation7 + $0x8] sm:$0xff] %vm3812_vm1, %v2710_v63 }
0x3f4d   :  { %2757 = dma.vmem_to_hbm [thread:$0]  %s2750_s29, 256, %s2752_s5, [#allocation4], %s3219_s20, %s3219_s20, %s3220_s21  }
0x3f4e   :  { %3214 = dma.done.wait [#allocation4], 256  }
0x3f4f   :  { %3215 = vsyncadd [#allocation4], 4294967040 }
0x3f50   :  { %3216 = dma.done.wait [#allocation9], 256  }
0x3f51   :  { %3217 = vsyncadd [#allocation9], 4294967040 }
0x3f52   :  { %2779 = vsyncpa [#allocation3], 1 }
0x3f53   :  { %2780 = vsyncpa [#allocation6], 1 }
0x3f54   :  { %2781 = vsyncpa [#allocation4], 1 }
0x3f55   :  { %2782 = vsyncpa [#allocation9], 1 }

</bundles_post_ra>
